<compile_context>
chip_gen: v6e
topology: v6e:2x2x1
jax: 0.10.0
libtpu: 0.0.40
codegen_flags: <defaults>
</compile_context>

<pallas_src>
import functools
import math

import jax
import jax.numpy as jnp
from jax.experimental import pallas as pl
from jax.experimental.pallas import tpu as pltpu


# ----------------------------------------------------------------------------
# Pallas kernels
# ----------------------------------------------------------------------------
def _apply_act(y, act):
    if act == "relu":
        return jnp.maximum(y, 0.0)
    if act == "sigmoid":
        # exp -> EUP, approximate reciprocal -> EUP; avoid a VALU divide.
        y = pl.reciprocal(1.0 + jnp.exp(-y), approx=True)
        return jnp.clip(y, 0.0, 1.0)
    return y


def _matmul_bias_act_kernel(x_ref, w_ref, b_ref, o_ref, *, act):
    # x:(M,K) bf16, w:(K,N) bf16, b:(1,N) f32 -> act(x@w + b), f32 accumulate.
    y = jnp.dot(x_ref[...], w_ref[...], preferred_element_type=jnp.float32)
    y = _apply_act(y + b_ref[...], act)
    o_ref[...] = y.astype(o_ref.dtype)


def _phase_matmul_kernel(p_ref, w_ref, b_ref, o_ref, *, act):
    # One sub-pixel phase per grid step: p:(1,M,K), w:(1,K,N), b:(1,N).
    y = jnp.dot(p_ref[0], w_ref[0], preferred_element_type=jnp.float32)
    y = _apply_act(y + b_ref[...], act)
    o_ref[0] = y.astype(o_ref.dtype)


def _latent_kernel(p_ref, c3w_ref, c3b_ref, w21_ref, b21_ref, w22_ref, b22_ref,
                   eps_ref, w3_ref, b3_ref, ct1w_ref, ct1b_ref,
                   mu_ref, lv_ref, d1_ref):
    # enc_conv3 (1x1 spatial output == plain linear on the flattened 4x4x64 window)
    h1 = jnp.dot(p_ref[...], c3w_ref[...],
                 preferred_element_type=jnp.float32) + c3b_ref[...]
    h1 = jnp.maximum(h1, 0.0)  # (the extra ReLU after View is idempotent)
    # fc21 / fc22
    mu = jnp.dot(h1, w21_ref[...], preferred_element_type=jnp.float32) + b21_ref[...]
    lv = jnp.dot(h1, w22_ref[...], preferred_element_type=jnp.float32) + b22_ref[...]
    # reparameterize
    z = mu + eps_ref[...] * jnp.exp(0.5 * lv)
    # decoder fc3 + ReLU
    d = jnp.maximum(
        jnp.dot(z, w3_ref[...], preferred_element_type=jnp.float32) + b3_ref[...], 0.0)
    # dec_ct1: ConvTranspose2d(256,64,4,1) on a 1x1 input == linear to 4*4*64
    d1 = jnp.dot(d.astype(jnp.bfloat16), ct1w_ref[...],
                 preferred_element_type=jnp.float32) + ct1b_ref[...]
    mu_ref[...] = mu
    lv_ref[...] = lv
    d1_ref[...] = jnp.maximum(d1, 0.0).astype(d1_ref.dtype)


# ----------------------------------------------------------------------------
# Kernel wrappers (full-array blocks, no HBM padding)
# ----------------------------------------------------------------------------
def matmul_bias_act(x, w, b, *, act, out_dtype):
    M, K = x.shape
    N = w.shape[1]
    return pl.pallas_call(
        functools.partial(_matmul_bias_act_kernel, act=act),
        out_shape=jax.ShapeDtypeStruct((M, N), out_dtype),
        in_specs=[pl.BlockSpec(memory_space=pltpu.MemorySpace.VMEM)] * 3,
        out_specs=pl.BlockSpec(memory_space=pltpu.MemorySpace.VMEM),
    )(x, w, b)


def latent_block(h_flat, eps, prep):
    B = h_flat.shape[0]
    z_dim = prep["fc21_w"].shape[1]
    d1_dim = prep["ct1_w"].shape[1]
    return pl.pallas_call(
        _latent_kernel,
        out_shape=(
            jax.ShapeDtypeStruct((B, z_dim), jnp.float32),    # mu
            jax.ShapeDtypeStruct((B, z_dim), jnp.float32),    # logvar
            jax.ShapeDtypeStruct((B, d1_dim), jnp.bfloat16),  # relu(dec_ct1), flat
        ),
        in_specs=[pl.BlockSpec(memory_space=pltpu.MemorySpace.VMEM)] * 12,
        out_specs=(pl.BlockSpec(memory_space=pltpu.MemorySpace.VMEM),) * 3,
    )(h_flat, prep["c3_w"], prep["c3_b"],
      prep["fc21_w"], prep["fc21_b"], prep["fc22_w"], prep["fc22_b"],
      eps, prep["fc3_w"], prep["fc3_b"], prep["ct1_w"], prep["ct1_b"])


# ----------------------------------------------------------------------------
# Convolutions lowered to (small) XLA im2col glue + Pallas MXU matmul
# ----------------------------------------------------------------------------
def _im2col(x, k, stride):
    # x: (N,H,W,C) -> (N*OH*OW, k*k*C); patch flat order (kh, kw, C).
    n, h, w, c = x.shape
    oh = (h - k) // stride + 1
    ow = (w - k) // stride + 1
    cols = []
    for i in range(k):
        for j in range(k):
            cols.append(x[:, i:i + stride * oh:stride, j:j + stride * ow:stride, :])
    patches = jnp.concatenate(cols, axis=-1)
    return patches.reshape(n * oh * ow, k * k * c), (n, oh, ow)


def conv2d(x, wmat, b, *, k, stride, padding, act, out_dtype):
    # x NHWC (bf16); wmat pre-laid-out (k*k*Cin, Cout) bf16; b (1, Cout) f32.
    if padding:
        x = jnp.pad(x, ((0, 0), (padding, padding), (padding, padding), (0, 0)))
    patches, (n, oh, ow) = _im2col(x, k, stride)
    y = matmul_bias_act(patches, wmat, b, act=act, out_dtype=out_dtype)
    return y.reshape(n, oh, ow, wmat.shape[1])


def _phase_patches(x):
    # Sub-pixel patches for ConvTranspose2d(k=4, s=2, p=1).
    # x: (B,H,W,C) -> (4, B*H*W, 4*C); phase order (py, px), tap order (dy, dx, C).
    B, H, W, C = x.shape
    xp = jnp.pad(x, ((0, 0), (1, 1), (1, 1), (0, 0)))
    phases = []
    for py in range(2):
        for px in range(2):
            cols = []
            for dy in range(2):
                for dx in range(2):
                    cols.append(xp[:, py + dy:py + dy + H, px + dx:px + dx + W, :])
            phases.append(jnp.concatenate(cols, axis=-1).reshape(B * H * W, 4 * C))
    return jnp.stack(phases, axis=0)


def _phase_assemble(y, B, H, W, cout):
    # y: (4, B*H*W, Cout) with phase order (py, px) -> (B, 2H, 2W, Cout),
    # out[b, 2a+py, 2c+px] = y[2*py+px, b*H*W + a*W + c].
    y = y.reshape(2, 2, B, H, W, cout)
    y = jnp.transpose(y, (2, 3, 0, 4, 1, 5))
    return y.reshape(B, 2 * H, 2 * W, cout)


def conv_transpose2d_s2(x, w_phase, b, *, act, out_dtype):
    # ConvTranspose2d(k=4, stride=2, padding=1) via 4-phase sub-pixel matmuls,
    # batched over a grid=(4,) "parallel" axis in a single pallas_call.
    B, H, W, C = x.shape
    cout = w_phase.shape[-1]
    patches = _phase_patches(x)                 # (4, M, K) bf16
    P, M, K = patches.shape
    y = pl.pallas_call(
        functools.partial(_phase_matmul_kernel, act=act),
        out_shape=jax.ShapeDtypeStruct((P, M, cout), out_dtype),
        grid=(P,),
        in_specs=[
            pl.BlockSpec((1, M, K), lambda i: (i, 0, 0)),
            pl.BlockSpec((1, K, cout), lambda i: (i, 0, 0)),
            pl.BlockSpec((1, cout), lambda i: (0, 0)),
        ],
        out_specs=pl.BlockSpec((1, M, cout), lambda i: (i, 0, 0)),
        compiler_params=pltpu.CompilerParams(dimension_semantics=("parallel",)),
    )(patches, w_phase, b)
    return _phase_assemble(y, B, H, W, cout)


# ----------------------------------------------------------------------------
# Parameters: PyTorch-style init, then a ONE-TIME re-layout outside jit
# ----------------------------------------------------------------------------
def init_params(key, z_dim=10, nc=1):
    names_shapes_fanin = [
        ("enc_conv1_w", (32, nc, 4, 4), nc * 16), ("enc_conv1_b", (32,), nc * 16),
        ("enc_conv2_w", (64, 32, 4, 4), 32 * 16), ("enc_conv2_b", (64,), 32 * 16),
        ("enc_conv3_w", (256, 64, 4, 4), 64 * 16), ("enc_conv3_b", (256,), 64 * 16),
        ("fc21_w", (z_dim, 256), 256), ("fc21_b", (z_dim,), 256),
        ("fc22_w", (z_dim, 256), 256), ("fc22_b", (z_dim,), 256),
        ("dec_fc_w", (256, z_dim), z_dim), ("dec_fc_b", (256,), z_dim),
        ("dec_ct1_w", (256, 64, 4, 4), 256 * 16), ("dec_ct1_b", (64,), 256 * 16),
        ("dec_ct2_w", (64, 32, 4, 4), 64 * 16), ("dec_ct2_b", (32,), 64 * 16),
        ("dec_ct3_w", (32, 32, 4, 4), 32 * 16), ("dec_ct3_b", (32,), 32 * 16),
        ("dec_ct4_w", (32, nc, 4, 4), 32 * 16), ("dec_ct4_b", (nc,), 32 * 16),
    ]
    keys = jax.random.split(key, len(names_shapes_fanin))
    params = {}
    for k, (name, shape, fan_in) in zip(keys, names_shapes_fanin):
        bound = 1.0 / math.sqrt(fan_in)
        params[name] = jax.random.uniform(k, shape, jnp.float32, -bound, bound)
    return params


def prepare_params(params):
    """One-time weight re-layout into matmul form (runs outside the jitted fwd)."""
    f32, bf16 = jnp.float32, jnp.bfloat16

    def conv_wmat(w):                       # (Cout,Cin,kh,kw) -> (kh*kw*Cin, Cout)
        cout, cin, kh, kw = w.shape
        return jnp.transpose(w, (2, 3, 1, 0)).reshape(kh * kw * cin, cout)

    def convT_s1_wmat(w):                   # stride-1 convT == flipped/swapped conv
        w_conv = jnp.transpose(w[:, :, ::-1, ::-1], (1, 0, 2, 3))
        return conv_wmat(w_conv)

    def convT_s2_phase_wmat(w):             # (Cin,Cout,4,4) -> (4, 2*2*Cin, Cout)
        cin, cout, _, _ = w.shape
        mats = []
        for py in range(2):
            for px in range(2):
                ky = jnp.array([3 - py, 1 - py])   # tap ky for window offset dy=0,1
                kx = jnp.array([3 - px, 1 - px])
                wsub = w[:, :, ky, :][:, :, :, kx]          # (ci, co, dy, dx)
                wsub = jnp.transpose(wsub, (2, 3, 0, 1))    # (dy, dx, ci, co)
                mats.append(wsub.reshape(4 * cin, cout))
        return jnp.stack(mats, axis=0)

    def bias2d(b):
        return b.reshape(1, -1).astype(f32)

    # dec_ct1 acts on a 1x1 input -> pure linear: W1[ci, (oy,ox,co)] = w[ci,co,oy,ox]
    ct1_mat = jnp.transpose(params["dec_ct1_w"], (0, 2, 3, 1)).reshape(256, 16 * 64)
    ct1_bfull = jnp.tile(params["dec_ct1_b"], 16)

    return {
        "c1_w": conv_wmat(params["enc_conv1_w"]).astype(bf16),
        "c1_b": bias2d(params["enc_conv1_b"]),
        "c2_w": conv_wmat(params["enc_conv2_w"]).astype(bf16),
        "c2_b": bias2d(params["enc_conv2_b"]),
        "c3_w": conv_wmat(params["enc_conv3_w"]).astype(bf16),
        "c3_b": bias2d(params["enc_conv3_b"]),
        "fc21_w": params["fc21_w"].T.astype(f32), "fc21_b": bias2d(params["fc21_b"]),
        "fc22_w": params["fc22_w"].T.astype(f32), "fc22_b": bias2d(params["fc22_b"]),
        "fc3_w": params["dec_fc_w"].T.astype(f32), "fc3_b": bias2d(params["dec_fc_b"]),
        "ct1_w": ct1_mat.astype(bf16), "ct1_b": bias2d(ct1_bfull),
        "ct2_w": convT_s1_wmat(params["dec_ct2_w"]).astype(bf16),
        "ct2_b": bias2d(params["dec_ct2_b"]),
        "ct3_w": convT_s2_phase_wmat(params["dec_ct3_w"]).astype(bf16),
        "ct3_b": bias2d(params["dec_ct3_b"]),
        "ct4_w": convT_s2_phase_wmat(params["dec_ct4_w"]).astype(bf16),
        "ct4_b": bias2d(params["dec_ct4_b"]),
    }


# ----------------------------------------------------------------------------
# VAE forward
# ----------------------------------------------------------------------------
def vae_forward(prep, x_nchw, noise_key):
    x = jnp.transpose(x_nchw, (0, 2, 3, 1)).astype(jnp.bfloat16)   # NCHW -> NHWC
    B = x.shape[0]

    # ---- encoder ----
    h = conv2d(x, prep["c1_w"], prep["c1_b"], k=4, stride=2, padding=1,
               act="relu", out_dtype=jnp.bfloat16)
    h = conv2d(h, prep["c2_w"], prep["c2_b"], k=4, stride=2, padding=1,
               act="relu", out_dtype=jnp.bfloat16)
    # enc_conv3 has a 1x1 spatial output, so its im2col is just this reshape;
    # the conv itself is fused into the latent kernel below.
    h_flat = h.reshape(B, -1)                                      # (B, 4*4*64)
    # TODO(synk): the trailing nn.Conv2d(64, 64, 4, 1) of the encoder Sequential
    # receives a 2-D (-1, 256) tensor and would raise a shape error in PyTorch
    # (dead/broken layer); it is skipped here.

    # ---- fused latent stage: enc_conv3 + fc21 + fc22 + reparameterize + fc3 + dec_ct1
    z_dim = prep["fc21_w"].shape[1]
    eps = jax.random.normal(noise_key, (B, z_dim), jnp.float32)
    mu, logvar, d1 = latent_block(h_flat, eps, prep)
    d = d1.reshape(B, 4, 4, 64)                                    # NHWC

    # ---- decoder ----
    d = conv2d(d, prep["ct2_w"], prep["ct2_b"], k=4, stride=1, padding=3,
               act="relu", out_dtype=jnp.bfloat16)                 # dec_ct2 (s=1 convT)
    d = conv_transpose2d_s2(d, prep["ct3_w"], prep["ct3_b"],
                            act="relu", out_dtype=jnp.bfloat16)    # dec_ct3
    d = conv_transpose2d_s2(d, prep["ct4_w"], prep["ct4_b"],
                            act="sigmoid", out_dtype=jnp.float32)  # dec_ct4 + sigmoid

    recon = jnp.transpose(d, (0, 3, 1, 2))                         # back to NCHW
    return recon, mu, logvar


if __name__ == "__main__":
    key = jax.random.PRNGKey(0)
    pkey, xkey, nkey = jax.random.split(key, 3)

    params = init_params(pkey, z_dim=10, nc=1)
    prep = prepare_params(params)          # one-time weight re-layout, outside jit

    # 16x16 input makes the encoder View((-1, 256)) collapse to (batch, 256).
    x = jax.random.normal(xkey, (2, 1, 16, 16), jnp.float32)       # NCHW

    fwd = jax.jit(vae_forward)
    recon, mu, logvar = fwd(prep, x, nkey)
    jax.block_until_ready((recon, mu, logvar))

    assert recon.shape == (2, 1, 28, 28)
    assert mu.shape == (2, 10) and logvar.shape == (2, 10)
    assert bool(jnp.all(recon >= 0.0)) and bool(jnp.all(recon <= 1.0))
    print("KERNEL_OK")
</pallas_src>

<mosaic_0001>
module attributes {stable_mosaic.version = 11 : i64} {
  func.func @_matmul_bias_act_kernel(%arg0: memref<128x16xbf16, #tpu.memory_space<vmem>>, %arg1: memref<16x32xbf16, #tpu.memory_space<vmem>>, %arg2: memref<1x32xf32, #tpu.memory_space<vmem>>, %arg3: memref<128x32xbf16, #tpu.memory_space<vmem>>) attributes {dimension_semantics = [], scalar_prefetch = 0 : i64, scratch_operands = 0 : i64, tpu.core_type = #tpu.core_type<tc>} {
    %c0 = arith.constant 0 : index
    %c0_0 = arith.constant 0 : index
    %0 = vector.load %arg0[%c0, %c0_0] : memref<128x16xbf16, #tpu.memory_space<vmem>>, vector<128x16xbf16>
    %c0_1 = arith.constant 0 : index
    %c0_2 = arith.constant 0 : index
    %1 = vector.load %arg1[%c0_1, %c0_2] : memref<16x32xbf16, #tpu.memory_space<vmem>>, vector<16x32xbf16>
    %cst = arith.constant dense<0.000000e+00> : vector<128x32xf32>
    %2 = tpu.matmul %0, %1, %cst {dimension_numbers = #tpu.dot_dimension_numbers<[1], [0], [0], [1], [0, 0, 1, 1], [], []>} : vector<128x16xbf16>, vector<16x32xbf16>, vector<128x32xf32> -> vector<128x32xf32>
    %c0_3 = arith.constant 0 : index
    %c0_4 = arith.constant 0 : index
    %3 = vector.load %arg2[%c0_3, %c0_4] : memref<1x32xf32, #tpu.memory_space<vmem>>, vector<1x32xf32>
    %4 = vector.broadcast %3 : vector<1x32xf32> to vector<128x32xf32>
    %5 = arith.addf %2, %4 : vector<128x32xf32>
    %cst_5 = arith.constant 0.000000e+00 : f32
    %6 = vector.broadcast %cst_5 : f32 to vector<128x32xf32>
    %7 = arith.maximumf %5, %6 : vector<128x32xf32>
    %8 = arith.truncf %7 : vector<128x32xf32> to vector<128x32xbf16>
    %c0_6 = arith.constant 0 : index
    %c0_7 = arith.constant 0 : index
    %9 = vector.load %arg3[%c0_6, %c0_7] : memref<128x32xbf16, #tpu.memory_space<vmem>>, vector<128x32xbf16>
    tpu.vector_store %arg3[%c0_6, %c0_7], %8 {strides = array<i32>} : memref<128x32xbf16, #tpu.memory_space<vmem>>, vector<128x32xbf16>,
    return
  }
}

module attributes {stable_mosaic.version = 11 : i64} {
  func.func @_matmul_bias_act_kernel(%arg0: memref<32x512xbf16, #tpu.memory_space<vmem>>, %arg1: memref<512x64xbf16, #tpu.memory_space<vmem>>, %arg2: memref<1x64xf32, #tpu.memory_space<vmem>>, %arg3: memref<32x64xbf16, #tpu.memory_space<vmem>>) attributes {dimension_semantics = [], scalar_prefetch = 0 : i64, scratch_operands = 0 : i64, tpu.core_type = #tpu.core_type<tc>} {
    %c0 = arith.constant 0 : index
    %c0_0 = arith.constant 0 : index
    %0 = vector.load %arg0[%c0, %c0_0] : memref<32x512xbf16, #tpu.memory_space<vmem>>, vector<32x512xbf16>
    %c0_1 = arith.constant 0 : index
    %c0_2 = arith.constant 0 : index
    %1 = vector.load %arg1[%c0_1, %c0_2] : memref<512x64xbf16, #tpu.memory_space<vmem>>, vector<512x64xbf16>
    %cst = arith.constant dense<0.000000e+00> : vector<32x64xf32>
    %2 = tpu.matmul %0, %1, %cst {dimension_numbers = #tpu.dot_dimension_numbers<[1], [0], [0], [1], [0, 0, 1, 1], [], []>} : vector<32x512xbf16>, vector<512x64xbf16>, vector<32x64xf32> -> vector<32x64xf32>
    %c0_3 = arith.constant 0 : index
    %c0_4 = arith.constant 0 : index
    %3 = vector.load %arg2[%c0_3, %c0_4] : memref<1x64xf32, #tpu.memory_space<vmem>>, vector<1x64xf32>
    %4 = vector.broadcast %3 : vector<1x64xf32> to vector<32x64xf32>
    %5 = arith.addf %2, %4 : vector<32x64xf32>
    %cst_5 = arith.constant 0.000000e+00 : f32
    %6 = vector.broadcast %cst_5 : f32 to vector<32x64xf32>
    %7 = arith.maximumf %5, %6 : vector<32x64xf32>
    %8 = arith.truncf %7 : vector<32x64xf32> to vector<32x64xbf16>
    %c0_6 = arith.constant 0 : index
    %c0_7 = arith.constant 0 : index
    %9 = vector.load %arg3[%c0_6, %c0_7] : memref<32x64xbf16, #tpu.memory_space<vmem>>, vector<32x64xbf16>
    tpu.vector_store %arg3[%c0_6, %c0_7], %8 {strides = array<i32>} : memref<32x64xbf16, #tpu.memory_space<vmem>>, vector<32x64xbf16>,
    return
  }
}

module attributes {stable_mosaic.version = 11 : i64} {
  func.func @_latent_kernel(%arg0: memref<2x1024xbf16, #tpu.memory_space<vmem>>, %arg1: memref<1024x256xbf16, #tpu.memory_space<vmem>>, %arg2: memref<1x256xf32, #tpu.memory_space<vmem>>, %arg3: memref<256x10xf32, #tpu.memory_space<vmem>>, %arg4: memref<1x10xf32, #tpu.memory_space<vmem>>, %arg5: memref<256x10xf32, #tpu.memory_space<vmem>>, %arg6: memref<1x10xf32, #tpu.memory_space<vmem>>, %arg7: memref<2x10xf32, #tpu.memory_space<vmem>>, %arg8: memref<10x256xf32, #tpu.memory_space<vmem>>, %arg9: memref<1x256xf32, #tpu.memory_space<vmem>>, %arg10: memref<256x1024xbf16, #tpu.memory_space<vmem>>, %arg11: memref<1x1024xf32, #tpu.memory_space<vmem>>, %arg12: memref<2x10xf32, #tpu.memory_space<vmem>>, %arg13: memref<2x10xf32, #tpu.memory_space<vmem>>, %arg14: memref<2x1024xbf16, #tpu.memory_space<vmem>>) attributes {dimension_semantics = [], scalar_prefetch = 0 : i64, scratch_operands = 0 : i64, tpu.core_type = #tpu.core_type<tc>} {
    %c0 = arith.constant 0 : index
    %c0_0 = arith.constant 0 : index
    %0 = vector.load %arg0[%c0, %c0_0] : memref<2x1024xbf16, #tpu.memory_space<vmem>>, vector<2x1024xbf16>
    %c0_1 = arith.constant 0 : index
    %c0_2 = arith.constant 0 : index
    %1 = vector.load %arg1[%c0_1, %c0_2] : memref<1024x256xbf16, #tpu.memory_space<vmem>>, vector<1024x256xbf16>
    %cst = arith.constant dense<0.000000e+00> : vector<2x256xf32>
    %2 = tpu.matmul %0, %1, %cst {dimension_numbers = #tpu.dot_dimension_numbers<[1], [0], [0], [1], [0, 0, 1, 1], [], []>} : vector<2x1024xbf16>, vector<1024x256xbf16>, vector<2x256xf32> -> vector<2x256xf32>
    %c0_3 = arith.constant 0 : index
    %c0_4 = arith.constant 0 : index
    %3 = vector.load %arg2[%c0_3, %c0_4] : memref<1x256xf32, #tpu.memory_space<vmem>>, vector<1x256xf32>
    %4 = vector.broadcast %3 : vector<1x256xf32> to vector<2x256xf32>
    %5 = arith.addf %2, %4 : vector<2x256xf32>
    %cst_5 = arith.constant 0.000000e+00 : f32
    %6 = vector.broadcast %cst_5 : f32 to vector<2x256xf32>
    %7 = arith.maximumf %5, %6 : vector<2x256xf32>
    %c0_6 = arith.constant 0 : index
    %c0_7 = arith.constant 0 : index
    %8 = vector.load %arg3[%c0_6, %c0_7] : memref<256x10xf32, #tpu.memory_space<vmem>>, vector<256x10xf32>
    %cst_8 = arith.constant dense<0.000000e+00> : vector<2x10xf32>
    %9 = tpu.matmul %7, %8, %cst_8 {dimension_numbers = #tpu.dot_dimension_numbers<[1], [0], [0], [1], [0, 0, 1, 1], [], []>} : vector<2x256xf32>, vector<256x10xf32>, vector<2x10xf32> -> vector<2x10xf32>
    %c0_9 = arith.constant 0 : index
    %c0_10 = arith.constant 0 : index
    %10 = vector.load %arg4[%c0_9, %c0_10] : memref<1x10xf32, #tpu.memory_space<vmem>>, vector<1x10xf32>
    %11 = vector.broadcast %10 : vector<1x10xf32> to vector<2x10xf32>
    %12 = arith.addf %9, %11 : vector<2x10xf32>
    %c0_11 = arith.constant 0 : index
    %c0_12 = arith.constant 0 : index
    %13 = vector.load %arg5[%c0_11, %c0_12] : memref<256x10xf32, #tpu.memory_space<vmem>>, vector<256x10xf32>
    %cst_13 = arith.constant dense<0.000000e+00> : vector<2x10xf32>
    %14 = tpu.matmul %7, %13, %cst_13 {dimension_numbers = #tpu.dot_dimension_numbers<[1], [0], [0], [1], [0, 0, 1, 1], [], []>} : vector<2x256xf32>, vector<256x10xf32>, vector<2x10xf32> -> vector<2x10xf32>
    %c0_14 = arith.constant 0 : index
    %c0_15 = arith.constant 0 : index
    %15 = vector.load %arg6[%c0_14, %c0_15] : memref<1x10xf32, #tpu.memory_space<vmem>>, vector<1x10xf32>
    %16 = vector.broadcast %15 : vector<1x10xf32> to vector<2x10xf32>
    %17 = arith.addf %14, %16 : vector<2x10xf32>
    %c0_16 = arith.constant 0 : index
    %c0_17 = arith.constant 0 : index
    %18 = vector.load %arg7[%c0_16, %c0_17] : memref<2x10xf32, #tpu.memory_space<vmem>>, vector<2x10xf32>
    %cst_18 = arith.constant 5.000000e-01 : f32
    %19 = vector.broadcast %cst_18 : f32 to vector<2x10xf32>
    %20 = arith.mulf %19, %17 : vector<2x10xf32>
    %21 = math.exp %20 : vector<2x10xf32>
    %22 = arith.mulf %18, %21 : vector<2x10xf32>
    %23 = arith.addf %12, %22 : vector<2x10xf32>
    %c0_19 = arith.constant 0 : index
    %c0_20 = arith.constant 0 : index
    %24 = vector.load %arg8[%c0_19, %c0_20] : memref<10x256xf32, #tpu.memory_space<vmem>>, vector<10x256xf32>
    %cst_21 = arith.constant dense<0.000000e+00> : vector<2x256xf32>
    %25 = tpu.matmul %23, %24, %cst_21 {dimension_numbers = #tpu.dot_dimension_numbers<[1], [0], [0], [1], [0, 0, 1, 1], [], []>} : vector<2x10xf32>, vector<10x256xf32>, vector<2x256xf32> -> vector<2x256xf32>
    %c0_22 = arith.constant 0 : index
    %c0_23 = arith.constant 0 : index
    %26 = vector.load %arg9[%c0_22, %c0_23] : memref<1x256xf32, #tpu.memory_space<vmem>>, vector<1x256xf32>
    %27 = vector.broadcast %26 : vector<1x256xf32> to vector<2x256xf32>
    %28 = arith.addf %25, %27 : vector<2x256xf32>
    %cst_24 = arith.constant 0.000000e+00 : f32
    %29 = vector.broadcast %cst_24 : f32 to vector<2x256xf32>
    %30 = arith.maximumf %28, %29 : vector<2x256xf32>
    %31 = arith.truncf %30 : vector<2x256xf32> to vector<2x256xbf16>
    %c0_25 = arith.constant 0 : index
    %c0_26 = arith.constant 0 : index
    %32 = vector.load %arg10[%c0_25, %c0_26] : memref<256x1024xbf16, #tpu.memory_space<vmem>>, vector<256x1024xbf16>
    %cst_27 = arith.constant dense<0.000000e+00> : vector<2x1024xf32>
    %33 = tpu.matmul %31, %32, %cst_27 {dimension_numbers = #tpu.dot_dimension_numbers<[1], [0], [0], [1], [0, 0, 1, 1], [], []>} : vector<2x256xbf16>, vector<256x1024xbf16>, vector<2x1024xf32> -> vector<2x1024xf32>
    %c0_28 = arith.constant 0 : index
    %c0_29 = arith.constant 0 : index
    %34 = vector.load %arg11[%c0_28, %c0_29] : memref<1x1024xf32, #tpu.memory_space<vmem>>, vector<1x1024xf32>
    %35 = vector.broadcast %34 : vector<1x1024xf32> to vector<2x1024xf32>
    %36 = arith.addf %33, %35 : vector<2x1024xf32>
    %c0_30 = arith.constant 0 : index
    %c0_31 = arith.constant 0 : index
    %37 = vector.load %arg12[%c0_30, %c0_31] : memref<2x10xf32, #tpu.memory_space<vmem>>, vector<2x10xf32>
    tpu.vector_store %arg12[%c0_30, %c0_31], %12 {strides = array<i32>} : memref<2x10xf32, #tpu.memory_space<vmem>>, vector<2x10xf32>,
    %c0_32 = arith.constant 0 : index
    %c0_33 = arith.constant 0 : index
    %38 = vector.load %arg13[%c0_32, %c0_33] : memref<2x10xf32, #tpu.memory_space<vmem>>, vector<2x10xf32>
    tpu.vector_store %arg13[%c0_32, %c0_33], %17 {strides = array<i32>} : memref<2x10xf32, #tpu.memory_space<vmem>>, vector<2x10xf32>,
    %cst_34 = arith.constant 0.000000e+00 : f32
    %39 = vector.broadcast %cst_34 : f32 to vector<2x1024xf32>
    %40 = arith.maximumf %36, %39 : vector<2x1024xf32>
    %41 = arith.truncf %40 : vector<2x1024xf32> to vector<2x1024xbf16>
    %c0_35 = arith.constant 0 : index
    %c0_36 = arith.constant 0 : index
    %42 = vector.load %arg14[%c0_35, %c0_36] : memref<2x1024xbf16, #tpu.memory_space<vmem>>, vector<2x1024xbf16>
    tpu.vector_store %arg14[%c0_35, %c0_36], %41 {strides = array<i32>} : memref<2x1024xbf16, #tpu.memory_space<vmem>>, vector<2x1024xbf16>,
    return
  }
}

module attributes {stable_mosaic.version = 11 : i64} {
  func.func @_matmul_bias_act_kernel(%arg0: memref<98x1024xbf16, #tpu.memory_space<vmem>>, %arg1: memref<1024x32xbf16, #tpu.memory_space<vmem>>, %arg2: memref<1x32xf32, #tpu.memory_space<vmem>>, %arg3: memref<98x32xbf16, #tpu.memory_space<vmem>>) attributes {dimension_semantics = [], scalar_prefetch = 0 : i64, scratch_operands = 0 : i64, tpu.core_type = #tpu.core_type<tc>} {
    %c0 = arith.constant 0 : index
    %c0_0 = arith.constant 0 : index
    %0 = vector.load %arg0[%c0, %c0_0] : memref<98x1024xbf16, #tpu.memory_space<vmem>>, vector<98x1024xbf16>
    %c0_1 = arith.constant 0 : index
    %c0_2 = arith.constant 0 : index
    %1 = vector.load %arg1[%c0_1, %c0_2] : memref<1024x32xbf16, #tpu.memory_space<vmem>>, vector<1024x32xbf16>
    %cst = arith.constant dense<0.000000e+00> : vector<98x32xf32>
    %2 = tpu.matmul %0, %1, %cst {dimension_numbers = #tpu.dot_dimension_numbers<[1], [0], [0], [1], [0, 0, 1, 1], [], []>} : vector<98x1024xbf16>, vector<1024x32xbf16>, vector<98x32xf32> -> vector<98x32xf32>
    %c0_3 = arith.constant 0 : index
    %c0_4 = arith.constant 0 : index
    %3 = vector.load %arg2[%c0_3, %c0_4] : memref<1x32xf32, #tpu.memory_space<vmem>>, vector<1x32xf32>
    %4 = vector.broadcast %3 : vector<1x32xf32> to vector<98x32xf32>
    %5 = arith.addf %2, %4 : vector<98x32xf32>
    %cst_5 = arith.constant 0.000000e+00 : f32
    %6 = vector.broadcast %cst_5 : f32 to vector<98x32xf32>
    %7 = arith.maximumf %5, %6 : vector<98x32xf32>
    %8 = arith.truncf %7 : vector<98x32xf32> to vector<98x32xbf16>
    %c0_6 = arith.constant 0 : index
    %c0_7 = arith.constant 0 : index
    %9 = vector.load %arg3[%c0_6, %c0_7] : memref<98x32xbf16, #tpu.memory_space<vmem>>, vector<98x32xbf16>
    tpu.vector_store %arg3[%c0_6, %c0_7], %8 {strides = array<i32>} : memref<98x32xbf16, #tpu.memory_space<vmem>>, vector<98x32xbf16>,
    return
  }
}

module attributes {stable_mosaic.version = 11 : i64} {
  func.func @_phase_matmul_kernel(%arg0: i32, %arg1: memref<1x98x128xbf16, #tpu.memory_space<vmem>>, %arg2: memref<1x128x32xbf16, #tpu.memory_space<vmem>>, %arg3: memref<1x32xf32, #tpu.memory_space<vmem>>, %arg4: memref<1x98x32xbf16, #tpu.memory_space<vmem>>) attributes {dimension_semantics = [#tpu.dimension_semantics<parallel>], iteration_bounds = array<i64: 4>, scalar_prefetch = 0 : i64, scratch_operands = 0 : i64, tpu.core_type = #tpu.core_type<tc>, window_params = [{transform_indices = @transform_0, window_bounds = array<i64: 1, 98, 128>}, {transform_indices = @transform_1, window_bounds = array<i64: 1, 128, 32>}, {pipeline_mode = #tpu.pipeline_mode<synchronous>, transform_indices = @transform_2, window_bounds = array<i64: 1, 32>}, {transform_indices = @transform_3, window_bounds = array<i64: 1, 98, 32>}]} {
    %c0 = arith.constant 0 : index
    %c0_0 = arith.constant 0 : index
    %c0_1 = arith.constant 0 : index
    %0 = vector.load %arg1[%c0, %c0_0, %c0_1] : memref<1x98x128xbf16, #tpu.memory_space<vmem>>, vector<1x98x128xbf16>
    %1 = vector.shape_cast %0 : vector<1x98x128xbf16> to vector<98x128xbf16>
    %c0_2 = arith.constant 0 : index
    %c0_3 = arith.constant 0 : index
    %c0_4 = arith.constant 0 : index
    %2 = vector.load %arg2[%c0_2, %c0_3, %c0_4] : memref<1x128x32xbf16, #tpu.memory_space<vmem>>, vector<1x128x32xbf16>
    %3 = vector.shape_cast %2 : vector<1x128x32xbf16> to vector<128x32xbf16>
    %cst = arith.constant dense<0.000000e+00> : vector<98x32xf32>
    %4 = tpu.matmul %1, %3, %cst {dimension_numbers = #tpu.dot_dimension_numbers<[1], [0], [0], [1], [0, 0, 1, 1], [], []>} : vector<98x128xbf16>, vector<128x32xbf16>, vector<98x32xf32> -> vector<98x32xf32>
    %c0_5 = arith.constant 0 : index
    %c0_6 = arith.constant 0 : index
    %5 = vector.load %arg3[%c0_5, %c0_6] : memref<1x32xf32, #tpu.memory_space<vmem>>, vector<1x32xf32>
    %6 = vector.broadcast %5 : vector<1x32xf32> to vector<98x32xf32>
    %7 = arith.addf %4, %6 : vector<98x32xf32>
    %cst_7 = arith.constant 0.000000e+00 : f32
    %8 = vector.broadcast %cst_7 : f32 to vector<98x32xf32>
    %9 = arith.maximumf %7, %8 : vector<98x32xf32>
    %10 = arith.truncf %9 : vector<98x32xf32> to vector<98x32xbf16>
    %c0_8 = arith.constant 0 : index
    %c0_9 = arith.constant 0 : index
    %c0_10 = arith.constant 0 : index
    %11 = vector.load %arg4[%c0_8, %c0_9, %c0_10] : memref<1x98x32xbf16, #tpu.memory_space<vmem>>, vector<1x98x32xbf16>
    %12 = vector.shape_cast %11 : vector<1x98x32xbf16> to vector<98x32xbf16>
    %13 = vector.shape_cast %10 : vector<98x32xbf16> to vector<1x98x32xbf16>
    tpu.vector_store %arg4[%c0_8, %c0_9, %c0_10], %13 {strides = array<i32>} : memref<1x98x32xbf16, #tpu.memory_space<vmem>>, vector<1x98x32xbf16>,
    return
  }
  func.func @transform_0(%arg0: i32) -> (i32, i32, i32) {
    %c0_i32 = arith.constant 0 : i32
    %c0_i32_0 = arith.constant 0 : i32
    %c0_i32_1 = arith.constant 0 : i32
    return %arg0, %c0_i32, %c0_i32_0 : i32, i32, i32
  }
  func.func @transform_1(%arg0: i32) -> (i32, i32, i32) {
    %c0_i32 = arith.constant 0 : i32
    %c0_i32_0 = arith.constant 0 : i32
    %c0_i32_1 = arith.constant 0 : i32
    return %arg0, %c0_i32, %c0_i32_0 : i32, i32, i32
  }
  func.func @transform_2(%arg0: i32) -> (i32, i32) {
    %c0_i32 = arith.constant 0 : i32
    %c0_i32_0 = arith.constant 0 : i32
    %c0_i32_1 = arith.constant 0 : i32
    return %c0_i32, %c0_i32_0 : i32, i32
  }
  func.func @transform_3(%arg0: i32) -> (i32, i32, i32) {
    %c0_i32 = arith.constant 0 : i32
    %c0_i32_0 = arith.constant 0 : i32
    %c0_i32_1 = arith.constant 0 : i32
    return %arg0, %c0_i32, %c0_i32_0 : i32, i32, i32
  }
}

module attributes {stable_mosaic.version = 11 : i64} {
  func.func @_phase_matmul_kernel(%arg0: i32, %arg1: memref<1x392x128xbf16, #tpu.memory_space<vmem>>, %arg2: memref<1x128x1xbf16, #tpu.memory_space<vmem>>, %arg3: memref<1x1xf32, #tpu.memory_space<vmem>>, %arg4: memref<1x392x1xf32, #tpu.memory_space<vmem>>) attributes {dimension_semantics = [#tpu.dimension_semantics<parallel>], iteration_bounds = array<i64: 4>, scalar_prefetch = 0 : i64, scratch_operands = 0 : i64, tpu.core_type = #tpu.core_type<tc>, window_params = [{transform_indices = @transform_0, window_bounds = array<i64: 1, 392, 128>}, {transform_indices = @transform_1, window_bounds = array<i64: 1, 128, 1>}, {pipeline_mode = #tpu.pipeline_mode<synchronous>, transform_indices = @transform_2, window_bounds = array<i64: 1, 1>}, {transform_indices = @transform_3, window_bounds = array<i64: 1, 392, 1>}]} {
    %c0 = arith.constant 0 : index
    %c0_0 = arith.constant 0 : index
    %c0_1 = arith.constant 0 : index
    %0 = vector.load %arg1[%c0, %c0_0, %c0_1] : memref<1x392x128xbf16, #tpu.memory_space<vmem>>, vector<1x392x128xbf16>
    %1 = vector.shape_cast %0 : vector<1x392x128xbf16> to vector<392x128xbf16>
    %c0_2 = arith.constant 0 : index
    %c0_3 = arith.constant 0 : index
    %c0_4 = arith.constant 0 : index
    %2 = vector.load %arg2[%c0_2, %c0_3, %c0_4] : memref<1x128x1xbf16, #tpu.memory_space<vmem>>, vector<1x128x1xbf16>
    %3 = vector.shape_cast %2 : vector<1x128x1xbf16> to vector<128x1xbf16>
    %cst = arith.constant dense<0.000000e+00> : vector<392x1xf32>
    %4 = tpu.matmul %1, %3, %cst {dimension_numbers = #tpu.dot_dimension_numbers<[1], [0], [0], [1], [0, 0, 1, 1], [], []>} : vector<392x128xbf16>, vector<128x1xbf16>, vector<392x1xf32> -> vector<392x1xf32>
    %c0_5 = arith.constant 0 : index
    %c0_6 = arith.constant 0 : index
    %5 = vector.load %arg3[%c0_5, %c0_6] : memref<1x1xf32, #tpu.memory_space<vmem>>, vector<1x1xf32>
    %6 = vector.broadcast %5 : vector<1x1xf32> to vector<392x1xf32>
    %7 = arith.addf %4, %6 : vector<392x1xf32>
    %cst_7 = arith.constant 0.000000e+00 : f32
    %8 = vector.broadcast %cst_7 : f32 to vector<392x1xf32>
    %9 = arith.subf %8, %7 : vector<392x1xf32>
    %10 = math.exp %9 : vector<392x1xf32>
    %cst_8 = arith.constant 1.000000e+00 : f32
    %11 = vector.broadcast %cst_8 : f32 to vector<392x1xf32>
    %12 = arith.addf %11, %10 : vector<392x1xf32>
    %13 = tpu.reciprocal %12 {approx = true} : vector<392x1xf32> -> vector<392x1xf32>
    %cst_9 = arith.constant 0.000000e+00 : f32
    %cst_10 = arith.constant 1.000000e+00 : f32
    %14 = vector.broadcast %cst_9 : f32 to vector<392x1xf32>
    %15 = arith.maximumf %14, %13 : vector<392x1xf32>
    %16 = vector.broadcast %cst_10 : f32 to vector<392x1xf32>
    %17 = arith.minimumf %16, %15 : vector<392x1xf32>
    %c0_11 = arith.constant 0 : index
    %c0_12 = arith.constant 0 : index
    %c0_13 = arith.constant 0 : index
    %18 = vector.load %arg4[%c0_11, %c0_12, %c0_13] : memref<1x392x1xf32, #tpu.memory_space<vmem>>, vector<1x392x1xf32>
    %19 = vector.shape_cast %18 : vector<1x392x1xf32> to vector<392x1xf32>
    %20 = vector.shape_cast %17 : vector<392x1xf32> to vector<1x392x1xf32>
    tpu.vector_store %arg4[%c0_11, %c0_12, %c0_13], %20 {strides = array<i32>} : memref<1x392x1xf32, #tpu.memory_space<vmem>>, vector<1x392x1xf32>,
    return
  }
  func.func @transform_0(%arg0: i32) -> (i32, i32, i32) {
    %c0_i32 = arith.constant 0 : i32
    %c0_i32_0 = arith.constant 0 : i32
    %c0_i32_1 = arith.constant 0 : i32
    return %arg0, %c0_i32, %c0_i32_0 : i32, i32, i32
  }
  func.func @transform_1(%arg0: i32) -> (i32, i32, i32) {
    %c0_i32 = arith.constant 0 : i32
    %c0_i32_0 = arith.constant 0 : i32
    %c0_i32_1 = arith.constant 0 : i32
    return %arg0, %c0_i32, %c0_i32_0 : i32, i32, i32
  }
  func.func @transform_2(%arg0: i32) -> (i32, i32) {
    %c0_i32 = arith.constant 0 : i32
    %c0_i32_0 = arith.constant 0 : i32
    %c0_i32_1 = arith.constant 0 : i32
    return %c0_i32, %c0_i32_0 : i32, i32
  }
  func.func @transform_3(%arg0: i32) -> (i32, i32, i32) {
    %c0_i32 = arith.constant 0 : i32
    %c0_i32_0 = arith.constant 0 : i32
    %c0_i32_1 = arith.constant 0 : i32
    return %arg0, %c0_i32, %c0_i32_0 : i32, i32, i32
  }
}

</mosaic_0001>

<bundles_post_ra>
// kernel: vae_forward.6
= control target key start
LH: loop header
LB: loop body
LE: loop exit
PB: predicated region body
PF: predicated region fallthrough
CT: control target
= control target key end

     0   :  { %vm86_vm0 = vcmask 130048   ;;  %vm288_vm1 = vcmask 257024   ;;  %s537_s1 = inlined_call_operand.vmem [shape: bf16[16,32], index: 1, kind: input, shape index: {}]   ;;  %s538_s0 = inlined_call_operand.vmem [shape: bf16[128,16], index: 0, kind: input, shape index: {}]   ;;  %s539_s2 = inlined_call_operand.vmem [shape: f32[1,32], index: 2, kind: input, shape index: {}]   ;;  %s540_s3 = inlined_call_operand.vmem [shape: bf16[128,32], index: 3, kind: output, shape index: {}]  }
   0x1   :  { %v388_v0 = vld [vmem:[%s537_s1] sm:$0xff]   ;;  %v391_v3 = vld [vmem:[%s538_s0 + $0x8] sm:$0xff]   ;;  %v393_v5 = vld [vmem:[%s538_s0 + $0x10] sm:$0xff]  }
   0x2   :  { %v389_v1 = vld [vmem:[%s538_s0] sm:$0xff]   ;;  %368 = vmatprep.subr.bf16.mxu0 %v388_v0  ;;  %386 = vmatprep.subr.bf16.mxu1 %v388_v0  ;;  %v392_v4 = vld [vmem:[%s538_s0 + $0x28] sm:$0xff]   ;;  %v394_v6 = vld [vmem:[%s538_s0 + $0x30] sm:$0xff]  }
   0x3   :  { %v390_v2 = vld [vmem:[%s538_s0 + $0x20] sm:$0xff]   ;;  %369 = vmatpush3.bf16.msra.mxu0 %v388_v0  ;;  %387 = vmatpush3.bf16.msra.mxu1 %v388_v0  ;;  %v395_v7 = vld [vmem:[%s538_s0 + $0x18] sm:$0xff]  }
   0x4   :  { %370 = vmatprep.mubr.msk.bf16.mxu0 %vm86_vm0, %v389_v1  ;;  %378 = vmatprep.mubr.msk.bf16.mxu1 %vm86_vm0, %v390_v2  ;;  %v396_v8 = vld [vmem:[%s538_s0 + $0x38] sm:$0xff]   ;;  %v455_v9 = vld [vmem:[%s539_s2] ss:$0 sm:$0xff] }
   0x6   :  { %371 = vmatmul.mubr.msk.bf16.vlgmr.msra.gmra.mxu0 %vm86_vm0, %v391_v3  ;;  %379 = vmatmul.mubr.msk.bf16.vlgmr.msra.gmra.mxu1 %vm86_vm0, %v392_v4 }
   0x7   :  { %374 = vmatprep.mubr.msk.bf16.mxu0 %vm86_vm0, %v393_v5  ;;  %382 = vmatprep.mubr.msk.bf16.mxu1 %vm86_vm0, %v394_v6 }
   0xe   :  { %375 = vmatmul.mubr.msk.bf16.gmra.mxu0 %vm86_vm0, %v395_v7  ;;  %383 = vmatmul.mubr.msk.bf16.gmra.mxu1 %vm86_vm0, %v396_v8 }
  0xc6   :  { %v372_v10 = vpop.f32.mrf.mxu0  ;;  %v380_v11 = vpop.f32.mrf.mxu1 }
  0xc7   :  { %v154_v12 = vadd.f32 %v372_v10, %v455_v9  ;;  %v186_v13 = vadd.f32 %v380_v11, %v455_v9 }
  0xc8   :  { %v145_v14 = vpop.f32.mrf.mxu0  ;;  %v177_v15 = vpop.f32.mrf.mxu1 }
  0xc9   :  { %v210_v16 = vmax.f32 %v154_v12, 0.0  ;;  %v218_v17 = vmax.f32 %v186_v13, 0.0  ;;  %v146_v18 = vadd.f32 %v455_v9, %v145_v14  ;;  %v178_v19 = vadd.f32 %v455_v9, %v177_v15 }
  0xca   :  { %v373_v20 = vpop.f32.mrf.mxu0  ;;  %v381_v21 = vpop.f32.mrf.mxu1 }
  0xcb   :  { %v345_v22 = vpack.c.bf16 %v210_v16, %v210_v16  ;;  %v353_v23 = vpack.c.bf16 %v218_v17, %v218_v17  ;;  %v208_v24 = vmax.f32 %v146_v18, 0.0  ;;  %v216_v25 = vmax.f32 %v178_v19, 0.0 }
  0xcc   :  { %v157_v26 = vadd.f32 %v373_v20, %v455_v9  ;;  %v189_v27 = vadd.f32 %v381_v21, %v455_v9  ;;  %v148_v28 = vpop.f32.mrf.mxu0  ;;  %v180_v29 = vpop.f32.mrf.mxu1 }
  0xcd   :  { %291 = vst.msk [vmem:[%s540_s3 + $0x8] sm:$0xf] %vm288_vm1, %v345_v22  ;;  %299 = vst.msk [vmem:[%s540_s3 + $0x28] sm:$0xf] %vm288_vm1, %v353_v23  ;;  %v343_v30 = vpack.c.bf16 %v208_v24, %v208_v24  ;;  %v351_v31 = vpack.c.bf16 %v216_v25, %v216_v25  ;;  %v149_v32 = vadd.f32 %v455_v9, %v148_v28 }
  0xce   :  { %v181_v33 = vadd.f32 %v455_v9, %v180_v29  ;;  %v211_v34 = vmax.f32 %v157_v26, 0.0  ;;  %v219_v35 = vmax.f32 %v189_v27, 0.0  ;;  %v376_v36 = vpop.f32.mrf.mxu0  ;;  %v384_v37 = vpop.f32.mrf.mxu1 }
  0xcf   :  { %289 = vst.msk [vmem:[%s540_s3] sm:$0xf] %vm288_vm1, %v343_v30  ;;  %297 = vst.msk [vmem:[%s540_s3 + $0x20] sm:$0xf] %vm288_vm1, %v351_v31  ;;  %v209_v38 = vmax.f32 %v149_v32, 0.0  ;;  %v170_v40 = vadd.f32 %v376_v36, %v455_v9  ;;  %v202_v41 = vadd.f32 %v384_v37, %v455_v9 }
  0xd0   :  { %v217_v39 = vmax.f32 %v181_v33, 0.0  ;;  %v346_v42 = vpack.c.bf16 %v211_v34, %v211_v34  ;;  %v354_v43 = vpack.c.bf16 %v219_v35, %v219_v35  ;;  %v161_v44 = vpop.f32.mrf.mxu0  ;;  %v193_v45 = vpop.f32.mrf.mxu1 }
  0xd1   :  { %v344_v46 = vpack.c.bf16 %v209_v38, %v209_v38  ;;  %v214_v48 = vmax.f32 %v170_v40, 0.0  ;;  %v222_v49 = vmax.f32 %v202_v41, 0.0  ;;  %v162_v50 = vadd.f32 %v455_v9, %v161_v44 }
  0xd2   :  { %v352_v47 = vpack.c.bf16 %v217_v39, %v217_v39  ;;  %292 = vst.msk [vmem:[%s540_s3 + $0xc] sm:$0xf] %vm288_vm1, %v346_v42  ;;  %300 = vst.msk [vmem:[%s540_s3 + $0x2c] sm:$0xf] %vm288_vm1, %v354_v43  ;;  %v194_v51 = vadd.f32 %v455_v9, %v193_v45  ;;  %v377_v52 = vpop.f32.mrf.mxu0  ;;  %v385_v53 = vpop.f32.mrf.mxu1 }
  0xd3   :  { %290 = vst.msk [vmem:[%s540_s3 + $0x4] sm:$0xf] %vm288_vm1, %v344_v46  ;;  %v349_v54 = vpack.c.bf16 %v214_v48, %v214_v48  ;;  %v357_v55 = vpack.c.bf16 %v222_v49, %v222_v49  ;;  %v173_v56 = vadd.f32 %v377_v52, %v455_v9  ;;  %v205_v57 = vadd.f32 %v385_v53, %v455_v9 }
  0xd4   :  { %298 = vst.msk [vmem:[%s540_s3 + $0x24] sm:$0xf] %vm288_vm1, %v352_v47  ;;  %v212_v58 = vmax.f32 %v162_v50, 0.0  ;;  %v220_v59 = vmax.f32 %v194_v51, 0.0  ;;  %v164_v60 = vpop.f32.mrf.mxu0  ;;  %v196_v61 = vpop.f32.mrf.mxu1 }
  0xd5   :  { %295 = vst.msk [vmem:[%s540_s3 + $0x18] sm:$0xf] %vm288_vm1, %v349_v54  ;;  %303 = vst.msk [vmem:[%s540_s3 + $0x38] sm:$0xf] %vm288_vm1, %v357_v55  ;;  %v215_v62 = vmax.f32 %v173_v56, 0.0  ;;  %v223_v63 = vmax.f32 %v205_v57, 0.0  ;;  %v165_v0 = vadd.f32 %v455_v9, %v164_v60  ;;  %v197_v1 = vadd.f32 %v455_v9, %v196_v61 }
  0xd6   :  { %v347_v2 = vpack.c.bf16 %v212_v58, %v212_v58  ;;  %v355_v3 = vpack.c.bf16 %v220_v59, %v220_v59 }
  0xd7   :  { %v350_v4 = vpack.c.bf16 %v215_v62, %v215_v62  ;;  %v358_v5 = vpack.c.bf16 %v223_v63, %v223_v63  ;;  %v213_v6 = vmax.f32 %v165_v0, 0.0  ;;  %v221_v7 = vmax.f32 %v197_v1, 0.0 }
  0xd8   :  { %293 = vst.msk [vmem:[%s540_s3 + $0x10] sm:$0xf] %vm288_vm1, %v347_v2  ;;  %301 = vst.msk [vmem:[%s540_s3 + $0x30] sm:$0xf] %vm288_vm1, %v355_v3 }
  0xd9   :  { %296 = vst.msk [vmem:[%s540_s3 + $0x1c] sm:$0xf] %vm288_vm1, %v350_v4  ;;  %304 = vst.msk [vmem:[%s540_s3 + $0x3c] sm:$0xf] %vm288_vm1, %v358_v5  ;;  %v348_v8 = vpack.c.bf16 %v213_v6, %v213_v6  ;;  %v356_v9 = vpack.c.bf16 %v221_v7, %v221_v7 }
  0xdb   :  { %294 = vst.msk [vmem:[%s540_s3 + $0x14] sm:$0xf] %vm288_vm1, %v348_v8  ;;  %302 = vst.msk [vmem:[%s540_s3 + $0x34] sm:$0xf] %vm288_vm1, %v356_v9 }

// kernel: vae_forward.7
= control target key start
LH: loop header
LB: loop body
LE: loop exit
PB: predicated region body
PF: predicated region fallthrough
CT: control target
= control target key end

     0   :  { %vm444_vm0 = vcmask 519168   ;;  %s761_s1 = inlined_call_operand.vmem [shape: bf16[512,64], index: 1, kind: input, shape index: {}]   ;;  %s762_s0 = inlined_call_operand.vmem [shape: bf16[32,512], index: 0, kind: input, shape index: {}]   ;;  %s763_s2 = inlined_call_operand.vmem [shape: f32[1,64], index: 2, kind: input, shape index: {}]   ;;  %s764_s3 = inlined_call_operand.vmem [shape: bf16[32,64], index: 3, kind: output, shape index: {}]  }
   0x1   :  { %v558_v0 = vld [vmem:[%s761_s1 + $0x78] sm:$0xff]   ;;  %v562_v4 = vld [vmem:[%s761_s1 + $0x70] sm:$0xff]   ;;  %v566_v8 = vld [vmem:[%s761_s1 + $0x68] sm:$0xff]  }
   0x2   :  { %v559_v1 = vld [vmem:[%s761_s1 + $0xf8] sm:$0xff]   ;;  %502 = vmatprep.subr.bf16.mxu0 %v558_v0  ;;  %v563_v5 = vld [vmem:[%s761_s1 + $0xf0] sm:$0xff]   ;;  %v567_v9 = vld [vmem:[%s761_s1 + $0xe8] sm:$0xff]  }
   0x3   :  { %v560_v2 = vld [vmem:[%s761_s1 + $0x38] sm:$0xff]   ;;  %530 = vmatprep.subr.bf16.mxu1 %v559_v1  ;;  %v564_v6 = vld [vmem:[%s761_s1 + $0x30] sm:$0xff]   ;;  %v568_v10 = vld [vmem:[%s761_s1 + $0x28] sm:$0xff]  }
   0x4   :  { %v561_v3 = vld [vmem:[%s761_s1 + $0xb8] sm:$0xff]   ;;  %503 = vmatpush3.bf16.msra.mxu0 %v560_v2  ;;  %v565_v7 = vld [vmem:[%s761_s1 + $0xb0] sm:$0xff]   ;;  %v569_v11 = vld [vmem:[%s761_s1 + $0xa8] sm:$0xff]  }
   0x5   :  { %531 = vmatpush3.bf16.msra.mxu1 %v561_v3  ;;  %504 = vmatprep.subr.bf16.mxu0 %v562_v4  ;;  %v570_v12 = vld [vmem:[%s761_s1 + $0x60] sm:$0xff]   ;;  %v574_v16 = vld [vmem:[%s761_s1 + $0x58] sm:$0xff]   ;;  %v578_v20 = vld [vmem:[%s761_s1 + $0x50] sm:$0xff]  }
   0x6   :  { %532 = vmatprep.subr.bf16.mxu1 %v563_v5  ;;  %v571_v13 = vld [vmem:[%s761_s1 + $0xe0] sm:$0xff]   ;;  %v575_v17 = vld [vmem:[%s761_s1 + $0xd8] sm:$0xff]   ;;  %v579_v21 = vld [vmem:[%s761_s1 + $0xd0] sm:$0xff]  }
   0x7   :  { %v572_v14 = vld [vmem:[%s761_s1 + $0x20] sm:$0xff]   ;;  %v576_v18 = vld [vmem:[%s761_s1 + $0x18] sm:$0xff]   ;;  %v580_v22 = vld [vmem:[%s761_s1 + $0x10] sm:$0xff]  }
   0x8   :  { %505 = vmatpush3.bf16.msra.mxu0 %v564_v6  ;;  %v573_v15 = vld [vmem:[%s761_s1 + $0xa0] sm:$0xff]   ;;  %v577_v19 = vld [vmem:[%s761_s1 + $0x98] sm:$0xff]   ;;  %v581_v23 = vld [vmem:[%s761_s1 + $0x90] sm:$0xff]  }
   0x9   :  { %533 = vmatpush3.bf16.msra.mxu1 %v565_v7  ;;  %506 = vmatprep.subr.bf16.mxu0 %v566_v8  ;;  %v582_v24 = vld [vmem:[%s761_s1 + $0x48] sm:$0xff]   ;;  %v586_v28 = vld [vmem:[%s761_s1 + $0x40] sm:$0xff]  }
   0xa   :  { %534 = vmatprep.subr.bf16.mxu1 %v567_v9  ;;  %v583_v25 = vld [vmem:[%s761_s1 + $0xc8] sm:$0xff]   ;;  %v587_v29 = vld [vmem:[%s761_s1 + $0xc0] sm:$0xff]  }
   0xb   :  { %v584_v26 = vld [vmem:[%s761_s1 + $0x8] sm:$0xff]   ;;  %v588_v30 = vld [vmem:[%s761_s1] sm:$0xff]  }
   0xc   :  { %507 = vmatpush3.bf16.msra.mxu0 %v568_v10  ;;  %v585_v27 = vld [vmem:[%s761_s1 + $0x88] sm:$0xff]   ;;  %v589_v31 = vld [vmem:[%s761_s1 + $0x80] sm:$0xff]  }
   0xd   :  { %535 = vmatpush3.bf16.msra.mxu1 %v569_v11  ;;  %508 = vmatprep.subr.bf16.mxu0 %v570_v12  ;;  %v590_v32 = vld [vmem:[%s762_s0] ss:$16 sps:$4 sm:$0xff]   ;;  %v592_v33 = vld [vmem:[%s762_s0 + $0x4] ss:$16 sps:$4 sm:$0xff]   ;;  %v593_v34 = vld [vmem:[%s762_s0 + $0x8] ss:$16 sps:$4 sm:$0xff]  }
   0xe   :  { %536 = vmatprep.subr.bf16.mxu1 %v571_v13  ;;  %v595_v35 = vld [vmem:[%s762_s0 + $0xc] ss:$16 sps:$4 sm:$0xff]   ;;  %358 = vmatprep.mubr.bf16.mxu0 %v592_v33  ;;  %v596_v36 = vld [vmem:[%s762_s0 + $0x24] ss:$16 sps:$4 sm:$0xff]   ;;  %v600_v38 = vld [vmem:[%s762_s0 + $0x20] ss:$16 sps:$4 sm:$0xff]  }
   0xf   :  { %407 = vmatprep.mubr.bf16.mxu1 %v595_v35  ;;  %v598_v37 = vld [vmem:[%s762_s0 + $0x2c] ss:$16 sps:$4 sm:$0xff]   ;;  %v601_v39 = vld [vmem:[%s762_s0 + $0x28] ss:$16 sps:$4 sm:$0xff]   ;;  %v453_v42 = vld [vmem:[%s763_s2] ss:$0 sm:$0xff] }
  0x10   :  { %509 = vmatpush3.bf16.msra.mxu0 %v572_v14 }
  0x11   :  { %537 = vmatpush3.bf16.msra.mxu1 %v573_v15  ;;  %510 = vmatprep.subr.bf16.mxu0 %v574_v16 }
  0x12   :  { %538 = vmatprep.subr.bf16.mxu1 %v575_v17 }
  0x14   :  { %511 = vmatpush3.bf16.msra.mxu0 %v576_v18 }
  0x15   :  { %539 = vmatpush3.bf16.msra.mxu1 %v577_v19  ;;  %512 = vmatprep.subr.bf16.mxu0 %v578_v20 }
  0x16   :  { %540 = vmatprep.subr.bf16.mxu1 %v579_v21 }
  0x18   :  { %513 = vmatpush3.bf16.msra.mxu0 %v580_v22 }
  0x19   :  { %541 = vmatpush3.bf16.msra.mxu1 %v581_v23  ;;  %514 = vmatprep.subr.bf16.mxu0 %v582_v24 }
  0x1a   :  { %542 = vmatprep.subr.bf16.mxu1 %v583_v25 }
  0x1c   :  { %515 = vmatpush3.bf16.msra.mxu0 %v584_v26 }
  0x1d   :  { %543 = vmatpush3.bf16.msra.mxu1 %v585_v27  ;;  %516 = vmatprep.subr.bf16.mxu0 %v586_v28 }
  0x1e   :  { %544 = vmatprep.subr.bf16.mxu1 %v587_v29 }
  0x20   :  { %517 = vmatpush3.bf16.msra.mxu0 %v588_v30 }
  0x21   :  { %545 = vmatpush3.bf16.msra.mxu1 %v589_v31 }
  0x23   :  { %359 = vmatmul.mubr.bf16.vlgmr.msra.gmra.mxu0 %v590_v32 }
  0x24   :  { %408 = vmatmul.mubr.bf16.vlgmr.msra.gmra.mxu1 %v593_v34  ;;  %366 = vmatprep.mubr.bf16.mxu0 %v596_v36 }
  0x25   :  { %415 = vmatprep.mubr.bf16.mxu1 %v598_v37 }
  0x2b   :  { %367 = vmatmul.mubr.bf16.gmra.mxu0 %v600_v38 }
  0x2c   :  { %416 = vmatmul.mubr.bf16.gmra.mxu1 %v601_v39 }
  0xe3   :  { %v518_v40 = vpop.f32.mrf.mxu0 }
  0xe4   :  { %v546_v41 = vpop.f32.mrf.mxu1 }
  0xe5   :  { %v519_v43 = vpop.f32.mrf.mxu0 }
  0xe6   :  { %v520_v44 = vadd.f32 %v519_v43, %v518_v40  ;;  %v547_v45 = vpop.f32.mrf.mxu1 }
  0xe7   :  { %v521_v46 = vpop.f32.mrf.mxu0  ;;  %v548_v48 = vadd.f32 %v547_v45, %v546_v41 }
  0xe8   :  { %v361_v47 = vadd.f32 %v520_v44, %v453_v42  ;;  %v549_v49 = vpop.f32.mrf.mxu1 }
  0xe9   :  { %v522_v50 = vpop.f32.mrf.mxu0 }
  0xea   :  { %v410_v51 = vadd.f32 %v548_v48, %v361_v47  ;;  %v523_v52 = vadd.f32 %v522_v50, %v521_v46  ;;  %v550_v53 = vpop.f32.mrf.mxu1 }
  0xeb   :  { %v524_v54 = vpop.f32.mrf.mxu0  ;;  %v551_v57 = vadd.f32 %v550_v53, %v549_v49 }
  0xec   :  { %v424_v55 = vmax.f32 %v410_v51, 0.0  ;;  %v364_v56 = vadd.f32 %v523_v52, %v453_v42  ;;  %v552_v58 = vpop.f32.mrf.mxu1 }
  0xed   :  { %v525_v59 = vpop.f32.mrf.mxu0 }
  0xee   :  { %v498_v60 = vpack.c.bf16 %v424_v55, %v424_v55  ;;  %v413_v61 = vadd.f32 %v551_v57, %v364_v56  ;;  %v526_v62 = vadd.f32 %v525_v59, %v524_v54  ;;  %v553_v63 = vpop.f32.mrf.mxu1 }
  0xef   :  { %v527_v0 = vpop.f32.mrf.mxu0  ;;  %v554_v3 = vadd.f32 %v553_v63, %v552_v58 }
  0xf0   :  { %445 = vst.msk [vmem:[%s764_s3] sm:$0xf] %vm444_vm0, %v498_v60  ;;  %v425_v1 = vmax.f32 %v413_v61, 0.0  ;;  %v369_v2 = vadd.f32 %v526_v62, %v453_v42  ;;  %v555_v4 = vpop.f32.mrf.mxu1 }
  0xf1   :  { %v528_v5 = vpop.f32.mrf.mxu0 }
  0xf2   :  { %v499_v6 = vpack.c.bf16 %v425_v1, %v425_v1  ;;  %v418_v7 = vadd.f32 %v554_v3, %v369_v2  ;;  %v529_v8 = vadd.f32 %v528_v5, %v527_v0  ;;  %v556_v9 = vpop.f32.mrf.mxu1 }
  0xf3   :  { %v557_v12 = vadd.f32 %v556_v9, %v555_v4 }
  0xf4   :  { %446 = vst.msk [vmem:[%s764_s3 + $0x4] sm:$0xf] %vm444_vm0, %v499_v6  ;;  %v426_v10 = vmax.f32 %v418_v7, 0.0  ;;  %v372_v11 = vadd.f32 %v529_v8, %v453_v42 }
  0xf6   :  { %v500_v13 = vpack.c.bf16 %v426_v10, %v426_v10  ;;  %v421_v14 = vadd.f32 %v557_v12, %v372_v11 }
  0xf8   :  { %447 = vst.msk [vmem:[%s764_s3 + $0x8] sm:$0xf] %vm444_vm0, %v500_v13  ;;  %v427_v15 = vmax.f32 %v421_v14, 0.0 }
  0xfa   :  { %v501_v16 = vpack.c.bf16 %v427_v15, %v427_v15 }
  0xfc   :  { %448 = vst.msk [vmem:[%s764_s3 + $0xc] sm:$0xf] %vm444_vm0, %v501_v16 }

// kernel: vae_forward.8
= control target key start
LH: loop header
LB: loop body
LE: loop exit
PB: predicated region body
PF: predicated region fallthrough
CT: control target
= control target key end

     0   :  { %20 = vsyncpa [#allocation3], 0  ;;  %v177_v36 = vlaneseq  ;;  %v3039_v37 = vmov 1966171168   ;;  %s4177_s0 = inlined_call_operand.vmem [shape: bf16[2,1024], index: 0, kind: input, shape index: {}]   ;;  %s4178_s1 = inlined_call_operand.vmem [shape: bf16[1024,256], index: 1, kind: input, shape index: {}]   ;;  %s4179_s2 = inlined_call_operand.vmem [shape: f32[1,256], index: 2, kind: input, shape index: {}]   ;;  %s4180_s3 = inlined_call_operand.vmem [shape: f32[256,10], index: 3, kind: input, shape index: {}]   ;;  %s4181_s4 = inlined_call_operand.vmem [shape: f32[1,10], index: 4, kind: input, shape index: {}]   ;;  %s4182_s5 = inlined_call_operand.vmem [shape: f32[256,10], index: 5, kind: input, shape index: {}]   ;;  %s4183_s6 = inlined_call_operand.vmem [shape: f32[1,10], index: 6, kind: input, shape index: {}]   ;;  %s4184_s7 = inlined_call_operand.vmem [shape: f32[2,10], index: 7, kind: input, shape index: {}]   ;;  %s4185_s8 = inlined_call_operand.vmem [shape: f32[10,256], index: 8, kind: input, shape index: {}]   ;;  %s4186_s9 = inlined_call_operand.vmem [shape: f32[1,256], index: 9, kind: input, shape index: {}]   ;;  %s4187_s10 = inlined_call_operand.vmem [shape: bf16[256,1024], index: 10, kind: input, shape index: {}]   ;;  %s4188_s11 = inlined_call_operand.vmem [shape: f32[1,1024], index: 11, kind: input, shape index: {}]   ;;  %s4189_s12 = inlined_call_operand.hbm [shape: f32[2,10], index: 12, kind: output, shape index: {0}]   ;;  %s4190_s13 = inlined_call_operand.hbm [shape: f32[2,10], index: 13, kind: output, shape index: {1}]   ;;  %s4191_s14 = inlined_call_operand.vmem [shape: bf16[2,1024], index: 14, kind: output, shape index: {2}]  }
   0x1   :  { %v2800_v0 = vld [vmem:[%s4178_s1 + $0x74] ss:$8 sps:$4 sm:$0xff]   ;;  %v2804_v2 = vld [vmem:[%s4178_s1 + $0x70] ss:$8 sps:$4 sm:$0xff]   ;;  %v2806_v4 = vld [vmem:[%s4178_s1 + $0x64] ss:$8 sps:$4 sm:$0xff]   ;;  %v190_v38 = vunpack.c.l.s4 %v3039_v37 }
   0x2   :  { %v2802_v1 = vld [vmem:[%s4178_s1 + $0x174] ss:$8 sps:$4 sm:$0xff]   ;;  %885 = vmatprep.subr.bf16.mxu0 %v2800_v0  ;;  %v2805_v3 = vld [vmem:[%s4178_s1 + $0x170] ss:$8 sps:$4 sm:$0xff]   ;;  %v2808_v5 = vld [vmem:[%s4178_s1 + $0x164] ss:$8 sps:$4 sm:$0xff]  }
   0x3   :  { %926 = vmatprep.subr.bf16.mxu1 %v2802_v1  ;;  %886 = vmatpush1.bf16.msra.mxu0 %v2804_v2  ;;  %v2810_v6 = vld [vmem:[%s4178_s1 + $0x60] ss:$8 sps:$4 sm:$0xff]   ;;  %v2812_v8 = vld [vmem:[%s4178_s1 + $0x54] ss:$8 sps:$4 sm:$0xff]   ;;  %v2816_v10 = vld [vmem:[%s4178_s1 + $0x50] ss:$8 sps:$4 sm:$0xff]   ;;  %v191_v43 = vunpack.c.0.s8 %v190_v38 }
   0x4   :  { %927 = vmatpush1.bf16.msra.mxu1 %v2805_v3  ;;  %887 = vmatprep.subr.bf16.mxu0 %v2806_v4  ;;  %v2811_v7 = vld [vmem:[%s4178_s1 + $0x160] ss:$8 sps:$4 sm:$0xff]   ;;  %v2814_v9 = vld [vmem:[%s4178_s1 + $0x154] ss:$8 sps:$4 sm:$0xff]   ;;  %v2817_v11 = vld [vmem:[%s4178_s1 + $0x150] ss:$8 sps:$4 sm:$0xff]  }
   0x5   :  { %928 = vmatprep.subr.bf16.mxu1 %v2808_v5  ;;  %v2818_v12 = vld [vmem:[%s4178_s1 + $0x44] ss:$8 sps:$4 sm:$0xff]   ;;  %v2822_v14 = vld [vmem:[%s4178_s1 + $0x40] ss:$8 sps:$4 sm:$0xff]   ;;  %v2824_v16 = vld [vmem:[%s4178_s1 + $0x34] ss:$8 sps:$4 sm:$0xff]  }
   0x6   :  { %v2820_v13 = vld [vmem:[%s4178_s1 + $0x144] ss:$8 sps:$4 sm:$0xff]   ;;  %v2823_v15 = vld [vmem:[%s4178_s1 + $0x140] ss:$8 sps:$4 sm:$0xff]   ;;  %v2826_v17 = vld [vmem:[%s4178_s1 + $0x134] ss:$8 sps:$4 sm:$0xff]  }
   0x7   :  { %888 = vmatpush1.bf16.msra.mxu0 %v2810_v6  ;;  %v2828_v18 = vld [vmem:[%s4178_s1 + $0x30] ss:$8 sps:$4 sm:$0xff]   ;;  %v2830_v20 = vld [vmem:[%s4178_s1 + $0x24] ss:$8 sps:$4 sm:$0xff]   ;;  %v2834_v22 = vld [vmem:[%s4178_s1 + $0x20] ss:$8 sps:$4 sm:$0xff]  }
   0x8   :  { %929 = vmatpush1.bf16.msra.mxu1 %v2811_v7  ;;  %889 = vmatprep.subr.bf16.mxu0 %v2812_v8  ;;  %v2829_v19 = vld [vmem:[%s4178_s1 + $0x130] ss:$8 sps:$4 sm:$0xff]   ;;  %v2832_v21 = vld [vmem:[%s4178_s1 + $0x124] ss:$8 sps:$4 sm:$0xff]   ;;  %v2835_v23 = vld [vmem:[%s4178_s1 + $0x120] ss:$8 sps:$4 sm:$0xff]  }
   0x9   :  { %930 = vmatprep.subr.bf16.mxu1 %v2814_v9  ;;  %v2836_v24 = vld [vmem:[%s4178_s1 + $0x14] ss:$8 sps:$4 sm:$0xff]   ;;  %v2840_v26 = vld [vmem:[%s4178_s1 + $0x10] ss:$8 sps:$4 sm:$0xff]   ;;  %v2842_v28 = vld [vmem:[%s4178_s1 + $0x4] ss:$8 sps:$4 sm:$0xff]  }
   0xa   :  { %v2838_v25 = vld [vmem:[%s4178_s1 + $0x114] ss:$8 sps:$4 sm:$0xff]   ;;  %v2841_v27 = vld [vmem:[%s4178_s1 + $0x110] ss:$8 sps:$4 sm:$0xff]   ;;  %v2844_v29 = vld [vmem:[%s4178_s1 + $0x104] ss:$8 sps:$4 sm:$0xff]  }
   0xb   :  { %890 = vmatpush1.bf16.msra.mxu0 %v2816_v10  ;;  %v2846_v30 = vld [vmem:[%s4178_s1] ss:$8 sps:$4 sm:$0xff]   ;;  %v2848_v32 = vld [vmem:[%s4178_s1 + $0xf4] ss:$8 sps:$4 sm:$0xff]   ;;  %v2852_v34 = vld [vmem:[%s4178_s1 + $0xf0] ss:$8 sps:$4 sm:$0xff]  }
   0xc   :  { %931 = vmatpush1.bf16.msra.mxu1 %v2817_v11  ;;  %891 = vmatprep.subr.bf16.mxu0 %v2818_v12  ;;  %v2847_v31 = vld [vmem:[%s4178_s1 + $0x100] ss:$8 sps:$4 sm:$0xff]   ;;  %v2850_v33 = vld [vmem:[%s4178_s1 + $0x1f4] ss:$8 sps:$4 sm:$0xff]   ;;  %v2853_v35 = vld [vmem:[%s4178_s1 + $0x1f0] ss:$8 sps:$4 sm:$0xff]  }
   0xd   :  { %932 = vmatprep.subr.bf16.mxu1 %v2820_v13  ;;  %v2854_v39 = vld [vmem:[%s4178_s1 + $0xe4] ss:$8 sps:$4 sm:$0xff]   ;;  %v2858_v41 = vld [vmem:[%s4178_s1 + $0xe0] ss:$8 sps:$4 sm:$0xff]   ;;  %v3235_v42 = vshrl.u32 %v177_v36, 7 }
   0xe   :  { %v2856_v40 = vld [vmem:[%s4178_s1 + $0x1e4] ss:$8 sps:$4 sm:$0xff]   ;;  %v2859_v44 = vld [vmem:[%s4178_s1 + $0x1e0] ss:$8 sps:$4 sm:$0xff]   ;;  %v2860_v45 = vld [vmem:[%s4178_s1 + $0xd4] ss:$8 sps:$4 sm:$0xff]  }
   0xf   :  { %892 = vmatpush1.bf16.msra.mxu0 %v2822_v14  ;;  %v2862_v46 = vld [vmem:[%s4178_s1 + $0x1d4] ss:$8 sps:$4 sm:$0xff]   ;;  %v2864_v47 = vld [vmem:[%s4178_s1 + $0xd0] ss:$8 sps:$4 sm:$0xff]   ;;  %v3253_v49 = vsub.s32 %v191_v43, %v3235_v42  ;;  %v2866_v50 = vld [vmem:[%s4178_s1 + $0xc4] ss:$8 sps:$4 sm:$0xff]  }
  0x10   :  { %933 = vmatpush1.bf16.msra.mxu1 %v2823_v15  ;;  %893 = vmatprep.subr.bf16.mxu0 %v2824_v16  ;;  %v2865_v48 = vld [vmem:[%s4178_s1 + $0x1d0] ss:$8 sps:$4 sm:$0xff]   ;;  %v2868_v51 = vld [vmem:[%s4178_s1 + $0x1c4] ss:$8 sps:$4 sm:$0xff]   ;;  %v2870_v53 = vld [vmem:[%s4178_s1 + $0xc0] ss:$8 sps:$4 sm:$0xff]  }
  0x11   :  { %934 = vmatprep.subr.bf16.mxu1 %v2826_v17  ;;  %v46_v52 = vld [vmem:[%s4177_s0] sm:$0xff]  ;;  %v2872_v56 = vld [vmem:[%s4178_s1 + $0xb4] ss:$8 sps:$4 sm:$0xff]   ;;  %v2876_v59 = vld [vmem:[%s4178_s1 + $0xb0] ss:$8 sps:$4 sm:$0xff]  }
  0x12   :  { %v195_v54 = vrot.slane %v46_v52, %v3253_v49  ;;  %v2871_v55 = vld [vmem:[%s4178_s1 + $0x1c0] ss:$8 sps:$4 sm:$0xff]   ;;  %v2874_v57 = vld [vmem:[%s4178_s1 + $0x1b4] ss:$8 sps:$4 sm:$0xff]   ;;  %v2877_v61 = vld [vmem:[%s4178_s1 + $0x1b0] ss:$8 sps:$4 sm:$0xff]   ;;  %v188_v1 = vcombine.high %v46_v52, %v46_v52 }
  0x13   :  { %894 = vmatpush1.bf16.msra.mxu0 %v2828_v18  ;;  %v2878_v62 = vld [vmem:[%s4178_s1 + $0xa4] ss:$8 sps:$4 sm:$0xff]   ;;  %v2882_v2 = vld [vmem:[%s4178_s1 + $0xa0] ss:$8 sps:$4 sm:$0xff]   ;;  %v2884_v4 = vld [vmem:[%s4178_s1 + $0x94] ss:$8 sps:$4 sm:$0xff]  }
  0x14   :  { %935 = vmatpush1.bf16.msra.mxu1 %v2829_v19  ;;  %895 = vmatprep.subr.bf16.mxu0 %v2830_v20  ;;  %v203_v58 = vcombine.high %v195_v54, %v195_v54  ;;  %v2880_v63 = vld [vmem:[%s4178_s1 + $0x1a4] ss:$8 sps:$4 sm:$0xff]   ;;  %v2883_v3 = vld [vmem:[%s4178_s1 + $0x1a0] ss:$8 sps:$4 sm:$0xff]   ;;  %v2886_v5 = vld [vmem:[%s4178_s1 + $0x194] ss:$8 sps:$4 sm:$0xff]   ;;  %v3303_v6 = vrot.slane %v188_v1, %v3253_v49  ;;  %v211_v13 = vrot.slane %v195_v54, %v3253_v49 }
  0x15   :  { %936 = vmatprep.subr.bf16.mxu1 %v2832_v21  ;;  %v2888_v7 = vld [vmem:[%s4178_s1 + $0x90] ss:$8 sps:$4 sm:$0xff]   ;;  %v2890_v9 = vld [vmem:[%s4178_s1 + $0x84] ss:$8 sps:$4 sm:$0xff]   ;;  %v2894_v12 = vld [vmem:[%s4178_s1 + $0x80] ss:$8 sps:$4 sm:$0xff]  }
  0x16   :  { %v225_v60 = vrot.slane %v203_v58, %v3253_v49  ;;  %v2889_v8 = vld [vmem:[%s4178_s1 + $0x190] ss:$8 sps:$4 sm:$0xff]   ;;  %v2892_v10 = vld [vmem:[%s4178_s1 + $0x184] ss:$8 sps:$4 sm:$0xff]   ;;  %v204_v11 = vcombine.high %v3303_v6, %v3303_v6  ;;  %v2895_v14 = vld [vmem:[%s4178_s1 + $0x180] ss:$8 sps:$4 sm:$0xff]   ;;  %v233_v18 = vcombine.high %v211_v13, %v211_v13 }
  0x17   :  { %896 = vmatpush1.bf16.msra.mxu0 %v2834_v22  ;;  %v2899_v15 = vld [vmem:[%s4178_s1 + $0x274] ss:$8 sps:$4 sm:$0xff]   ;;  %v2897_v19 = vld [vmem:[%s4178_s1 + $0x270] ss:$8 sps:$4 sm:$0xff]   ;;  %v2905_v21 = vld [vmem:[%s4178_s1 + $0x264] ss:$8 sps:$4 sm:$0xff]  }
  0x18   :  { %937 = vmatpush1.bf16.msra.mxu1 %v2835_v23  ;;  %897 = vmatprep.subr.bf16.mxu0 %v2836_v24  ;;  %v235_v0 = vcombine.high %v225_v60, %v225_v60  ;;  %v2902_v16 = vld [vmem:[%s4178_s1 + $0x374] ss:$8 sps:$4 sm:$0xff]   ;;  %v232_v17 = vrot.slane %v204_v11, %v3253_v49  ;;  %v2900_v20 = vld [vmem:[%s4178_s1 + $0x370] ss:$8 sps:$4 sm:$0xff]   ;;  %v2908_v22 = vld [vmem:[%s4178_s1 + $0x364] ss:$8 sps:$4 sm:$0xff]  }
  0x19   :  { %938 = vmatprep.subr.bf16.mxu1 %v2838_v25  ;;  %917 = vmatprep.mubr.bf16.mxu0 %v225_v60  ;;  %v2903_v24 = vld [vmem:[%s4178_s1 + $0x260] ss:$8 sps:$4 sm:$0xff]   ;;  %v2921_v36 = vld [vmem:[%s4178_s1 + $0x230] ss:$8 sps:$4 sm:$0xff]   ;;  %v2929_v38 = vld [vmem:[%s4178_s1 + $0x224] ss:$8 sps:$4 sm:$0xff]  }
  0x1a   :  { %958 = vmatprep.mubr.bf16.mxu1 %v235_v0  ;;  %v236_v23 = vcombine.high %v232_v17, %v232_v17  ;;  %v2906_v25 = vld [vmem:[%s4178_s1 + $0x360] ss:$8 sps:$4 sm:$0xff]   ;;  %v2924_v37 = vld [vmem:[%s4178_s1 + $0x330] ss:$8 sps:$4 sm:$0xff]   ;;  %v2935_v43 = vld [vmem:[%s4178_s1 + $0x214] ss:$8 sps:$4 sm:$0xff]  }
  0x1b   :  { %898 = vmatpush1.bf16.msra.mxu0 %v2840_v26  ;;  %v2911_v26 = vld [vmem:[%s4178_s1 + $0x254] ss:$8 sps:$4 sm:$0xff]  }
  0x1c   :  { %939 = vmatpush1.bf16.msra.mxu1 %v2841_v27  ;;  %899 = vmatprep.subr.bf16.mxu0 %v2842_v28  ;;  %v2914_v27 = vld [vmem:[%s4178_s1 + $0x354] ss:$8 sps:$4 sm:$0xff]   ;;  %v2909_v28 = vld [vmem:[%s4178_s1 + $0x250] ss:$8 sps:$4 sm:$0xff]  }
  0x1d   :  { %940 = vmatprep.subr.bf16.mxu1 %v2844_v29  ;;  %v2912_v29 = vld [vmem:[%s4178_s1 + $0x350] ss:$8 sps:$4 sm:$0xff]  }
  0x1f   :  { %900 = vmatpush1.bf16.msra.mxu0 %v2846_v30  ;;  %v2917_v30 = vld [vmem:[%s4178_s1 + $0x244] ss:$8 sps:$4 sm:$0xff]  }
  0x20   :  { %941 = vmatpush1.bf16.msra.mxu1 %v2847_v31  ;;  %901 = vmatprep.subr.bf16.mxu0 %v2848_v32  ;;  %v2920_v31 = vld [vmem:[%s4178_s1 + $0x344] ss:$8 sps:$4 sm:$0xff]   ;;  %v2915_v32 = vld [vmem:[%s4178_s1 + $0x240] ss:$8 sps:$4 sm:$0xff]  }
  0x21   :  { %942 = vmatprep.subr.bf16.mxu1 %v2850_v33  ;;  %v2918_v33 = vld [vmem:[%s4178_s1 + $0x340] ss:$8 sps:$4 sm:$0xff]  }
  0x23   :  { %902 = vmatpush2.bf16.msra.mxu0 %v2852_v34  ;;  %v2923_v34 = vld [vmem:[%s4178_s1 + $0x234] ss:$8 sps:$4 sm:$0xff]  }
  0x24   :  { %943 = vmatpush2.bf16.msra.mxu1 %v2853_v35  ;;  %903 = vmatprep.subr.bf16.mxu0 %v2854_v39  ;;  %v2926_v35 = vld [vmem:[%s4178_s1 + $0x334] ss:$8 sps:$4 sm:$0xff]   ;;  %v2932_v39 = vld [vmem:[%s4178_s1 + $0x324] ss:$8 sps:$4 sm:$0xff]  }
  0x25   :  { %944 = vmatprep.subr.bf16.mxu1 %v2856_v40  ;;  %v2927_v40 = vld [vmem:[%s4178_s1 + $0x220] ss:$8 sps:$4 sm:$0xff]  }
  0x27   :  { %904 = vmatpush2.bf16.msra.mxu0 %v2858_v41  ;;  %v2930_v41 = vld [vmem:[%s4178_s1 + $0x320] ss:$8 sps:$4 sm:$0xff]  }
  0x28   :  { %945 = vmatpush2.bf16.msra.mxu1 %v2859_v44  ;;  %905 = vmatprep.subr.bf16.mxu0 %v2860_v45  ;;  %v2938_v44 = vld [vmem:[%s4178_s1 + $0x314] ss:$8 sps:$4 sm:$0xff]  }
  0x29   :  { %946 = vmatprep.subr.bf16.mxu1 %v2862_v46 }
  0x2b   :  { %906 = vmatpush2.bf16.msra.mxu0 %v2864_v47 }
  0x2c   :  { %947 = vmatpush2.bf16.msra.mxu1 %v2865_v48  ;;  %907 = vmatprep.subr.bf16.mxu0 %v2866_v50 }
  0x2d   :  { %948 = vmatprep.subr.bf16.mxu1 %v2868_v51 }
  0x2f   :  { %908 = vmatpush2.bf16.msra.mxu0 %v2870_v53 }
  0x30   :  { %949 = vmatpush2.bf16.msra.mxu1 %v2871_v55  ;;  %909 = vmatprep.subr.bf16.mxu0 %v2872_v56 }
  0x31   :  { %950 = vmatprep.subr.bf16.mxu1 %v2874_v57 }
  0x33   :  { %910 = vmatpush2.bf16.msra.mxu0 %v2876_v59 }
  0x34   :  { %951 = vmatpush2.bf16.msra.mxu1 %v2877_v61  ;;  %911 = vmatprep.subr.bf16.mxu0 %v2878_v62 }
  0x35   :  { %952 = vmatprep.subr.bf16.mxu1 %v2880_v63 }
  0x37   :  { %912 = vmatpush2.bf16.msra.mxu0 %v2882_v2 }
  0x38   :  { %953 = vmatpush2.bf16.msra.mxu1 %v2883_v3  ;;  %913 = vmatprep.subr.bf16.mxu0 %v2884_v4 }
  0x39   :  { %954 = vmatprep.subr.bf16.mxu1 %v2886_v5 }
  0x3b   :  { %914 = vmatpush2.bf16.msra.mxu0 %v2888_v7 }
  0x3c   :  { %955 = vmatpush2.bf16.msra.mxu1 %v2889_v8  ;;  %915 = vmatprep.subr.bf16.mxu0 %v2890_v9 }
  0x3d   :  { %956 = vmatprep.subr.bf16.mxu1 %v2892_v10 }
  0x3f   :  { %916 = vmatpush2.bf16.msra.mxu0 %v2894_v12 }
  0x40   :  { %957 = vmatpush2.bf16.msra.mxu1 %v2895_v14  ;;  %967 = vmatprep.subr.bf16.mxu0 %v2899_v15 }
  0x41   :  { %1008 = vmatprep.subr.bf16.mxu1 %v2902_v16 }
  0x42   :  { %918 = vmatmul.mubr.bf16.vlgmr.msra.gmra.mxu0 %v211_v13 }
  0x43   :  { %959 = vmatmul.mubr.bf16.vlgmr.msra.gmra.mxu1 %v233_v18  ;;  %968 = vmatpush1.bf16.msra.mxu0 %v2897_v19 }
  0x44   :  { %1009 = vmatpush1.bf16.msra.mxu1 %v2900_v20  ;;  %969 = vmatprep.subr.bf16.mxu0 %v2905_v21 }
  0x45   :  { %1010 = vmatprep.subr.bf16.mxu1 %v2908_v22  ;;  %999 = vmatprep.mubr.bf16.mxu0 %v232_v17 }
  0x46   :  { %1040 = vmatprep.mubr.bf16.mxu1 %v236_v23 }
  0x47   :  { %970 = vmatpush1.bf16.msra.mxu0 %v2903_v24 }
  0x48   :  { %1011 = vmatpush1.bf16.msra.mxu1 %v2906_v25  ;;  %971 = vmatprep.subr.bf16.mxu0 %v2911_v26 }
  0x49   :  { %1012 = vmatprep.subr.bf16.mxu1 %v2914_v27 }
  0x4b   :  { %972 = vmatpush1.bf16.msra.mxu0 %v2909_v28 }
  0x4c   :  { %1013 = vmatpush1.bf16.msra.mxu1 %v2912_v29  ;;  %973 = vmatprep.subr.bf16.mxu0 %v2917_v30 }
  0x4d   :  { %1014 = vmatprep.subr.bf16.mxu1 %v2920_v31 }
  0x4f   :  { %974 = vmatpush1.bf16.msra.mxu0 %v2915_v32 }
  0x50   :  { %1015 = vmatpush1.bf16.msra.mxu1 %v2918_v33  ;;  %975 = vmatprep.subr.bf16.mxu0 %v2923_v34 }
  0x51   :  { %1016 = vmatprep.subr.bf16.mxu1 %v2926_v35 }
  0x53   :  { %976 = vmatpush1.bf16.msra.mxu0 %v2921_v36 }
  0x54   :  { %1017 = vmatpush1.bf16.msra.mxu1 %v2924_v37  ;;  %977 = vmatprep.subr.bf16.mxu0 %v2929_v38 }
  0x55   :  { %1018 = vmatprep.subr.bf16.mxu1 %v2932_v39 }
  0x56   :  { %21 = vsyncpa [#allocation5], 0  ;;  %v2933_v45 = vld [vmem:[%s4178_s1 + $0x210] ss:$8 sps:$4 sm:$0xff]   ;;  %v2941_v47 = vld [vmem:[%s4178_s1 + $0x204] ss:$8 sps:$4 sm:$0xff]   ;;  %v218_v19 = vrot.slane %v3303_v6, %v3253_v49 }
  0x57   :  { %978 = vmatpush1.bf16.msra.mxu0 %v2927_v40  ;;  %v2936_v46 = vld [vmem:[%s4178_s1 + $0x310] ss:$8 sps:$4 sm:$0xff]   ;;  %v2944_v48 = vld [vmem:[%s4178_s1 + $0x304] ss:$8 sps:$4 sm:$0xff]   ;;  %v2939_v50 = vld [vmem:[%s4178_s1 + $0x200] ss:$8 sps:$4 sm:$0xff]  }
  0x58   :  { %1019 = vmatpush1.bf16.msra.mxu1 %v2930_v41  ;;  %979 = vmatprep.subr.bf16.mxu0 %v2935_v43  ;;  %v2942_v51 = vld [vmem:[%s4178_s1 + $0x300] ss:$8 sps:$4 sm:$0xff]   ;;  %v2947_v52 = vld [vmem:[%s4178_s1 + $0x2f4] ss:$8 sps:$4 sm:$0xff]   ;;  %v2945_v54 = vld [vmem:[%s4178_s1 + $0x2f0] ss:$8 sps:$4 sm:$0xff]   ;;  %v234_v22 = vcombine.high %v218_v19, %v218_v19 }
  0x59   :  { %1020 = vmatprep.subr.bf16.mxu1 %v2938_v44  ;;  %v2950_v53 = vld [vmem:[%s4178_s1 + $0x3f4] ss:$8 sps:$4 sm:$0xff]   ;;  %v2948_v55 = vld [vmem:[%s4178_s1 + $0x3f0] ss:$8 sps:$4 sm:$0xff]   ;;  %v2953_v56 = vld [vmem:[%s4178_s1 + $0x2e4] ss:$8 sps:$4 sm:$0xff]  }
  0x5a   :  { %v2956_v57 = vld [vmem:[%s4178_s1 + $0x3e4] ss:$8 sps:$4 sm:$0xff]   ;;  %v2951_v58 = vld [vmem:[%s4178_s1 + $0x2e0] ss:$8 sps:$4 sm:$0xff]   ;;  %v2959_v60 = vld [vmem:[%s4178_s1 + $0x2d4] ss:$8 sps:$4 sm:$0xff]  }
  0x5b   :  { %980 = vmatpush1.bf16.msra.mxu0 %v2933_v45  ;;  %v2954_v59 = vld [vmem:[%s4178_s1 + $0x3e0] ss:$8 sps:$4 sm:$0xff]   ;;  %v2962_v61 = vld [vmem:[%s4178_s1 + $0x3d4] ss:$8 sps:$4 sm:$0xff]   ;;  %v2957_v62 = vld [vmem:[%s4178_s1 + $0x2d0] ss:$8 sps:$4 sm:$0xff]  }
  0x5c   :  { %1021 = vmatpush1.bf16.msra.mxu1 %v2936_v46  ;;  %981 = vmatprep.subr.bf16.mxu0 %v2941_v47  ;;  %v2960_v63 = vld [vmem:[%s4178_s1 + $0x3d0] ss:$8 sps:$4 sm:$0xff]   ;;  %v2965_v0 = vld [vmem:[%s4178_s1 + $0x2c4] ss:$8 sps:$4 sm:$0xff]   ;;  %v2963_v2 = vld [vmem:[%s4178_s1 + $0x2c0] ss:$8 sps:$4 sm:$0xff]  }
  0x5d   :  { %1022 = vmatprep.subr.bf16.mxu1 %v2944_v48  ;;  %v2968_v1 = vld [vmem:[%s4178_s1 + $0x3c4] ss:$8 sps:$4 sm:$0xff]   ;;  %v2966_v3 = vld [vmem:[%s4178_s1 + $0x3c0] ss:$8 sps:$4 sm:$0xff]   ;;  %v2971_v4 = vld [vmem:[%s4178_s1 + $0x2b4] ss:$8 sps:$4 sm:$0xff]  }
  0x5e   :  { %v2974_v5 = vld [vmem:[%s4178_s1 + $0x3b4] ss:$8 sps:$4 sm:$0xff]   ;;  %v2969_v7 = vld [vmem:[%s4178_s1 + $0x2b0] ss:$8 sps:$4 sm:$0xff]   ;;  %v2977_v9 = vld [vmem:[%s4178_s1 + $0x2a4] ss:$8 sps:$4 sm:$0xff]  }
  0x5f   :  { %982 = vmatpush1.bf16.msra.mxu0 %v2939_v50  ;;  %v2972_v8 = vld [vmem:[%s4178_s1 + $0x3b0] ss:$8 sps:$4 sm:$0xff]   ;;  %v2980_v10 = vld [vmem:[%s4178_s1 + $0x3a4] ss:$8 sps:$4 sm:$0xff]   ;;  %v2975_v11 = vld [vmem:[%s4178_s1 + $0x2a0] ss:$8 sps:$4 sm:$0xff]  }
  0x60   :  { %1023 = vmatpush1.bf16.msra.mxu1 %v2942_v51  ;;  %983 = vmatprep.subr.bf16.mxu0 %v2947_v52  ;;  %v2978_v12 = vld [vmem:[%s4178_s1 + $0x3a0] ss:$8 sps:$4 sm:$0xff]   ;;  %v2983_v13 = vld [vmem:[%s4178_s1 + $0x294] ss:$8 sps:$4 sm:$0xff]   ;;  %v2981_v15 = vld [vmem:[%s4178_s1 + $0x290] ss:$8 sps:$4 sm:$0xff]  }
  0x61   :  { %1024 = vmatprep.subr.bf16.mxu1 %v2950_v53  ;;  %v2986_v14 = vld [vmem:[%s4178_s1 + $0x394] ss:$8 sps:$4 sm:$0xff]   ;;  %v2984_v16 = vld [vmem:[%s4178_s1 + $0x390] ss:$8 sps:$4 sm:$0xff]   ;;  %v2989_v17 = vld [vmem:[%s4178_s1 + $0x284] ss:$8 sps:$4 sm:$0xff]  }
  0x62   :  { %v2992_v18 = vld [vmem:[%s4178_s1 + $0x384] ss:$8 sps:$4 sm:$0xff]   ;;  %v2987_v20 = vld [vmem:[%s4178_s1 + $0x280] ss:$8 sps:$4 sm:$0xff]   ;;  %v1082_v6 = vld [vmem:[%s4180_s3 + $0xf8] sm:$0xff]  ;;  %vm1295_vm0 = vcmask 1041408  }
  0x63   :  { %984 = vmatpush2.bf16.msra.mxu0 %v2945_v54  ;;  %v2990_v21 = vld [vmem:[%s4178_s1 + $0x380] ss:$8 sps:$4 sm:$0xff]   ;;  %v1191_v23 = vld [vmem:[%s4182_s5 + $0xf8] sm:$0xff]  ;;  %v1081_v26 = vld [vmem:[%s4180_s3 + $0xf0] sm:$0xff]  ;;  %vm2351_vm1 = vcmask 74752   ;;  %vm1291_vm2 = vcmask 80896  }
  0x64   :  { %1025 = vmatpush2.bf16.msra.mxu1 %v2948_v55  ;;  %985 = vmatprep.subr.bf16.mxu0 %v2953_v56  ;;  %v1066_v24 = vld [vmem:[%s4180_s3 + $0x78] sm:$0xff]  ;;  %v1190_v27 = vld [vmem:[%s4182_s5 + $0xf0] sm:$0xff]  ;;  %v1080_v30 = vld [vmem:[%s4180_s3 + $0xe8] sm:$0xff]  ;;  %s3042_s24 = smov [#allocation4]  }
  0x65   :  { %1026 = vmatprep.subr.bf16.mxu1 %v2956_v57  ;;  %v1175_v25 = vld [vmem:[%s4182_s5 + $0x78] sm:$0xff]  ;;  %v1065_v28 = vld [vmem:[%s4180_s3 + $0x70] sm:$0xff]  ;;  %v1189_v31 = vld [vmem:[%s4182_s5 + $0xe8] sm:$0xff]  ;;  %s2445_s25 = sshll.u32 %s3042_s24, 4  ;;  %s2446_s25 = int_to_ptr.vmem [resolvable:$true] %s2445_s25 }
  0x66   :  { %v1174_v29 = vld [vmem:[%s4182_s5 + $0x70] sm:$0xff]  ;;  %v1064_v32 = vld [vmem:[%s4180_s3 + $0x68] sm:$0xff]  ;;  %v1079_v34 = vld [vmem:[%s4180_s3 + $0xe0] sm:$0xff] }
  0x67   :  { %986 = vmatpush2.bf16.msra.mxu0 %v2951_v58  ;;  %v1173_v33 = vld [vmem:[%s4182_s5 + $0x68] sm:$0xff]  ;;  %v1188_v35 = vld [vmem:[%s4182_s5 + $0xe0] sm:$0xff]  ;;  %v1078_v38 = vld [vmem:[%s4180_s3 + $0xd8] sm:$0xff] }
  0x68   :  { %1027 = vmatpush2.bf16.msra.mxu1 %v2954_v59  ;;  %987 = vmatprep.subr.bf16.mxu0 %v2959_v60  ;;  %v1063_v36 = vld [vmem:[%s4180_s3 + $0x60] sm:$0xff]  ;;  %v1187_v39 = vld [vmem:[%s4182_s5 + $0xd8] sm:$0xff]  ;;  %v1077_v43 = vld [vmem:[%s4180_s3 + $0xd0] sm:$0xff] }
  0x69   :  { %1028 = vmatprep.subr.bf16.mxu1 %v2962_v61  ;;  %v1172_v37 = vld [vmem:[%s4182_s5 + $0x60] sm:$0xff]  ;;  %v1062_v40 = vld [vmem:[%s4180_s3 + $0x58] sm:$0xff]  ;;  %v1186_v44 = vld [vmem:[%s4182_s5 + $0xd0] sm:$0xff] }
  0x6a   :  { %v1171_v41 = vld [vmem:[%s4182_s5 + $0x58] sm:$0xff]  ;;  %v1061_v45 = vld [vmem:[%s4180_s3 + $0x50] sm:$0xff]  ;;  %v1076_v47 = vld [vmem:[%s4180_s3 + $0xc8] sm:$0xff] }
  0x6b   :  { %988 = vmatpush2.bf16.msra.mxu0 %v2957_v62  ;;  %v1170_v46 = vld [vmem:[%s4182_s5 + $0x50] sm:$0xff]  ;;  %v1185_v48 = vld [vmem:[%s4182_s5 + $0xc8] sm:$0xff]  ;;  %v1075_v52 = vld [vmem:[%s4180_s3 + $0xc0] sm:$0xff] }
  0x6c   :  { %1029 = vmatpush2.bf16.msra.mxu1 %v2960_v63  ;;  %989 = vmatprep.subr.bf16.mxu0 %v2965_v0  ;;  %v1060_v50 = vld [vmem:[%s4180_s3 + $0x48] sm:$0xff]  ;;  %v1184_v53 = vld [vmem:[%s4182_s5 + $0xc0] sm:$0xff]  ;;  %v1074_v56 = vld [vmem:[%s4180_s3 + $0xb8] sm:$0xff] }
  0x6d   :  { %1030 = vmatprep.subr.bf16.mxu1 %v2968_v1  ;;  %v1169_v51 = vld [vmem:[%s4182_s5 + $0x48] sm:$0xff]  ;;  %v1059_v54 = vld [vmem:[%s4180_s3 + $0x40] sm:$0xff]  ;;  %v1183_v57 = vld [vmem:[%s4182_s5 + $0xb8] sm:$0xff] }
  0x6e   :  { %v1168_v55 = vld [vmem:[%s4182_s5 + $0x40] sm:$0xff]  ;;  %v1058_v58 = vld [vmem:[%s4180_s3 + $0x38] sm:$0xff]  ;;  %v1073_v60 = vld [vmem:[%s4180_s3 + $0xb0] sm:$0xff] }
  0x6f   :  { %990 = vmatpush2.bf16.msra.mxu0 %v2963_v2  ;;  %v1167_v59 = vld [vmem:[%s4182_s5 + $0x38] sm:$0xff]  ;;  %v1182_v61 = vld [vmem:[%s4182_s5 + $0xb0] sm:$0xff]  ;;  %v1072_v0 = vld [vmem:[%s4180_s3 + $0xa8] sm:$0xff] }
  0x70   :  { %1031 = vmatpush2.bf16.msra.mxu1 %v2966_v3  ;;  %991 = vmatprep.subr.bf16.mxu0 %v2971_v4  ;;  %v1057_v62 = vld [vmem:[%s4180_s3 + $0x30] sm:$0xff]  ;;  %v1181_v1 = vld [vmem:[%s4182_s5 + $0xa8] sm:$0xff]  ;;  %v1071_v4 = vld [vmem:[%s4180_s3 + $0xa0] sm:$0xff] }
  0x71   :  { %1032 = vmatprep.subr.bf16.mxu1 %v2974_v5  ;;  %v1166_v63 = vld [vmem:[%s4182_s5 + $0x30] sm:$0xff]  ;;  %v1056_v2 = vld [vmem:[%s4180_s3 + $0x28] sm:$0xff]  ;;  %v1180_v5 = vld [vmem:[%s4182_s5 + $0xa0] sm:$0xff] }
  0x72   :  { %v1165_v3 = vld [vmem:[%s4182_s5 + $0x28] sm:$0xff] }
  0x73   :  { %992 = vmatpush2.bf16.msra.mxu0 %v2969_v7  ;;  %v1055_v7 = vld [vmem:[%s4180_s3 + $0x20] sm:$0xff] }
  0x74   :  { %1033 = vmatpush2.bf16.msra.mxu1 %v2972_v8  ;;  %993 = vmatprep.subr.bf16.mxu0 %v2977_v9  ;;  %v1164_v8 = vld [vmem:[%s4182_s5 + $0x20] sm:$0xff]  ;;  %v1070_v9 = vld [vmem:[%s4180_s3 + $0x98] sm:$0xff] }
  0x75   :  { %1034 = vmatprep.subr.bf16.mxu1 %v2980_v10  ;;  %v1179_v10 = vld [vmem:[%s4182_s5 + $0x98] sm:$0xff] }
  0x77   :  { %994 = vmatpush2.bf16.msra.mxu0 %v2975_v11  ;;  %v1054_v11 = vld [vmem:[%s4180_s3 + $0x18] sm:$0xff] }
  0x78   :  { %1035 = vmatpush2.bf16.msra.mxu1 %v2978_v12  ;;  %995 = vmatprep.subr.bf16.mxu0 %v2983_v13  ;;  %v1163_v12 = vld [vmem:[%s4182_s5 + $0x18] sm:$0xff]  ;;  %v1069_v13 = vld [vmem:[%s4180_s3 + $0x90] sm:$0xff] }
  0x79   :  { %1036 = vmatprep.subr.bf16.mxu1 %v2986_v14  ;;  %v1178_v14 = vld [vmem:[%s4182_s5 + $0x90] sm:$0xff] }
  0x7b   :  { %996 = vmatpush2.bf16.msra.mxu0 %v2981_v15  ;;  %v1053_v15 = vld [vmem:[%s4180_s3 + $0x10] sm:$0xff] }
  0x7c   :  { %1037 = vmatpush2.bf16.msra.mxu1 %v2984_v16  ;;  %997 = vmatprep.subr.bf16.mxu0 %v2989_v17  ;;  %v1162_v16 = vld [vmem:[%s4182_s5 + $0x10] sm:$0xff]  ;;  %v1068_v17 = vld [vmem:[%s4180_s3 + $0x88] sm:$0xff] }
  0x7d   :  { %1038 = vmatprep.subr.bf16.mxu1 %v2992_v18  ;;  %v1177_v18 = vld [vmem:[%s4182_s5 + $0x88] sm:$0xff] }
  0x7f   :  { %998 = vmatpush2.bf16.msra.mxu0 %v2987_v20  ;;  %v1161_v20 = vld [vmem:[%s4182_s5 + $0x8] sm:$0xff] }
  0x80   :  { %1039 = vmatpush2.bf16.msra.mxu1 %v2990_v21  ;;  %2726 = vmatprep.subr.mxu0 %v1082_v6  ;;  %v1067_v21 = vld [vmem:[%s4180_s3 + $0x80] sm:$0xff] }
  0x81   :  { %2761 = vmatprep.subr.mxu1 %v1191_v23  ;;  %v1051_v6 = vld [vmem:[%s4180_s3] sm:$0xff] }
  0x82   :  { %1000 = vmatmul.mubr.bf16.vlgmr.msra.gmra.mxu0 %v218_v19  ;;  %v1052_v19 = vld [vmem:[%s4180_s3 + $0x8] sm:$0xff]  ;;  %v1160_v23 = vld [vmem:[%s4182_s5] sm:$0xff] }
  0x83   :  { %1041 = vmatmul.mubr.bf16.vlgmr.msra.gmra.mxu1 %v234_v22  ;;  %2727 = vmatpush3.msra.mxu0 %v1066_v24  ;;  %v1176_v22 = vld [vmem:[%s4182_s5 + $0x80] sm:$0xff] }
  0x84   :  { %2762 = vmatpush3.msra.mxu1 %v1175_v25  ;;  %2728 = vmatprep.subr.mxu0 %v1081_v26 }
  0x85   :  { %2763 = vmatprep.subr.mxu1 %v1190_v27  ;;  %2729 = vmatpush3.msra.mxu0 %v1065_v28 }
  0x86   :  { %2764 = vmatpush3.msra.mxu1 %v1174_v29  ;;  %2730 = vmatprep.subr.mxu0 %v1080_v30 }
  0x87   :  { %2765 = vmatprep.subr.mxu1 %v1189_v31  ;;  %2731 = vmatpush3.msra.mxu0 %v1064_v32  ;;  %v3714_v32 = vsub.s32 0, %v3235_v42 }
  0x88   :  { %2766 = vmatpush3.msra.mxu1 %v1173_v33  ;;  %2732 = vmatprep.subr.mxu0 %v1079_v34  ;;  %v175_v33 = vld [vmem:[%s4179_s2] sm:$0x3]  ;;  %v3720_v34 = vsub.s32 1, %v3235_v42 }
  0x89   :  { %2767 = vmatprep.subr.mxu1 %v1188_v35  ;;  %2733 = vmatpush3.msra.mxu0 %v1063_v36  ;;  %v180_v35 = vrot.slane %v175_v33, %v3714_v32 }
  0x8a   :  { %2768 = vmatpush3.msra.mxu1 %v1172_v37  ;;  %2734 = vmatprep.subr.mxu0 %v1078_v38  ;;  %v184_v36 = vrot.slane %v175_v33, %v3720_v34 }
  0x8b   :  { %2769 = vmatprep.subr.mxu1 %v1187_v39  ;;  %2735 = vmatpush3.msra.mxu0 %v1062_v40 }
  0x8c   :  { %2770 = vmatpush3.msra.mxu1 %v1171_v41  ;;  %2736 = vmatprep.subr.mxu0 %v1077_v43 }
  0x8d   :  { %2771 = vmatprep.subr.mxu1 %v1186_v44  ;;  %2737 = vmatpush3.msra.mxu0 %v1061_v45 }
  0x8e   :  { %2772 = vmatpush3.msra.mxu1 %v1170_v46  ;;  %2738 = vmatprep.subr.mxu0 %v1076_v47 }
  0x8f   :  { %2773 = vmatprep.subr.mxu1 %v1185_v48  ;;  %2739 = vmatpush3.msra.mxu0 %v1060_v50 }
  0x90   :  { %2774 = vmatpush3.msra.mxu1 %v1169_v51  ;;  %2740 = vmatprep.subr.mxu0 %v1075_v52 }
  0x91   :  { %2775 = vmatprep.subr.mxu1 %v1184_v53  ;;  %2741 = vmatpush3.msra.mxu0 %v1059_v54 }
  0x92   :  { %2776 = vmatpush3.msra.mxu1 %v1168_v55  ;;  %2742 = vmatprep.subr.mxu0 %v1074_v56 }
  0x93   :  { %2777 = vmatprep.subr.mxu1 %v1183_v57  ;;  %2743 = vmatpush3.msra.mxu0 %v1058_v58  ;;  %v1278_v57 = vld [vmem:[%s4185_s8 + $0x18] sm:$0x3]  ;;  %v1277_v58 = vld [vmem:[%s4185_s8 + $0x10] sm:$0x3] }
  0x94   :  { %2778 = vmatpush3.msra.mxu1 %v1167_v59  ;;  %2744 = vmatprep.subr.mxu0 %v1073_v60  ;;  %v1276_v59 = vld [vmem:[%s4185_s8 + $0x8] sm:$0xff]  ;;  %v1275_v60 = vld [vmem:[%s4185_s8] sm:$0xff] }
  0x95   :  { %2779 = vmatprep.subr.mxu1 %v1182_v61  ;;  %2745 = vmatpush3.msra.mxu0 %v1057_v62  ;;  %v3040_v61 = vmov 0.0   ;;  %v1433_v62 = vld [vmem:[%s4187_s10 + $0x1c0] sm:$0xff] }
  0x96   :  { %2780 = vmatpush3.msra.mxu1 %v1166_v63  ;;  %2746 = vmatprep.subr.mxu0 %v1072_v0  ;;  %v1437_v63 = vld [vmem:[%s4187_s10 + $0x1e0] sm:$0xff]  ;;  %v3745_v0 = vld [vmem:[%s4187_s10 + $0x1c8] sm:$0xff] }
  0x97   :  { %2781 = vmatprep.subr.mxu1 %v1181_v1  ;;  %2747 = vmatpush3.msra.mxu0 %v1056_v2  ;;  %v2650_v1 = vcombine.low %v1433_v62, %v1437_v63  ;;  %v2651_v2 = vcombine.high %v1433_v62, %v1437_v63 }
  0x98   :  { %2782 = vmatpush3.msra.mxu1 %v1165_v3  ;;  %2748 = vmatprep.subr.mxu0 %v1071_v4  ;;  %v3750_v3 = vld [vmem:[%s4187_s10 + $0x1e8] sm:$0xff]  ;;  %v1425_v4 = vld [vmem:[%s4187_s10 + $0x180] sm:$0xff] }
  0x99   :  { %2783 = vmatprep.subr.mxu1 %v1180_v5  ;;  %2749 = vmatpush3.msra.mxu0 %v1055_v7  ;;  %v1429_v5 = vld [vmem:[%s4187_s10 + $0x1a0] sm:$0xff]  ;;  %v2652_v7 = vcombine.low %v3745_v0, %v3750_v3 }
  0x9a   :  { %2784 = vmatpush3.msra.mxu1 %v1164_v8  ;;  %2750 = vmatprep.subr.mxu0 %v1070_v9  ;;  %v2653_v8 = vcombine.high %v3745_v0, %v3750_v3  ;;  %v2643_v9 = vcombine.high %v1425_v4, %v1429_v5  ;;  %v1402_v0 = vld [vmem:[%s4187_s10 + $0xc8] sm:$0xff] }
  0x9b   :  { %2785 = vmatprep.subr.mxu1 %v1179_v10  ;;  %2751 = vmatpush3.msra.mxu0 %v1054_v11  ;;  %v2642_v10 = vcombine.low %v1425_v4, %v1429_v5  ;;  %v1417_v11 = vld [vmem:[%s4187_s10 + $0x140] sm:$0xff]  ;;  %v1406_v3 = vld [vmem:[%s4187_s10 + $0xe8] sm:$0xff] }
  0x9c   :  { %2786 = vmatpush3.msra.mxu1 %v1163_v12  ;;  %2752 = vmatprep.subr.mxu0 %v1069_v13  ;;  %v1421_v12 = vld [vmem:[%s4187_s10 + $0x160] sm:$0xff] }
  0x9d   :  { %2787 = vmatprep.subr.mxu1 %v1178_v14  ;;  %2753 = vmatpush3.msra.mxu0 %v1053_v15  ;;  %v2635_v13 = vcombine.high %v1417_v11, %v1421_v12  ;;  %v2634_v14 = vcombine.low %v1417_v11, %v1421_v12  ;;  %v1409_v15 = vld [vmem:[%s4187_s10 + $0x100] sm:$0xff] }
  0x9e   :  { %2788 = vmatpush3.msra.mxu1 %v1162_v16  ;;  %2754 = vmatprep.subr.mxu0 %v1068_v17  ;;  %v1413_v16 = vld [vmem:[%s4187_s10 + $0x120] sm:$0xff] }
  0x9f   :  { %2789 = vmatprep.subr.mxu1 %v1177_v18  ;;  %2755 = vmatpush3.msra.mxu0 %v1052_v19  ;;  %v2627_v17 = vcombine.high %v1409_v15, %v1413_v16  ;;  %v2626_v18 = vcombine.low %v1409_v15, %v1413_v16  ;;  %v1401_v19 = vld [vmem:[%s4187_s10 + $0xc0] sm:$0xff]  ;;  %v1426_v16 = vld [vmem:[%s4187_s10 + $0x188] sm:$0xff] }
  0xa0   :  { %2790 = vmatpush3.msra.mxu1 %v1161_v20  ;;  %2756 = vmatprep.subr.mxu0 %v1067_v21  ;;  %v1405_v20 = vld [vmem:[%s4187_s10 + $0xe0] sm:$0xff] }
  0xa1   :  { %2791 = vmatprep.subr.mxu1 %v1176_v22  ;;  %2757 = vmatpush3.msra.mxu0 %v1051_v6  ;;  %v2619_v21 = vcombine.high %v1401_v19, %v1405_v20  ;;  %v2618_v22 = vcombine.low %v1401_v19, %v1405_v20  ;;  %v1393_v6 = vld [vmem:[%s4187_s10 + $0x80] sm:$0xff] }
  0xa2   :  { %2792 = vmatpush3.msra.mxu1 %v1160_v23  ;;  %2591 = vmatprep.subr.msk.mxu0 %vm1295_vm0, %v1278_v57  ;;  %v1397_v23 = vld [vmem:[%s4187_s10 + $0xa0] sm:$0xff] }
  0xa3   :  { %2187 = vmatprep.subr.bf16.mxu1 %v2651_v2  ;;  %v2590_v4 = vld [vmem:[%s4183_s6] ss:$0 sm:$0xff] }
 0x102   :  { %v919_v24 = vpop.f32.mrf.mxu0 }
 0x103   :  { %v960_v25 = vpop.f32.mrf.mxu1  ;;  %v920_v37 = vadd.f32 %v919_v24, %v180_v35  ;;  %v2611_v24 = vcombine.high %v1393_v6, %v1397_v23 }
 0x104   :  { %v921_v26 = vpop.f32.mrf.mxu0 }
 0x105   :  { %v962_v27 = vpop.f32.mrf.mxu1  ;;  %v922_v38 = vadd.f32 %v921_v26, %v184_v36  ;;  %v961_v39 = vadd.f32 %v960_v25, %v920_v37  ;;  %v2610_v25 = vcombine.low %v1393_v6, %v1397_v23  ;;  %v1385_v26 = vld [vmem:[%s4187_s10 + $0x40] sm:$0xff] }
 0x106   :  { %v923_v28 = vpop.f32.mrf.mxu0  ;;  %v1497_v36 = vld [vmem:[%s4187_s10 + $0x3c0] sm:$0xff] }
 0x107   :  { %v964_v29 = vpop.f32.mrf.mxu1  ;;  %v963_v43 = vadd.f32 %v962_v27, %v922_v38  ;;  %v1389_v27 = vld [vmem:[%s4187_s10 + $0x60] sm:$0xff] }
 0x108   :  { %v924_v30 = vpop.f32.mrf.mxu0  ;;  %v2603_v28 = vcombine.high %v1385_v26, %v1389_v27  ;;  %v2602_v29 = vcombine.low %v1385_v26, %v1389_v27  ;;  %v1501_v37 = vld [vmem:[%s4187_s10 + $0x3e0] sm:$0xff] }
 0x109   :  { %v965_v31 = vpop.f32.mrf.mxu1  ;;  %v1377_v30 = vld [vmem:[%s4187_s10] sm:$0xff]  ;;  %v2715_v38 = vcombine.high %v1497_v36, %v1501_v37 }
 0x10a   :  { %v1381_v31 = vld [vmem:[%s4187_s10 + $0x20] sm:$0xff] }
 0x10b   :  { %v2595_v33 = vcombine.high %v1377_v30, %v1381_v31  ;;  %v2594_v35 = vcombine.low %v1377_v30, %v1381_v31  ;;  %v1398_v30 = vld [vmem:[%s4187_s10 + $0xa8] sm:$0xff]  ;;  %v2620_v31 = vcombine.low %v1402_v0, %v1406_v3 }
 0x142   :  { %v1001_v40 = vpop.f32.mrf.mxu0 }
 0x143   :  { %v1042_v41 = vpop.f32.mrf.mxu1  ;;  %v1002_v44 = vadd.f32 %v1001_v40, %v961_v39  ;;  %v2714_v39 = vcombine.low %v1497_v36, %v1501_v37  ;;  %v1489_v40 = vld [vmem:[%s4187_s10 + $0x380] sm:$0xff]  ;;  %v1390_v36 = vld [vmem:[%s4187_s10 + $0x68] sm:$0xff] }
 0x144   :  { %v1003_v45 = vpop.f32.mrf.mxu0 }
 0x145   :  { %v1044_v46 = vpop.f32.mrf.mxu1  ;;  %v1004_v47 = vadd.f32 %v1003_v45, %v963_v43  ;;  %v1043_v48 = vadd.f32 %v1042_v41, %v1002_v44  ;;  %v1493_v41 = vld [vmem:[%s4187_s10 + $0x3a0] sm:$0xff] }
 0x146   :  { %v1005_v50 = vpop.f32.mrf.mxu0  ;;  %v2707_v43 = vcombine.high %v1489_v40, %v1493_v41  ;;  %v2706_v44 = vcombine.low %v1489_v40, %v1493_v41  ;;  %v1481_v45 = vld [vmem:[%s4187_s10 + $0x340] sm:$0xff]  ;;  %v1382_v40 = vld [vmem:[%s4187_s10 + $0x28] sm:$0xff] }
 0x147   :  { %v1046_v51 = vpop.f32.mrf.mxu1  ;;  %v1045_v52 = vadd.f32 %v1044_v46, %v1004_v47  ;;  %v1049_v56 = vmax.f32 %v1043_v48, 0.0  ;;  %v1485_v46 = vld [vmem:[%s4187_s10 + $0x360] sm:$0xff] }
 0x148   :  { %v1006_v53 = vpop.f32.mrf.mxu0  ;;  %v2699_v47 = vcombine.high %v1481_v45, %v1485_v46  ;;  %v2698_v48 = vcombine.low %v1481_v45, %v1485_v46  ;;  %v1473_v50 = vld [vmem:[%s4187_s10 + $0x300] sm:$0xff]  ;;  %v1502_v45 = vld [vmem:[%s4187_s10 + $0x3e8] sm:$0xff] }
 0x149   :  { %v1047_v54 = vpop.f32.mrf.mxu1  ;;  %v1050_v55 = vmax.f32 %v1045_v52, 0.0  ;;  %v1477_v51 = vld [vmem:[%s4187_s10 + $0x320] sm:$0xff] }
 0x14a   :  { %v2691_v52 = vcombine.high %v1473_v50, %v1477_v51  ;;  %v2690_v53 = vcombine.low %v1473_v50, %v1477_v51  ;;  %v1465_v54 = vld [vmem:[%s4187_s10 + $0x2c0] sm:$0xff]  ;;  %v1494_v50 = vld [vmem:[%s4187_s10 + $0x3a8] sm:$0xff] }
 0x14b   :  { %1154 = vmatprep.mubr.f32.mxu0 %v1050_v55  ;;  %1263 = vmatprep.mubr.f32.mxu1 %v1050_v55  ;;  %v1469_v55 = vld [vmem:[%s4187_s10 + $0x2e0] sm:$0xff] }
 0x14c   :  { %1155 = vmatmul.mubr.f32.vlgmr.msra.gmra.mxu0 %v1049_v56  ;;  %1264 = vmatmul.mubr.f32.vlgmr.msra.gmra.mxu1 %v1049_v56  ;;  %v2683_v56 = vcombine.high %v1465_v54, %v1469_v55  ;;  %v2682_v57 = vcombine.low %v1465_v54, %v1469_v55  ;;  %v1486_v54 = vld [vmem:[%s4187_s10 + $0x368] sm:$0xff] }
 0x14d   :  { %2592 = vmatpush1.msk.msra.mxu0 %vm1295_vm0, %v1277_v58  ;;  %1366 = vmatprep.mubr.f32.mxu0 %v3040_v61  ;;  %v1457_v58 = vld [vmem:[%s4187_s10 + $0x280] sm:$0xff] }
 0x14e   :  { %1332 = vmatprep.subr.mxu0 %v1276_v59  ;;  %2188 = vmatpush1.bf16.msra.mxu1 %v2650_v1  ;;  %v1461_v59 = vld [vmem:[%s4187_s10 + $0x2a0] sm:$0xff] }
 0x14f   :  { %1333 = vmatpush1.msra.mxu0 %v1275_v60  ;;  %2189 = vmatprep.subr.bf16.mxu1 %v2643_v9  ;;  %v2675_v60 = vcombine.high %v1457_v58, %v1461_v59  ;;  %v2674_v61 = vcombine.low %v1457_v58, %v1461_v59  ;;  %v2589_v1 = vld [vmem:[%s4181_s4] ss:$0 sm:$0xff]  ;;  %v1478_v58 = vld [vmem:[%s4187_s10 + $0x328] sm:$0xff] }
 0x150   :  { %2228 = vmatprep.subr.bf16.mxu0 %v2653_v8 }
 0x152   :  { %2190 = vmatpush1.bf16.msra.mxu1 %v2642_v10 }
 0x153   :  { %2191 = vmatprep.subr.bf16.mxu1 %v2635_v13 }
 0x156   :  { %2192 = vmatpush1.bf16.msra.mxu1 %v2634_v14  ;;  %v1269_v14 = vld [vmem:[%s4184_s7] sm:$0x3] }
 0x157   :  { %2193 = vmatprep.subr.bf16.mxu1 %v2627_v17  ;;  %v1430_v17 = vld [vmem:[%s4187_s10 + $0x1a8] sm:$0xff] }
 0x158   :  { %v2645_v20 = vcombine.high %v1426_v16, %v1430_v17  ;;  %v2644_v6 = vcombine.low %v1426_v16, %v1430_v17 }
 0x15a   :  { %2194 = vmatpush1.bf16.msra.mxu1 %v2626_v18 }
 0x15b   :  { %2195 = vmatprep.subr.bf16.mxu1 %v2619_v21  ;;  %v1418_v21 = vld [vmem:[%s4187_s10 + $0x148] sm:$0xff] }
 0x15e   :  { %2196 = vmatpush1.bf16.msra.mxu1 %v2618_v22  ;;  %v1422_v22 = vld [vmem:[%s4187_s10 + $0x168] sm:$0xff] }
 0x15f   :  { %2197 = vmatprep.subr.bf16.mxu1 %v2611_v24  ;;  %v2637_v23 = vcombine.high %v1418_v21, %v1422_v22  ;;  %v1410_v24 = vld [vmem:[%s4187_s10 + $0x108] sm:$0xff]  ;;  %v2636_v26 = vcombine.low %v1418_v21, %v1422_v22 }
 0x160   :  { %v1446_v22 = vld [vmem:[%s4187_s10 + $0x228] sm:$0xff] }
 0x162   :  { %2198 = vmatpush1.bf16.msra.mxu1 %v2610_v25  ;;  %v1414_v25 = vld [vmem:[%s4187_s10 + $0x128] sm:$0xff] }
 0x163   :  { %2199 = vmatprep.subr.bf16.mxu1 %v2603_v28  ;;  %v2629_v27 = vcombine.high %v1410_v24, %v1414_v25  ;;  %v2621_v28 = vcombine.high %v1402_v0, %v1406_v3  ;;  %v1440_v3 = vld [vmem:[%s4187_s10 + $0x1f8] sm:$0xff] }
 0x166   :  { %2200 = vmatpush1.bf16.msra.mxu1 %v2602_v29  ;;  %v1394_v29 = vld [vmem:[%s4187_s10 + $0x88] sm:$0xff] }
 0x167   :  { %2201 = vmatprep.subr.bf16.mxu1 %v2595_v33  ;;  %v2613_v33 = vcombine.high %v1394_v29, %v1398_v30  ;;  %v2612_v37 = vcombine.low %v1394_v29, %v1398_v30  ;;  %v1279_v30 = vld [vmem:[%s4186_s9] sm:$0x3] }
 0x16a   :  { %2202 = vmatpush1.bf16.msra.mxu1 %v2594_v35  ;;  %v1386_v35 = vld [vmem:[%s4187_s10 + $0x48] sm:$0xff] }
 0x16b   :  { %2203 = vmatprep.subr.bf16.mxu1 %v2715_v38  ;;  %v2605_v38 = vcombine.high %v1386_v35, %v1390_v36  ;;  %v2604_v41 = vcombine.low %v1386_v35, %v1390_v36 }
 0x16e   :  { %2204 = vmatpush2.bf16.msra.mxu1 %v2714_v39  ;;  %v1378_v39 = vld [vmem:[%s4187_s10 + $0x8] sm:$0xff] }
 0x16f   :  { %2205 = vmatprep.subr.bf16.mxu1 %v2707_v43  ;;  %v2597_v43 = vcombine.high %v1378_v39, %v1382_v40  ;;  %v2596_v46 = vcombine.low %v1378_v39, %v1382_v40 }
 0x172   :  { %2206 = vmatpush2.bf16.msra.mxu1 %v2706_v44  ;;  %v1498_v44 = vld [vmem:[%s4187_s10 + $0x3c8] sm:$0xff] }
 0x173   :  { %2207 = vmatprep.subr.bf16.mxu1 %v2699_v47  ;;  %v2717_v47 = vcombine.high %v1498_v44, %v1502_v45  ;;  %v2716_v51 = vcombine.low %v1498_v44, %v1502_v45  ;;  %v1428_v44 = vld [vmem:[%s4187_s10 + $0x198] sm:$0xff] }
 0x174   :  { %v1432_v45 = vld [vmem:[%s4187_s10 + $0x1b8] sm:$0xff] }
 0x176   :  { %2208 = vmatpush2.bf16.msra.mxu1 %v2698_v48  ;;  %v1490_v48 = vld [vmem:[%s4187_s10 + $0x388] sm:$0xff] }
 0x177   :  { %2209 = vmatprep.subr.bf16.mxu1 %v2691_v52  ;;  %v2709_v52 = vcombine.high %v1490_v48, %v1494_v50  ;;  %v2708_v55 = vcombine.low %v1490_v48, %v1494_v50  ;;  %v1419_v48 = vld [vmem:[%s4187_s10 + $0x150] sm:$0xff] }
 0x17a   :  { %2210 = vmatpush2.bf16.msra.mxu1 %v2690_v53  ;;  %v1482_v53 = vld [vmem:[%s4187_s10 + $0x348] sm:$0xff] }
 0x17b   :  { %2211 = vmatprep.subr.bf16.mxu1 %v2683_v56  ;;  %v2701_v56 = vcombine.high %v1482_v53, %v1486_v54  ;;  %v2700_v59 = vcombine.low %v1482_v53, %v1486_v54  ;;  %v1420_v53 = vld [vmem:[%s4187_s10 + $0x158] sm:$0xff] }
 0x17c   :  { %v1424_v54 = vld [vmem:[%s4187_s10 + $0x178] sm:$0xff] }
 0x17e   :  { %2212 = vmatpush2.bf16.msra.mxu1 %v2682_v57  ;;  %v1474_v57 = vld [vmem:[%s4187_s10 + $0x308] sm:$0xff] }
 0x17f   :  { %2213 = vmatprep.subr.bf16.mxu1 %v2675_v60  ;;  %v2693_v60 = vcombine.high %v1474_v57, %v1478_v58 }
 0x182   :  { %2214 = vmatpush2.bf16.msra.mxu1 %v2674_v61  ;;  %v1466_v61 = vld [vmem:[%s4187_s10 + $0x2c8] sm:$0xff] }
 0x20c   :  { %v2758_v62 = vpop.f32.mrf.mxu0  ;;  %v2793_v63 = vpop.f32.mrf.mxu1 }
 0x20e   :  { %v2759_v2 = vpop.f32.mrf.mxu0  ;;  %v2794_v5 = vpop.f32.mrf.mxu1 }
 0x20f   :  { %v2760_v8 = vadd.f32 %v2759_v2, %v2758_v62  ;;  %v2795_v9 = vadd.f32 %v2794_v5, %v2793_v63  ;;  %v1470_v62 = vld [vmem:[%s4187_s10 + $0x2e8] sm:$0xff]  ;;  %v2692_v63 = vcombine.low %v1474_v57, %v1478_v58  ;;  %v2641_v58 = vcombine.high %v1420_v53, %v1424_v54 }
 0x210   :  { %v1458_v2 = vld [vmem:[%s4187_s10 + $0x288] sm:$0xff]  ;;  %v2684_v5 = vcombine.low %v1466_v61, %v1470_v62 }
 0x211   :  { %v1157_v10 = vadd.f32 %v2760_v8, %v2589_v1  ;;  %v1266_v11 = vadd.f32 %v2795_v9, %v2590_v4  ;;  %v2685_v1 = vcombine.high %v1466_v61, %v1470_v62  ;;  %v1462_v4 = vld [vmem:[%s4187_s10 + $0x2a8] sm:$0xff]  ;;  %v1412_v61 = vld [vmem:[%s4187_s10 + $0x118] sm:$0xff] }
 0x212   :  { %v2677_v8 = vcombine.high %v1458_v2, %v1462_v4  ;;  %v2676_v9 = vcombine.low %v1458_v2, %v1462_v4  ;;  %v1416_v62 = vld [vmem:[%s4187_s10 + $0x138] sm:$0xff] }
 0x213   :  { %v1270_v12 = vmul.f32 0.5, %v1266_v11  ;;  %2352 = vst.msk [vmem:[#allocation2] sm:$0x3] %vm2351_vm1, %v1157_v10  ;;  %2353 = vst.msk [vmem:[#allocation4] sm:$0x3] %vm2351_vm1, %v1266_v11  ;;  %v1453_v11 = vld [vmem:[%s4187_s10 + $0x260] sm:$0xff]  ;;  %v2633_v4 = vcombine.high %v1412_v61, %v1416_v62 }
 0x215   :  { %v1271_v13 = vmul.f32 1.442695, %v1270_v12  ;;  %v1450_v12 = vld [vmem:[%s4187_s10 + $0x248] sm:$0xff] }
 0x217   :  { %2993 = vpow2.f32 %v1271_v13 }
 0x224   :  { %v2994_v15 = vpop.eup %2993 }
 0x225   :  { %v1273_v18 = vmul.f32 %v2994_v15, %v1269_v14  ;;  %v1454_v14 = vld [vmem:[%s4187_s10 + $0x268] sm:$0xff] }
 0x226   :  { %v2668_v16 = vcombine.low %v1450_v12, %v1454_v14  ;;  %v2669_v17 = vcombine.high %v1450_v12, %v1454_v14  ;;  %v2632_v12 = vcombine.low %v1412_v61, %v1416_v62 }
 0x227   :  { %v1274_v19 = vadd.f32 %v1273_v18, %v1157_v10  ;;  %v1449_v10 = vld [vmem:[%s4187_s10 + $0x240] sm:$0xff] }
 0x228   :  { %v2667_v13 = vcombine.high %v1449_v10, %v1453_v11  ;;  %v2666_v15 = vcombine.low %v1449_v10, %v1453_v11  ;;  %v1441_v18 = vld [vmem:[%s4187_s10 + $0x200] sm:$0xff]  ;;  %v1408_v10 = vld [vmem:[%s4187_s10 + $0xf8] sm:$0xff] }
 0x229   :  { %2593 = vmatmul.mubr.msk.f32.vlgmr.msra.gmra.mxu0 %vm1291_vm2, %v1274_v19  ;;  %v1445_v19 = vld [vmem:[%s4187_s10 + $0x220] sm:$0xff] }
 0x22a   :  { %2229 = vmatpush1.bf16.msra.mxu0 %v2652_v7  ;;  %v2628_v7 = vcombine.low %v1410_v24, %v1414_v25  ;;  %2215 = vmatprep.subr.bf16.mxu1 %v2667_v13  ;;  %v2659_v21 = vcombine.high %v1441_v18, %v1445_v19  ;;  %v1435_v25 = vld [vmem:[%s4187_s10 + $0x1d0] sm:$0xff] }
 0x22b   :  { %2230 = vmatprep.subr.bf16.mxu0 %v2645_v20  ;;  %2216 = vmatpush2.bf16.msra.mxu1 %v2666_v15  ;;  %v1442_v20 = vld [vmem:[%s4187_s10 + $0x208] sm:$0xff]  ;;  %v1395_v15 = vld [vmem:[%s4187_s10 + $0x90] sm:$0xff] }
 0x22c   :  { %v2661_v24 = vcombine.high %v1442_v20, %v1446_v22  ;;  %2217 = vmatprep.subr.bf16.mxu1 %v2659_v21 }
 0x22e   :  { %2231 = vmatpush1.bf16.msra.mxu0 %v2644_v6  ;;  %v2658_v6 = vcombine.low %v1441_v18, %v1445_v19  ;;  %v1400_v18 = vld [vmem:[%s4187_s10 + $0xb8] sm:$0xff] }
 0x22f   :  { %2232 = vmatprep.subr.bf16.mxu0 %v2637_v23  ;;  %v2660_v23 = vcombine.low %v1442_v20, %v1446_v22 }
 0x230   :  { %2218 = vmatpush2.bf16.msra.mxu1 %v2658_v6  ;;  %v1387_v6 = vld [vmem:[%s4187_s10 + $0x50] sm:$0xff] }
 0x232   :  { %2233 = vmatpush1.bf16.msra.mxu0 %v2636_v26  ;;  %v1439_v26 = vld [vmem:[%s4187_s10 + $0x1f0] sm:$0xff] }
 0x233   :  { %2234 = vmatprep.subr.bf16.mxu0 %v2629_v27  ;;  %v1436_v27 = vld [vmem:[%s4187_s10 + $0x1d8] sm:$0xff]  ;;  %v2655_v0 = vcombine.high %v1435_v25, %v1439_v26 }
 0x234   :  { %v2657_v29 = vcombine.high %v1436_v27, %v1440_v3 }
 0x235   :  { %2269 = vmatprep.subr.bf16.mxu1 %v2655_v0 }
 0x236   :  { %2235 = vmatpush1.bf16.msra.mxu0 %v2628_v7  ;;  %v2654_v7 = vcombine.low %v1435_v25, %v1439_v26  ;;  %v1392_v25 = vld [vmem:[%s4187_s10 + $0x78] sm:$0xff] }
 0x237   :  { %2236 = vmatprep.subr.bf16.mxu0 %v2621_v28  ;;  %v2656_v28 = vcombine.low %v1436_v27, %v1440_v3 }
 0x23a   :  { %2237 = vmatpush1.bf16.msra.mxu0 %v2620_v31  ;;  %v1284_v31 = vrot.slane %v1279_v30, %v3714_v32 }
 0x23b   :  { %2238 = vmatprep.subr.bf16.mxu0 %v2613_v33  ;;  %v1288_v33 = vrot.slane %v1279_v30, %v3720_v34  ;;  %v1384_v30 = vld [vmem:[%s4187_s10 + $0x38] sm:$0xff] }
 0x23e   :  { %2239 = vmatpush1.bf16.msra.mxu0 %v2612_v37 }
 0x23f   :  { %2240 = vmatprep.subr.bf16.mxu0 %v2605_v38 }
 0x242   :  { %2241 = vmatpush1.bf16.msra.mxu0 %v2604_v41  ;;  %v1427_v41 = vld [vmem:[%s4187_s10 + $0x190] sm:$0xff] }
 0x243   :  { %2242 = vmatprep.subr.bf16.mxu0 %v2597_v43  ;;  %v1431_v43 = vld [vmem:[%s4187_s10 + $0x1b0] sm:$0xff] }
 0x244   :  { %v2647_v50 = vcombine.high %v1427_v41, %v1431_v43 }
 0x246   :  { %2243 = vmatpush1.bf16.msra.mxu0 %v2596_v46 }
 0x247   :  { %2244 = vmatprep.subr.bf16.mxu0 %v2717_v47 }
 0x24a   :  { %2245 = vmatpush2.bf16.msra.mxu0 %v2716_v51  ;;  %v2649_v51 = vcombine.high %v1428_v44, %v1432_v45 }
 0x24b   :  { %2246 = vmatprep.subr.bf16.mxu0 %v2709_v52  ;;  %v1423_v52 = vld [vmem:[%s4187_s10 + $0x170] sm:$0xff] }
 0x24c   :  { %v2639_v57 = vcombine.high %v1419_v48, %v1423_v52 }
 0x24e   :  { %2247 = vmatpush2.bf16.msra.mxu0 %v2708_v55  ;;  %v2646_v55 = vcombine.low %v1427_v41, %v1431_v43 }
 0x24f   :  { %2248 = vmatprep.subr.bf16.mxu0 %v2701_v56  ;;  %v2648_v56 = vcombine.low %v1428_v44, %v1432_v45 }
 0x252   :  { %2249 = vmatpush2.bf16.msra.mxu0 %v2700_v59  ;;  %v1411_v59 = vld [vmem:[%s4187_s10 + $0x110] sm:$0xff] }
 0x253   :  { %2250 = vmatprep.subr.bf16.mxu0 %v2693_v60  ;;  %v1415_v60 = vld [vmem:[%s4187_s10 + $0x130] sm:$0xff] }
 0x254   :  { %v2631_v2 = vcombine.high %v1411_v59, %v1415_v60  ;;  %v2630_v11 = vcombine.low %v1411_v59, %v1415_v60  ;;  %v1488_v59 = vld [vmem:[%s4187_s10 + $0x378] sm:$0xff] }
 0x256   :  { %2251 = vmatpush2.bf16.msra.mxu0 %v2692_v63  ;;  %v2638_v63 = vcombine.low %v1419_v48, %v1423_v52  ;;  %v1495_v48 = vld [vmem:[%s4187_s10 + $0x3b0] sm:$0xff] }
 0x257   :  { %2252 = vmatprep.subr.bf16.mxu0 %v2685_v1  ;;  %v2640_v1 = vcombine.low %v1420_v53, %v1424_v54 }
 0x25a   :  { %2253 = vmatpush2.bf16.msra.mxu0 %v2684_v5  ;;  %v1403_v5 = vld [vmem:[%s4187_s10 + $0xd0] sm:$0xff] }
 0x25b   :  { %2254 = vmatprep.subr.bf16.mxu0 %v2677_v8  ;;  %v1407_v8 = vld [vmem:[%s4187_s10 + $0xf0] sm:$0xff] }
 0x25c   :  { %v2623_v13 = vcombine.high %v1403_v5, %v1407_v8  ;;  %v2622_v19 = vcombine.low %v1403_v5, %v1407_v8  ;;  %v1480_v5 = vld [vmem:[%s4187_s10 + $0x338] sm:$0xff] }
 0x25e   :  { %2255 = vmatpush2.bf16.msra.mxu0 %v2676_v9  ;;  %v1404_v9 = vld [vmem:[%s4187_s10 + $0xd8] sm:$0xff] }
 0x25f   :  { %2256 = vmatprep.subr.bf16.mxu0 %v2669_v17  ;;  %v2625_v14 = vcombine.high %v1404_v9, %v1408_v10  ;;  %v1396_v17 = vld [vmem:[%s4187_s10 + $0x98] sm:$0xff]  ;;  %v2624_v20 = vcombine.low %v1404_v9, %v1408_v10 }
 0x260   :  { %v2617_v22 = vcombine.high %v1396_v17, %v1400_v18  ;;  %v2616_v27 = vcombine.low %v1396_v17, %v1400_v18 }
 0x262   :  { %2257 = vmatpush2.bf16.msra.mxu0 %v2668_v16  ;;  %v1399_v16 = vld [vmem:[%s4187_s10 + $0xb0] sm:$0xff] }
 0x263   :  { %2258 = vmatprep.subr.bf16.mxu0 %v2661_v24  ;;  %v2615_v21 = vcombine.high %v1395_v15, %v1399_v16  ;;  %v1388_v24 = vld [vmem:[%s4187_s10 + $0x58] sm:$0xff]  ;;  %v2614_v26 = vcombine.low %v1395_v15, %v1399_v16 }
 0x264   :  { %v2609_v3 = vcombine.high %v1388_v24, %v1392_v25  ;;  %v1472_v15 = vld [vmem:[%s4187_s10 + $0x2f8] sm:$0xff] }
 0x266   :  { %2259 = vmatpush2.bf16.msra.mxu0 %v2660_v23  ;;  %v1391_v23 = vld [vmem:[%s4187_s10 + $0x70] sm:$0xff] }
 0x267   :  { %2310 = vmatprep.subr.bf16.mxu0 %v2657_v29  ;;  %v2607_v0 = vcombine.high %v1387_v6, %v1391_v23  ;;  %v1380_v29 = vld [vmem:[%s4187_s10 + $0x18] sm:$0xff] }
 0x268   :  { %v2600_v43 = vcombine.low %v1380_v29, %v1384_v30 }
 0x2e9   :  { %v1368_v35 = vpop.f32.mrf.mxu0 }
 0x2ea   :  { %v1369_v36 = vadd.f32 %v1368_v35, %v1284_v31  ;;  %v2606_v31 = vcombine.low %v1387_v6, %v1391_v23  ;;  %v1464_v6 = vld [vmem:[%s4187_s10 + $0x2b8] sm:$0xff] }
 0x2eb   :  { %v1370_v37 = vpop.f32.mrf.mxu0 }
 0x2ec   :  { %v1371_v38 = vadd.f32 %v1370_v37, %v1288_v33  ;;  %v1373_v39 = vmax.f32 %v1369_v36, 0.0  ;;  %v2608_v33 = vcombine.low %v1388_v24, %v1392_v25  ;;  %v2601_v36 = vcombine.high %v1380_v29, %v1384_v30  ;;  %v1499_v37 = vld [vmem:[%s4187_s10 + $0x3d0] sm:$0xff] }
 0x2ee   :  { %v1374_v40 = vmax.f32 %v1371_v38, 0.0  ;;  %v3977_v47 = vpack.c.bf16 %v1373_v39, %v1373_v39  ;;  %v1503_v38 = vld [vmem:[%s4187_s10 + $0x3f0] sm:$0xff]  ;;  %v1500_v39 = vld [vmem:[%s4187_s10 + $0x3d8] sm:$0xff] }
 0x2ef   :  { %v2719_v44 = vcombine.high %v1499_v37, %v1503_v38  ;;  %v2718_v52 = vcombine.low %v1499_v37, %v1503_v38  ;;  %v1448_v37 = vld [vmem:[%s4187_s10 + $0x238] sm:$0xff] }
 0x2f0   :  { %v1376_v46 = vpack.c.bf16 %v1374_v40, %v1374_v40  ;;  %v1504_v40 = vld [vmem:[%s4187_s10 + $0x3f8] sm:$0xff] }
 0x2f1   :  { %v2721_v45 = vcombine.high %v1500_v39, %v1504_v40  ;;  %v2720_v53 = vcombine.low %v1500_v39, %v1504_v40 }
 0x2f2   :  { %2219 = vmatprep.mubr.bf16.mxu1 %v1376_v46  ;;  %2260 = vmatprep.mubr.bf16.mxu0 %v1376_v46 }
 0x2f3   :  { %2220 = vmatmul.mubr.bf16.vlgmr.msra.gmra.mxu1 %v3977_v47  ;;  %2261 = vmatmul.mubr.bf16.vlgmr.msra.gmra.mxu0 %v3977_v47 }
 0x2f4   :  { %2270 = vmatpush1.bf16.msra.mxu1 %v2654_v7  ;;  %2311 = vmatpush1.bf16.msra.mxu0 %v2656_v28  ;;  %v1379_v7 = vld [vmem:[%s4187_s10 + $0x10] sm:$0xff] }
 0x2f5   :  { %2301 = vmatprep.mubr.bf16.mxu1 %v1376_v46  ;;  %2342 = vmatprep.mubr.bf16.mxu0 %v1376_v46  ;;  %v1383_v28 = vld [vmem:[%s4187_s10 + $0x30] sm:$0xff] }
 0x2f6   :  { %2271 = vmatprep.subr.bf16.mxu1 %v2647_v50  ;;  %2312 = vmatprep.subr.bf16.mxu0 %v2649_v51  ;;  %v2599_v35 = vcombine.high %v1379_v7, %v1383_v28  ;;  %v2598_v41 = vcombine.low %v1379_v7, %v1383_v28  ;;  %v1491_v46 = vld [vmem:[%s4187_s10 + $0x390] sm:$0xff]  ;;  %v1492_v50 = vld [vmem:[%s4187_s10 + $0x398] sm:$0xff] }
 0x2f7   :  { %v1496_v51 = vld [vmem:[%s4187_s10 + $0x3b8] sm:$0xff]  ;;  %v2711_v54 = vcombine.high %v1491_v46, %v1495_v48  ;;  %v2710_v60 = vcombine.low %v1491_v46, %v1495_v48 }
 0x2f8   :  { %2272 = vmatpush1.bf16.msra.mxu1 %v2646_v55  ;;  %2313 = vmatpush1.bf16.msra.mxu0 %v2648_v56  ;;  %v2713_v55 = vcombine.high %v1492_v50, %v1496_v51  ;;  %v1483_v56 = vld [vmem:[%s4187_s10 + $0x350] sm:$0xff]  ;;  %v2712_v61 = vcombine.low %v1492_v50, %v1496_v51  ;;  %v1456_v7 = vld [vmem:[%s4187_s10 + $0x278] sm:$0xff] }
 0x2f9   :  { %2273 = vmatprep.subr.bf16.mxu1 %v2639_v57  ;;  %2314 = vmatprep.subr.bf16.mxu0 %v2641_v58  ;;  %v1487_v57 = vld [vmem:[%s4187_s10 + $0x370] sm:$0xff]  ;;  %v1484_v58 = vld [vmem:[%s4187_s10 + $0x358] sm:$0xff] }
 0x2fa   :  { %v2703_v62 = vcombine.high %v1483_v56, %v1487_v57  ;;  %v2702_v8 = vcombine.low %v1483_v56, %v1487_v57  ;;  %v2704_v9 = vcombine.low %v1484_v58, %v1488_v59 }
 0x2fc   :  { %2274 = vmatpush1.bf16.msra.mxu1 %v2638_v63  ;;  %2315 = vmatpush1.bf16.msra.mxu0 %v2640_v1  ;;  %v2705_v63 = vcombine.high %v1484_v58, %v1488_v59  ;;  %v1475_v1 = vld [vmem:[%s4187_s10 + $0x310] sm:$0xff] }
 0x2fd   :  { %2275 = vmatprep.subr.bf16.mxu1 %v2631_v2  ;;  %2316 = vmatprep.subr.bf16.mxu0 %v2633_v4  ;;  %v1479_v2 = vld [vmem:[%s4187_s10 + $0x330] sm:$0xff]  ;;  %v1476_v4 = vld [vmem:[%s4187_s10 + $0x318] sm:$0xff] }
 0x2fe   :  { %v2695_v10 = vcombine.high %v1475_v1, %v1479_v2  ;;  %v2694_v16 = vcombine.low %v1475_v1, %v1479_v2  ;;  %v2696_v17 = vcombine.low %v1476_v4, %v1480_v5 }
 0x300   :  { %2276 = vmatpush1.bf16.msra.mxu1 %v2630_v11  ;;  %2317 = vmatpush1.bf16.msra.mxu0 %v2632_v12  ;;  %v2697_v11 = vcombine.high %v1476_v4, %v1480_v5  ;;  %v1467_v12 = vld [vmem:[%s4187_s10 + $0x2d0] sm:$0xff] }
 0x301   :  { %2277 = vmatprep.subr.bf16.mxu1 %v2623_v13  ;;  %2318 = vmatprep.subr.bf16.mxu0 %v2625_v14  ;;  %v1471_v13 = vld [vmem:[%s4187_s10 + $0x2f0] sm:$0xff]  ;;  %v1468_v14 = vld [vmem:[%s4187_s10 + $0x2d8] sm:$0xff] }
 0x302   :  { %v2687_v18 = vcombine.high %v1467_v12, %v1471_v13  ;;  %v2686_v23 = vcombine.low %v1467_v12, %v1471_v13  ;;  %v2688_v24 = vcombine.low %v1468_v14, %v1472_v15 }
 0x304   :  { %2278 = vmatpush1.bf16.msra.mxu1 %v2622_v19  ;;  %2319 = vmatpush1.bf16.msra.mxu0 %v2624_v20  ;;  %v2689_v19 = vcombine.high %v1468_v14, %v1472_v15  ;;  %v1459_v20 = vld [vmem:[%s4187_s10 + $0x290] sm:$0xff] }
 0x305   :  { %2279 = vmatprep.subr.bf16.mxu1 %v2615_v21  ;;  %2320 = vmatprep.subr.bf16.mxu0 %v2617_v22  ;;  %v1463_v21 = vld [vmem:[%s4187_s10 + $0x2b0] sm:$0xff]  ;;  %v1460_v22 = vld [vmem:[%s4187_s10 + $0x298] sm:$0xff] }
 0x306   :  { %v2679_v25 = vcombine.high %v1459_v20, %v1463_v21  ;;  %v2678_v28 = vcombine.low %v1459_v20, %v1463_v21  ;;  %v2680_v29 = vcombine.low %v1460_v22, %v1464_v6 }
 0x308   :  { %2280 = vmatpush1.bf16.msra.mxu1 %v2614_v26  ;;  %2321 = vmatpush1.bf16.msra.mxu0 %v2616_v27  ;;  %v2681_v26 = vcombine.high %v1460_v22, %v1464_v6  ;;  %v1451_v27 = vld [vmem:[%s4187_s10 + $0x250] sm:$0xff] }
 0x309   :  { %2281 = vmatprep.subr.bf16.mxu1 %v2607_v0  ;;  %2322 = vmatprep.subr.bf16.mxu0 %v2609_v3  ;;  %v1455_v0 = vld [vmem:[%s4187_s10 + $0x270] sm:$0xff]  ;;  %v1452_v3 = vld [vmem:[%s4187_s10 + $0x258] sm:$0xff] }
 0x30a   :  { %v2671_v30 = vcombine.high %v1451_v27, %v1455_v0  ;;  %v2670_v38 = vcombine.low %v1451_v27, %v1455_v0  ;;  %v2672_v39 = vcombine.low %v1452_v3, %v1456_v7 }
 0x30c   :  { %2282 = vmatpush1.bf16.msra.mxu1 %v2606_v31  ;;  %2323 = vmatpush1.bf16.msra.mxu0 %v2608_v33  ;;  %v2673_v31 = vcombine.high %v1452_v3, %v1456_v7  ;;  %v1443_v33 = vld [vmem:[%s4187_s10 + $0x210] sm:$0xff] }
 0x30d   :  { %2283 = vmatprep.subr.bf16.mxu1 %v2599_v35  ;;  %2324 = vmatprep.subr.bf16.mxu0 %v2601_v36  ;;  %v1447_v35 = vld [vmem:[%s4187_s10 + $0x230] sm:$0xff]  ;;  %v1444_v36 = vld [vmem:[%s4187_s10 + $0x218] sm:$0xff]  ;;  %s3041_s10 = smov [#allocation2]  }
 0x30e   :  { %v2663_v40 = vcombine.high %v1443_v33, %v1447_v35  ;;  %s2435_s5 = sshll.u32 %s3041_s10, 4  ;;  %s2436_s5 = int_to_ptr.vmem [resolvable:$true] %s2435_s5 }
 0x30f   :  { %s2995_s26 = scalar_lea.vmem %s2436_s5, 32  ;;  %p3000_p1 = scmp.lt.s32.totalorder %s2436_s5, %s2436_s5 }
 0x310   :  { %2284 = vmatpush1.bf16.msra.mxu1 %v2598_v41  ;;  %2325 = vmatpush1.bf16.msra.mxu0 %v2600_v43  ;;  %v2665_v41 = vcombine.high %v1444_v36, %v1448_v37  ;;  %v2662_v43 = vcombine.low %v1443_v33, %v1447_v35  ;;  %p2996_p0 = scmp.ne.s32.totalorder %s2436_s5, %s2995_s26  ;;  %p3001_p2 = scmp.lt.s32.totalorder %s2995_s26, %s2995_s26 }
 0x311   :  { %2285 = vmatprep.subr.bf16.mxu1 %v2719_v44  ;;  %2326 = vmatprep.subr.bf16.mxu0 %v2721_v45  ;;  %v2664_v44 = vcombine.low %v1444_v36, %v1448_v37 }
 0x312   :  { %p3002_p3 = por %p3001_p2, %p3000_p1 }
 0x314   :  { %2286 = vmatpush2.bf16.msra.mxu1 %v2718_v52  ;;  %2327 = vmatpush2.bf16.msra.mxu0 %v2720_v53  ;;  %p3003_p4 = pnand %p3002_p3, %p2996_p0 }
 0x315   :  { %2287 = vmatprep.subr.bf16.mxu1 %v2711_v54  ;;  %2328 = vmatprep.subr.bf16.mxu0 %v2713_v55 }
 0x318   :  { %2288 = vmatpush2.bf16.msra.mxu1 %v2710_v60  ;;  %2329 = vmatpush2.bf16.msra.mxu0 %v2712_v61 }
 0x319   :  { %2289 = vmatprep.subr.bf16.mxu1 %v2703_v62  ;;  %2330 = vmatprep.subr.bf16.mxu0 %v2705_v63 }
 0x31c   :  { %2290 = vmatpush2.bf16.msra.mxu1 %v2702_v8  ;;  %2331 = vmatpush2.bf16.msra.mxu0 %v2704_v9 }
 0x31d   :  { %2291 = vmatprep.subr.bf16.mxu1 %v2695_v10  ;;  %2332 = vmatprep.subr.bf16.mxu0 %v2697_v11 }
 0x320   :  { %2292 = vmatpush2.bf16.msra.mxu1 %v2694_v16  ;;  %2333 = vmatpush2.bf16.msra.mxu0 %v2696_v17 }
 0x321   :  { %2293 = vmatprep.subr.bf16.mxu1 %v2687_v18  ;;  %2334 = vmatprep.subr.bf16.mxu0 %v2689_v19 }
 0x324   :  { %2294 = vmatpush2.bf16.msra.mxu1 %v2686_v23  ;;  %2335 = vmatpush2.bf16.msra.mxu0 %v2688_v24 }
 0x325   :  { %2295 = vmatprep.subr.bf16.mxu1 %v2679_v25  ;;  %2336 = vmatprep.subr.bf16.mxu0 %v2681_v26 }
 0x328   :  { %2296 = vmatpush2.bf16.msra.mxu1 %v2678_v28  ;;  %2337 = vmatpush2.bf16.msra.mxu0 %v2680_v29 }
 0x329   :  { %2297 = vmatprep.subr.bf16.mxu1 %v2671_v30  ;;  %2338 = vmatprep.subr.bf16.mxu0 %v2673_v31 }
 0x32c   :  { %2298 = vmatpush2.bf16.msra.mxu1 %v2670_v38  ;;  %2339 = vmatpush2.bf16.msra.mxu0 %v2672_v39 }
 0x32d   :  { %2299 = vmatprep.subr.bf16.mxu1 %v2663_v40  ;;  %2340 = vmatprep.subr.bf16.mxu0 %v2665_v41 }
 0x330   :  { %2300 = vmatpush2.bf16.msra.mxu1 %v2662_v43  ;;  %2341 = vmatpush2.bf16.msra.mxu0 %v2664_v44 }
 0x333   :  { %2302 = vmatmul.mubr.bf16.vlgmr.msra.gmra.mxu1 %v3977_v47  ;;  %2343 = vmatmul.mubr.bf16.vlgmr.msra.gmra.mxu0 %v3977_v47 }
 0x334   :  { %3006 = shalt.err (!%p3003_p4)
}
 0x335   :  { %2438 = dma.vmem_to_hbm [thread:$0]  %s2436_s5, 32, %s4189_s12, [#allocation3]  }
 0x336   :  { %s3015_s28 = scalar_lea.vmem %s2446_s25, 32  ;;  %p3020_p6 = scmp.lt.s32.totalorder %s2446_s25, %s2446_s25 }
 0x337   :  { %p3016_p5 = scmp.ne.s32.totalorder %s2446_s25, %s3015_s28  ;;  %p3021_p7 = scmp.lt.s32.totalorder %s3015_s28, %s3015_s28 }
 0x339   :  { %p3022_p8 = por %p3021_p7, %p3020_p6 }
 0x33b   :  { %p3023_p9 = pnand %p3022_p8, %p3016_p5 }
 0x33d   :  { %3026 = shalt.err (!%p3023_p9)
}
 0x33e   :  { %2448 = dma.vmem_to_hbm [thread:$0]  %s2446_s25, 32, %s4190_s13, [#allocation5]   ;;  %v1517_v47 = vsub.s32 2, %v3235_v42  ;;  %v1505_v45 = vld [vmem:[%s4188_s11] sm:$0xff]  ;;  %v1521_v46 = vsub.s32 3, %v3235_v42  ;;  %v1525_v12 = vsub.s32 4, %v3235_v42 }
 0x33f   :  { %v1510_v48 = vrot.slane %v1505_v45, %v3714_v32  ;;  %v1514_v51 = vrot.slane %v1505_v45, %v3720_v34  ;;  %v1533_v13 = vsub.s32 6, %v3235_v42  ;;  %v1529_v14 = vsub.s32 5, %v3235_v42 }
 0x340   :  { %v1518_v50 = vrot.slane %v1505_v45, %v1517_v47  ;;  %v1522_v52 = vrot.slane %v1505_v45, %v1521_v46  ;;  %v1537_v15 = vsub.s32 7, %v3235_v42  ;;  %v1526_v16 = vrot.slane %v1505_v45, %v1525_v12 }
 0x341   :  { %v1534_v17 = vrot.slane %v1505_v45, %v1533_v13  ;;  %v1530_v18 = vrot.slane %v1505_v45, %v1529_v14 }
 0x342   :  { %v1538_v19 = vrot.slane %v1505_v45, %v1537_v15 }
 0x3b3   :  { %v2221_v53 = vpop.f32.mrf.mxu1  ;;  %v2262_v54 = vpop.f32.mrf.mxu0 }
 0x3b4   :  { %v2222_v55 = vadd.f32 %v2221_v53, %v1510_v48  ;;  %v2263_v56 = vadd.f32 %v2262_v54, %v1518_v50 }
 0x3b5   :  { %v2223_v57 = vpop.f32.mrf.mxu1  ;;  %v2264_v58 = vpop.f32.mrf.mxu0 }
 0x3b6   :  { %v2224_v59 = vadd.f32 %v2223_v57, %v1514_v51  ;;  %v2265_v60 = vadd.f32 %v2264_v58, %v1522_v52  ;;  %v2354_v63 = vmax.f32 %v2222_v55, 0.0  ;;  %v2356_v1 = vmax.f32 %v2263_v56, 0.0 }
 0x3b7   :  { %v2225_v61 = vpop.f32.mrf.mxu1  ;;  %v2266_v62 = vpop.f32.mrf.mxu0 }
 0x3b8   :  { %v2355_v2 = vmax.f32 %v2224_v59, 0.0  ;;  %v2357_v4 = vmax.f32 %v2265_v60, 0.0 }
 0x3b9   :  { %v2226_v5 = vpop.f32.mrf.mxu1  ;;  %v2267_v32 = vpop.f32.mrf.mxu0 }
 0x3ba   :  { %v2722_v8 = vpack.c.bf16 %v2355_v2, %v2354_v63  ;;  %v2723_v9 = vpack.c.bf16 %v2357_v4, %v2356_v1 }
 0x3bc   :  { %v2388_v34 = vrot.slane %v2722_v8, %v3253_v49  ;;  %v2395_v10 = vrot.slane %v2723_v9, %v3253_v49 }
 0x3be   :  { %v2410_v11 = vcombine.low %v2388_v34, %v2395_v10 }
 0x3c0   :  { %v2418_v38 = vrot.slane %v2410_v11, %v3253_v49 }
 0x3f3   :  { %v2303_v20 = vpop.f32.mrf.mxu1  ;;  %v2344_v21 = vpop.f32.mrf.mxu0 }
 0x3f4   :  { %v2304_v22 = vadd.f32 %v2303_v20, %v1526_v16  ;;  %v2345_v6 = vadd.f32 %v2344_v21, %v1534_v17 }
 0x3f5   :  { %v2305_v23 = vpop.f32.mrf.mxu1  ;;  %v2346_v24 = vpop.f32.mrf.mxu0 }
 0x3f6   :  { %v2306_v25 = vadd.f32 %v2305_v23, %v1530_v18  ;;  %v2347_v26 = vadd.f32 %v2346_v24, %v1538_v19  ;;  %v2358_v3 = vmax.f32 %v2304_v22, 0.0  ;;  %v2360_v7 = vmax.f32 %v2345_v6, 0.0 }
 0x3f7   :  { %v2307_v27 = vpop.f32.mrf.mxu1  ;;  %v2348_v0 = vpop.f32.mrf.mxu0 }
 0x3f8   :  { %v2359_v28 = vmax.f32 %v2306_v25, 0.0  ;;  %v2361_v29 = vmax.f32 %v2347_v26, 0.0 }
 0x3f9   :  { %v2308_v30 = vpop.f32.mrf.mxu1  ;;  %v2349_v42 = vpop.f32.mrf.mxu0 }
 0x3fa   :  { %v2724_v31 = vpack.c.bf16 %v2359_v28, %v2358_v3  ;;  %v2725_v33 = vpack.c.bf16 %v2361_v29, %v2360_v7 }
 0x3fc   :  { %v2402_v35 = vrot.slane %v2724_v31, %v3253_v49  ;;  %v2409_v36 = vrot.slane %v2725_v33, %v3253_v49 }
 0x3fe   :  { %v2411_v37 = vcombine.low %v2402_v35, %v2409_v36 }
 0x400   :  { %v2425_v39 = vrot.slane %v2411_v37, %v3253_v49 }
 0x402   :  { %v2426_v40 = vcombine.low %v2418_v38, %v2425_v39 }
 0x404   :  { %2428 = vst [vmem:[%s4191_s14] sm:$0xff] %v2426_v40 }
 0x405   :  { %3035 = dma.done.wait [#allocation3], 32  }
 0x406   :  { %3036 = vsyncadd [#allocation3], 4294967264 }
 0x407   :  { %3037 = dma.done.wait [#allocation5], 32  }
 0x408   :  { %3038 = vsyncadd [#allocation5], 4294967264 }
 0x409   :  { %2459 = vsyncpa [#allocation3], 1 }
 0x40a   :  { %2460 = vsyncpa [#allocation5], 1 }

// kernel: vae_forward.9
= control target key start
LH: loop header
LB: loop body
LE: loop exit
PB: predicated region body
PF: predicated region fallthrough
CT: control target
= control target key end

     0   :  { %vm1272_vm0 = vcmask 257024   ;;  %vm1285_vm1 = vcmask 253952   ;;  %s2311_s1 = inlined_call_operand.vmem [shape: bf16[1024,32], index: 1, kind: input, shape index: {}]   ;;  %s2312_s0 = inlined_call_operand.vmem [shape: bf16[98,1024], index: 0, kind: input, shape index: {}]   ;;  %s2313_s2 = inlined_call_operand.vmem [shape: f32[1,32], index: 2, kind: input, shape index: {}]   ;;  %s2314_s3 = inlined_call_operand.vmem [shape: bf16[98,32], index: 3, kind: output, shape index: {}]  }
   0x1   :  { %v1670_v0 = vld [vmem:[%s2311_s1 + $0x78] sm:$0xff]   ;;  %v1674_v4 = vld [vmem:[%s2311_s1 + $0x70] sm:$0xff]   ;;  %v1678_v8 = vld [vmem:[%s2311_s1 + $0x68] sm:$0xff]  }
   0x2   :  { %v1671_v1 = vld [vmem:[%s2311_s1 + $0xf8] sm:$0xff]   ;;  %1438 = vmatprep.subr.bf16.mxu0 %v1670_v0  ;;  %v1675_v5 = vld [vmem:[%s2311_s1 + $0xf0] sm:$0xff]   ;;  %v1679_v9 = vld [vmem:[%s2311_s1 + $0xe8] sm:$0xff]  }
   0x3   :  { %v1672_v2 = vld [vmem:[%s2311_s1 + $0x38] sm:$0xff]   ;;  %1496 = vmatprep.subr.bf16.mxu1 %v1671_v1  ;;  %v1676_v6 = vld [vmem:[%s2311_s1 + $0x30] sm:$0xff]   ;;  %v1680_v10 = vld [vmem:[%s2311_s1 + $0x28] sm:$0xff]  }
   0x4   :  { %v1673_v3 = vld [vmem:[%s2311_s1 + $0xb8] sm:$0xff]   ;;  %1439 = vmatpush3.bf16.msra.mxu0 %v1672_v2  ;;  %v1677_v7 = vld [vmem:[%s2311_s1 + $0xb0] sm:$0xff]   ;;  %v1681_v11 = vld [vmem:[%s2311_s1 + $0xa8] sm:$0xff]  }
   0x5   :  { %1497 = vmatpush3.bf16.msra.mxu1 %v1673_v3  ;;  %1440 = vmatprep.subr.bf16.mxu0 %v1674_v4  ;;  %v1682_v12 = vld [vmem:[%s2311_s1 + $0x60] sm:$0xff]   ;;  %v1686_v16 = vld [vmem:[%s2311_s1 + $0x58] sm:$0xff]   ;;  %v1690_v20 = vld [vmem:[%s2311_s1 + $0x50] sm:$0xff]  }
   0x6   :  { %1498 = vmatprep.subr.bf16.mxu1 %v1675_v5  ;;  %v1683_v13 = vld [vmem:[%s2311_s1 + $0xe0] sm:$0xff]   ;;  %v1687_v17 = vld [vmem:[%s2311_s1 + $0xd8] sm:$0xff]   ;;  %v1691_v21 = vld [vmem:[%s2311_s1 + $0xd0] sm:$0xff]  }
   0x7   :  { %v1684_v14 = vld [vmem:[%s2311_s1 + $0x20] sm:$0xff]   ;;  %v1688_v18 = vld [vmem:[%s2311_s1 + $0x18] sm:$0xff]   ;;  %v1692_v22 = vld [vmem:[%s2311_s1 + $0x10] sm:$0xff]  }
   0x8   :  { %1441 = vmatpush3.bf16.msra.mxu0 %v1676_v6  ;;  %v1685_v15 = vld [vmem:[%s2311_s1 + $0xa0] sm:$0xff]   ;;  %v1689_v19 = vld [vmem:[%s2311_s1 + $0x98] sm:$0xff]   ;;  %v1693_v23 = vld [vmem:[%s2311_s1 + $0x90] sm:$0xff]  }
   0x9   :  { %1499 = vmatpush3.bf16.msra.mxu1 %v1677_v7  ;;  %1442 = vmatprep.subr.bf16.mxu0 %v1678_v8  ;;  %v1694_v24 = vld [vmem:[%s2311_s1 + $0x48] sm:$0xff]   ;;  %v1698_v28 = vld [vmem:[%s2311_s1 + $0x40] sm:$0xff]   ;;  %v1702_v40 = vld [vmem:[%s2311_s1 + $0x178] sm:$0xff]  }
   0xa   :  { %1500 = vmatprep.subr.bf16.mxu1 %v1679_v9  ;;  %v1695_v25 = vld [vmem:[%s2311_s1 + $0xc8] sm:$0xff]   ;;  %v1699_v29 = vld [vmem:[%s2311_s1 + $0xc0] sm:$0xff]   ;;  %v1703_v41 = vld [vmem:[%s2311_s1 + $0x138] sm:$0xff]  }
   0xb   :  { %v1696_v26 = vld [vmem:[%s2311_s1 + $0x8] sm:$0xff]   ;;  %v1700_v30 = vld [vmem:[%s2311_s1] sm:$0xff]   ;;  %v1704_v42 = vld [vmem:[%s2311_s1 + $0x1f8] sm:$0xff]  }
   0xc   :  { %1443 = vmatpush3.bf16.msra.mxu0 %v1680_v10  ;;  %v1697_v27 = vld [vmem:[%s2311_s1 + $0x88] sm:$0xff]   ;;  %v1701_v31 = vld [vmem:[%s2311_s1 + $0x80] sm:$0xff]   ;;  %v1705_v43 = vld [vmem:[%s2311_s1 + $0x1b8] sm:$0xff]  }
   0xd   :  { %1501 = vmatpush3.bf16.msra.mxu1 %v1681_v11  ;;  %1444 = vmatprep.subr.bf16.mxu0 %v1682_v12  ;;  %v15_v32 = vld [vmem:[%s2312_s0] sm:$0xff]  ;;  %v16_v34 = vld [vmem:[%s2312_s0 + $0x8] sm:$0xff]  ;;  %v1706_v50 = vld [vmem:[%s2311_s1 + $0x170] sm:$0xff]  }
   0xe   :  { %1502 = vmatprep.subr.bf16.mxu1 %v1683_v13  ;;  %v19_v33 = vld [vmem:[%s2312_s0 + $0x20] sm:$0xff]  ;;  %v20_v37 = vld [vmem:[%s2312_s0 + $0x28] sm:$0xff]  ;;  %v1707_v52 = vld [vmem:[%s2311_s1 + $0x130] sm:$0xff]  }
   0xf   :  { %v1292_v35 = vcombine.low %v15_v32, %v19_v33  ;;  %v1293_v36 = vcombine.high %v15_v32, %v19_v33  ;;  %v1294_v38 = vcombine.low %v16_v34, %v20_v37  ;;  %v1295_v39 = vcombine.high %v16_v34, %v20_v37  ;;  %v23_v44 = vld [vmem:[%s2312_s0 + $0x40] sm:$0xff]  ;;  %v24_v47 = vld [vmem:[%s2312_s0 + $0x48] sm:$0xff]  ;;  %v1708_v54 = vld [vmem:[%s2311_s1 + $0x1f0] sm:$0xff]  }
  0x10   :  { %1445 = vmatpush3.bf16.msra.mxu0 %v1684_v14  ;;  %v27_v45 = vld [vmem:[%s2312_s0 + $0x60] sm:$0xff]  ;;  %v28_v48 = vld [vmem:[%s2312_s0 + $0x68] sm:$0xff]  ;;  %v1709_v55 = vld [vmem:[%s2311_s1 + $0x1b0] sm:$0xff]  }
  0x11   :  { %1503 = vmatpush3.bf16.msra.mxu1 %v1685_v15  ;;  %1446 = vmatprep.subr.bf16.mxu0 %v1686_v16  ;;  %v1301_v46 = vcombine.high %v23_v44, %v27_v45  ;;  %v1303_v49 = vcombine.high %v24_v47, %v28_v48  ;;  %v1300_v51 = vcombine.low %v23_v44, %v27_v45  ;;  %v1710_v56 = vld [vmem:[%s2311_s1 + $0x168] sm:$0xff]   ;;  %v31_v57 = vld [vmem:[%s2312_s0 + $0x80] sm:$0xff]  ;;  %v1718_v14 = vld [vmem:[%s2311_s1 + $0x158] sm:$0xff]  }
  0x12   :  { %1504 = vmatprep.subr.bf16.mxu1 %v1687_v17  ;;  %886 = vmatprep.mubr.bf16.mxu0 %v1293_v36  ;;  %v1302_v53 = vcombine.low %v24_v47, %v28_v48  ;;  %v35_v58 = vld [vmem:[%s2312_s0 + $0xa0] sm:$0xff]  ;;  %v32_v59 = vld [vmem:[%s2312_s0 + $0x88] sm:$0xff]  ;;  %v1719_v15 = vld [vmem:[%s2311_s1 + $0x118] sm:$0xff]  }
  0x13   :  { %974 = vmatprep.mubr.bf16.mxu1 %v1295_v39  ;;  %v36_v60 = vld [vmem:[%s2312_s0 + $0xa8] sm:$0xff]  ;;  %v1309_v61 = vcombine.high %v31_v57, %v35_v58  ;;  %v1308_v2 = vcombine.low %v31_v57, %v35_v58  ;;  %v1714_v3 = vld [vmem:[%s2311_s1 + $0x160] sm:$0xff]   ;;  %v1720_v17 = vld [vmem:[%s2311_s1 + $0x1d8] sm:$0xff]  }
  0x14   :  { %1447 = vmatpush3.bf16.msra.mxu0 %v1688_v18  ;;  %v1311_v62 = vcombine.high %v32_v59, %v36_v60  ;;  %v1711_v63 = vld [vmem:[%s2311_s1 + $0x128] sm:$0xff]   ;;  %v1310_v4 = vcombine.low %v32_v59, %v36_v60  ;;  %v1715_v5 = vld [vmem:[%s2311_s1 + $0x120] sm:$0xff]   ;;  %v25_v60 = vld [vmem:[%s2312_s0 + $0x50] sm:$0xff] }
  0x15   :  { %1505 = vmatpush3.bf16.msra.mxu1 %v1689_v19  ;;  %1448 = vmatprep.subr.bf16.mxu0 %v1690_v20  ;;  %v1712_v0 = vld [vmem:[%s2311_s1 + $0x1e8] sm:$0xff]   ;;  %v39_v6 = vld [vmem:[%s2312_s0 + $0xc0] sm:$0xff] }
  0x16   :  { %1506 = vmatprep.subr.bf16.mxu1 %v1691_v21  ;;  %v1713_v1 = vld [vmem:[%s2311_s1 + $0x1a8] sm:$0xff]   ;;  %v43_v7 = vld [vmem:[%s2312_s0 + $0xe0] sm:$0xff] }
  0x17   :  { %v40_v8 = vld [vmem:[%s2312_s0 + $0xc8] sm:$0xff]  ;;  %v1317_v9 = vcombine.high %v39_v6, %v43_v7  ;;  %v1716_v12 = vld [vmem:[%s2311_s1 + $0x1e0] sm:$0xff]   ;;  %v1316_v16 = vcombine.low %v39_v6, %v43_v7  ;;  %v34_v6 = vld [vmem:[%s2312_s0 + $0x98] sm:$0xff] }
  0x18   :  { %1449 = vmatpush3.bf16.msra.mxu0 %v1692_v22  ;;  %v44_v10 = vld [vmem:[%s2312_s0 + $0xe8] sm:$0xff]  ;;  %v1717_v13 = vld [vmem:[%s2311_s1 + $0x1a0] sm:$0xff]   ;;  %v38_v7 = vld [vmem:[%s2312_s0 + $0xb8] sm:$0xff] }
  0x19   :  { %1507 = vmatpush3.bf16.msra.mxu1 %v1693_v23  ;;  %1450 = vmatprep.subr.bf16.mxu0 %v1694_v24  ;;  %v1319_v11 = vcombine.high %v40_v8, %v44_v10  ;;  %v47_v18 = vld [vmem:[%s2312_s0 + $0x100] sm:$0xff]  ;;  %v1318_v20 = vcombine.low %v40_v8, %v44_v10  ;;  %v48_v22 = vld [vmem:[%s2312_s0 + $0x108] sm:$0xff] }
  0x1a   :  { %1508 = vmatprep.subr.bf16.mxu1 %v1695_v25  ;;  %v51_v19 = vld [vmem:[%s2312_s0 + $0x120] sm:$0xff]  ;;  %v52_v23 = vld [vmem:[%s2312_s0 + $0x128] sm:$0xff]  ;;  %v1721_v25 = vld [vmem:[%s2311_s1 + $0x198] sm:$0xff]  }
  0x1b   :  { %v1325_v21 = vcombine.high %v47_v18, %v51_v19  ;;  %v1327_v24 = vcombine.high %v48_v22, %v52_v23  ;;  %v56_v32 = vld [vmem:[%s2312_s0 + $0x148] sm:$0xff]  ;;  %v1324_v34 = vcombine.low %v47_v18, %v51_v19  ;;  %v1326_v36 = vcombine.low %v48_v22, %v52_v23  ;;  %v1734_v44 = vld [vmem:[%s2311_s1 + $0x140] sm:$0xff]   ;;  %v50_v22 = vld [vmem:[%s2312_s0 + $0x118] sm:$0xff] }
  0x1c   :  { %1451 = vmatpush3.bf16.msra.mxu0 %v1696_v26  ;;  %v1722_v26 = vld [vmem:[%s2311_s1 + $0x150] sm:$0xff]   ;;  %v60_v33 = vld [vmem:[%s2312_s0 + $0x168] sm:$0xff]  ;;  %v1735_v45 = vld [vmem:[%s2311_s1 + $0x100] sm:$0xff]  }
  0x1d   :  { %1509 = vmatpush3.bf16.msra.mxu1 %v1697_v27  ;;  %1452 = vmatprep.subr.bf16.mxu0 %v1698_v28  ;;  %v1723_v27 = vld [vmem:[%s2311_s1 + $0x110] sm:$0xff]   ;;  %v1335_v39 = vcombine.high %v56_v32, %v60_v33  ;;  %v1737_v48 = vld [vmem:[%s2311_s1 + $0x180] sm:$0xff]   ;;  %v54_v23 = vld [vmem:[%s2312_s0 + $0x138] sm:$0xff] }
  0x1e   :  { %1510 = vmatprep.subr.bf16.mxu1 %v1699_v29  ;;  %v1724_v28 = vld [vmem:[%s2311_s1 + $0x1d0] sm:$0xff]  }
  0x1f   :  { %v1725_v29 = vld [vmem:[%s2311_s1 + $0x190] sm:$0xff]  }
  0x20   :  { %1453 = vmatpush3.bf16.msra.mxu0 %v1700_v30  ;;  %v55_v30 = vld [vmem:[%s2312_s0 + $0x140] sm:$0xff] }
  0x21   :  { %1511 = vmatpush3.bf16.msra.mxu1 %v1701_v31  ;;  %1554 = vmatprep.subr.bf16.mxu0 %v1702_v40  ;;  %v59_v31 = vld [vmem:[%s2312_s0 + $0x160] sm:$0xff]  ;;  %v1728_v40 = vld [vmem:[%s2311_s1 + $0x1c8] sm:$0xff]  }
  0x22   :  { %1612 = vmatprep.subr.bf16.mxu1 %v1704_v42  ;;  %v1333_v37 = vcombine.high %v55_v30, %v59_v31  ;;  %v63_v42 = vld [vmem:[%s2312_s0 + $0x180] sm:$0x11]  ;;  %v1332_v47 = vcombine.low %v55_v30, %v59_v31  ;;  %v58_v30 = vld [vmem:[%s2312_s0 + $0x158] sm:$0xff] }
  0x23   :  { %887 = vmatmul.mubr.bf16.vlgmr.msra.gmra.mxu0 %v1292_v35  ;;  %v1726_v35 = vld [vmem:[%s2311_s1 + $0x148] sm:$0xff]   ;;  %v62_v31 = vld [vmem:[%s2312_s0 + $0x178] sm:$0xff] }
  0x24   :  { %975 = vmatmul.mubr.bf16.vlgmr.msra.gmra.mxu1 %v1294_v38  ;;  %1555 = vmatpush3.bf16.msra.mxu0 %v1703_v41  ;;  %v1727_v38 = vld [vmem:[%s2311_s1 + $0x108] sm:$0xff]  }
  0x25   :  { %1613 = vmatpush3.bf16.msra.mxu1 %v1705_v43  ;;  %894 = vmatprep.mubr.bf16.mxu0 %v1301_v46  ;;  %v1729_v41 = vld [vmem:[%s2311_s1 + $0x188] sm:$0xff]   ;;  %v1736_v46 = vld [vmem:[%s2311_s1 + $0x1c0] sm:$0xff]  }
  0x26   :  { %982 = vmatprep.mubr.bf16.mxu1 %v1303_v49  ;;  %1556 = vmatprep.subr.bf16.mxu0 %v1706_v50  ;;  %v64_v43 = vld [vmem:[%s2312_s0 + $0x188] sm:$0x11]  ;;  %v1334_v49 = vcombine.low %v56_v32, %v60_v33  ;;  %v1341_v50 = vcombine.high %v63_v42, %v63_v42  ;;  %v1330_v33 = vcombine.low %v50_v22, %v54_v23 }
  0x27   :  { %1614 = vmatprep.subr.bf16.mxu1 %v1708_v54  ;;  %v18_v54 = vld [vmem:[%s2312_s0 + $0x18] sm:$0xff]  ;;  %v1342_v57 = vcombine.low %v64_v43, %v64_v43 }
  0x28   :  { %1557 = vmatpush3.bf16.msra.mxu0 %v1707_v52  ;;  %v17_v52 = vld [vmem:[%s2312_s0 + $0x10] sm:$0xff] }
  0x29   :  { %1615 = vmatpush3.bf16.msra.mxu1 %v1709_v55  ;;  %1558 = vmatprep.subr.bf16.mxu0 %v1710_v56  ;;  %v22_v55 = vld [vmem:[%s2312_s0 + $0x38] sm:$0xff]  ;;  %v1340_v56 = vcombine.low %v63_v42, %v63_v42 }
  0x2a   :  { %1616 = vmatprep.subr.bf16.mxu1 %v1712_v0  ;;  %v1299_v59 = vcombine.high %v18_v54, %v22_v55 }
  0x2b   :  { %895 = vmatmul.mubr.bf16.gmra.mxu0 %v1300_v51  ;;  %v1343_v51 = vcombine.high %v64_v43, %v64_v43 }
  0x2c   :  { %983 = vmatmul.mubr.bf16.gmra.mxu1 %v1302_v53  ;;  %902 = vmatprep.mubr.bf16.mxu0 %v1309_v61  ;;  %v21_v53 = vld [vmem:[%s2312_s0 + $0x30] sm:$0xff] }
  0x2d   :  { %990 = vmatprep.mubr.bf16.mxu1 %v1311_v62  ;;  %1559 = vmatpush3.bf16.msra.mxu0 %v1711_v63  ;;  %v1297_v58 = vcombine.high %v17_v52, %v21_v53  ;;  %v29_v61 = vld [vmem:[%s2312_s0 + $0x70] sm:$0xff]  ;;  %v26_v62 = vld [vmem:[%s2312_s0 + $0x58] sm:$0xff]  ;;  %v1296_v0 = vcombine.low %v17_v52, %v21_v53 }
  0x2e   :  { %1617 = vmatpush3.bf16.msra.mxu1 %v1713_v1  ;;  %1560 = vmatprep.subr.bf16.mxu0 %v1714_v3  ;;  %v30_v63 = vld [vmem:[%s2312_s0 + $0x78] sm:$0xff]  ;;  %v1298_v1 = vcombine.low %v18_v54, %v22_v55  ;;  %v1304_v8 = vcombine.low %v25_v60, %v29_v61 }
  0x2f   :  { %1618 = vmatprep.subr.bf16.mxu1 %v1716_v12  ;;  %v1307_v3 = vcombine.high %v26_v62, %v30_v63  ;;  %v41_v12 = vld [vmem:[%s2312_s0 + $0xd0] sm:$0xff] }
  0x31   :  { %1561 = vmatpush3.bf16.msra.mxu0 %v1715_v5  ;;  %v37_v5 = vld [vmem:[%s2312_s0 + $0xb0] sm:$0xff] }
  0x32   :  { %1619 = vmatpush3.bf16.msra.mxu1 %v1717_v13  ;;  %1562 = vmatprep.subr.bf16.mxu0 %v1718_v14  ;;  %v45_v13 = vld [vmem:[%s2312_s0 + $0xf0] sm:$0xff]  ;;  %v42_v14 = vld [vmem:[%s2312_s0 + $0xd8] sm:$0xff] }
  0x33   :  { %903 = vmatmul.mubr.bf16.gmra.mxu0 %v1308_v2  ;;  %1620 = vmatprep.subr.bf16.mxu1 %v1720_v17  ;;  %v1305_v2 = vcombine.high %v25_v60, %v29_v61  ;;  %v1314_v17 = vcombine.low %v34_v6, %v38_v7  ;;  %v1321_v18 = vcombine.high %v41_v12, %v45_v13 }
  0x34   :  { %991 = vmatmul.mubr.bf16.gmra.mxu1 %v1310_v4  ;;  %910 = vmatprep.mubr.bf16.mxu0 %v1317_v9  ;;  %v33_v4 = vld [vmem:[%s2312_s0 + $0x90] sm:$0xff]  ;;  %v1306_v9 = vcombine.low %v26_v62, %v30_v63 }
  0x35   :  { %998 = vmatprep.mubr.bf16.mxu1 %v1319_v11  ;;  %1563 = vmatpush3.bf16.msra.mxu0 %v1719_v15  ;;  %v1313_v10 = vcombine.high %v33_v4, %v37_v5  ;;  %v1315_v11 = vcombine.high %v34_v6, %v38_v7  ;;  %v46_v15 = vld [vmem:[%s2312_s0 + $0xf8] sm:$0xff] }
  0x36   :  { %1621 = vmatpush3.bf16.msra.mxu1 %v1721_v25  ;;  %1564 = vmatprep.subr.bf16.mxu0 %v1722_v26  ;;  %v1323_v19 = vcombine.high %v42_v14, %v46_v15  ;;  %v1322_v25 = vcombine.low %v42_v14, %v46_v15 }
  0x37   :  { %1622 = vmatprep.subr.bf16.mxu1 %v1724_v28  ;;  %v57_v28 = vld [vmem:[%s2312_s0 + $0x150] sm:$0xff] }
  0x39   :  { %1565 = vmatpush3.bf16.msra.mxu0 %v1723_v27  ;;  %v1331_v27 = vcombine.high %v50_v22, %v54_v23 }
  0x3a   :  { %1623 = vmatpush3.bf16.msra.mxu1 %v1725_v29  ;;  %1566 = vmatprep.subr.bf16.mxu0 %v1726_v35  ;;  %v61_v29 = vld [vmem:[%s2312_s0 + $0x170] sm:$0xff]  ;;  %v1339_v35 = vcombine.high %v58_v30, %v62_v31 }
  0x3b   :  { %911 = vmatmul.mubr.bf16.gmra.mxu0 %v1316_v16  ;;  %1624 = vmatprep.subr.bf16.mxu1 %v1728_v40  ;;  %v1312_v16 = vcombine.low %v33_v4, %v37_v5 }
  0x3c   :  { %999 = vmatmul.mubr.bf16.gmra.mxu1 %v1318_v20  ;;  %918 = vmatprep.mubr.bf16.mxu0 %v1325_v21  ;;  %v49_v20 = vld [vmem:[%s2312_s0 + $0x110] sm:$0xff] }
  0x3d   :  { %1006 = vmatprep.mubr.bf16.mxu1 %v1327_v24  ;;  %1567 = vmatpush3.bf16.msra.mxu0 %v1727_v38  ;;  %v53_v21 = vld [vmem:[%s2312_s0 + $0x130] sm:$0xff]  ;;  %v1320_v24 = vcombine.low %v41_v12, %v45_v13  ;;  %v1336_v38 = vcombine.low %v57_v28, %v61_v29 }
  0x3e   :  { %1625 = vmatpush3.bf16.msra.mxu1 %v1729_v41  ;;  %1568 = vmatprep.subr.bf16.mxu0 %v1734_v44  ;;  %v1329_v26 = vcombine.high %v49_v20, %v53_v21  ;;  %v1328_v32 = vcombine.low %v49_v20, %v53_v21 }
  0x3f   :  { %1626 = vmatprep.subr.bf16.mxu1 %v1736_v46 }
  0x41   :  { %1569 = vmatpush3.bf16.msra.mxu0 %v1735_v45 }
  0x42   :  { %1627 = vmatpush3.bf16.msra.mxu1 %v1737_v48 }
  0x43   :  { %919 = vmatmul.mubr.bf16.gmra.mxu0 %v1324_v34  ;;  %v1337_v34 = vcombine.high %v57_v28, %v61_v29 }
  0x44   :  { %1007 = vmatmul.mubr.bf16.gmra.mxu1 %v1326_v36  ;;  %926 = vmatprep.mubr.bf16.mxu0 %v1333_v37  ;;  %v65_v36 = vld [vmem:[%s2312_s0 + $0x190] sm:$0x11]  ;;  %v66_v37 = vld [vmem:[%s2312_s0 + $0x198] sm:$0x11] }
  0x45   :  { %1014 = vmatprep.mubr.bf16.mxu1 %v1335_v39  ;;  %v1338_v39 = vcombine.low %v58_v30, %v62_v31  ;;  %v1345_v40 = vcombine.high %v65_v36, %v65_v36  ;;  %v1347_v41 = vcombine.high %v66_v37, %v66_v37  ;;  %v1344_v42 = vcombine.low %v65_v36, %v65_v36 }
  0x46   :  { %v1346_v43 = vcombine.low %v66_v37, %v66_v37 }
  0x4b   :  { %927 = vmatmul.mubr.bf16.gmra.mxu0 %v1332_v47 }
  0x4c   :  { %1015 = vmatmul.mubr.bf16.gmra.mxu1 %v1334_v49  ;;  %934 = vmatprep.mubr.bf16.mxu0 %v1341_v50 }
  0x4d   :  { %1022 = vmatprep.mubr.bf16.mxu1 %v1343_v51 }
  0x53   :  { %935 = vmatmul.mubr.bf16.gmra.mxu0 %v1340_v56 }
  0x54   :  { %1023 = vmatmul.mubr.bf16.gmra.mxu1 %v1342_v57  ;;  %1062 = vmatprep.mubr.bf16.mxu0 %v1297_v58 }
  0x55   :  { %1150 = vmatprep.mubr.bf16.mxu1 %v1299_v59 }
  0x5b   :  { %1063 = vmatmul.mubr.bf16.vlgmr.msra.gmra.mxu0 %v1296_v0 }
  0x5c   :  { %1151 = vmatmul.mubr.bf16.vlgmr.msra.gmra.mxu1 %v1298_v1  ;;  %1070 = vmatprep.mubr.bf16.mxu0 %v1305_v2 }
  0x5d   :  { %1158 = vmatprep.mubr.bf16.mxu1 %v1307_v3 }
  0x63   :  { %1071 = vmatmul.mubr.bf16.gmra.mxu0 %v1304_v8 }
  0x64   :  { %1159 = vmatmul.mubr.bf16.gmra.mxu1 %v1306_v9  ;;  %1078 = vmatprep.mubr.bf16.mxu0 %v1313_v10 }
  0x65   :  { %1166 = vmatprep.mubr.bf16.mxu1 %v1315_v11 }
  0x6b   :  { %1079 = vmatmul.mubr.bf16.gmra.mxu0 %v1312_v16 }
  0x6c   :  { %1167 = vmatmul.mubr.bf16.gmra.mxu1 %v1314_v17  ;;  %1086 = vmatprep.mubr.bf16.mxu0 %v1321_v18 }
  0x6d   :  { %1174 = vmatprep.mubr.bf16.mxu1 %v1323_v19 }
  0x73   :  { %1087 = vmatmul.mubr.bf16.gmra.mxu0 %v1320_v24 }
  0x74   :  { %1175 = vmatmul.mubr.bf16.gmra.mxu1 %v1322_v25  ;;  %1094 = vmatprep.mubr.bf16.mxu0 %v1329_v26 }
  0x75   :  { %1182 = vmatprep.mubr.bf16.mxu1 %v1331_v27 }
  0x7b   :  { %1095 = vmatmul.mubr.bf16.gmra.mxu0 %v1328_v32 }
  0x7c   :  { %1183 = vmatmul.mubr.bf16.gmra.mxu1 %v1330_v33  ;;  %1102 = vmatprep.mubr.bf16.mxu0 %v1337_v34  ;;  %v2201_v33 = vld [vmem:[%s2313_s2] ss:$0 sm:$0xff] }
  0x7d   :  { %1190 = vmatprep.mubr.bf16.mxu1 %v1339_v35 }
  0x83   :  { %1103 = vmatmul.mubr.bf16.gmra.mxu0 %v1336_v38 }
  0x84   :  { %1191 = vmatmul.mubr.bf16.gmra.mxu1 %v1338_v39  ;;  %1110 = vmatprep.mubr.bf16.mxu0 %v1345_v40 }
  0x85   :  { %1198 = vmatprep.mubr.bf16.mxu1 %v1347_v41 }
  0x8b   :  { %1111 = vmatmul.mubr.bf16.gmra.mxu0 %v1344_v42 }
  0x8c   :  { %1199 = vmatmul.mubr.bf16.gmra.mxu1 %v1346_v43 }
  0xe3   :  { %v1454_v44 = vpop.f32.mrf.mxu0 }
  0xe4   :  { %v1512_v45 = vpop.f32.mrf.mxu1 }
  0xe5   :  { %v1455_v46 = vpop.f32.mrf.mxu0 }
  0xe6   :  { %v1513_v47 = vpop.f32.mrf.mxu1  ;;  %v1456_v31 = vadd.f32 %v1455_v46, %v1454_v44 }
  0xe7   :  { %v1457_v48 = vpop.f32.mrf.mxu0  ;;  %v1514_v41 = vadd.f32 %v1513_v47, %v1512_v45 }
  0xe8   :  { %v2110_v49 = vpop.f32.mrf.mxu1  ;;  %v889_v37 = vadd.f32 %v1456_v31, %v2201_v33 }
  0xe9   :  { %v1458_v50 = vpop.f32.mrf.mxu0 }
  0xea   :  { %v2112_v51 = vpop.f32.mrf.mxu1  ;;  %v1459_v38 = vadd.f32 %v1458_v50, %v1457_v48  ;;  %v977_v44 = vadd.f32 %v1514_v41, %v889_v37 }
  0xeb   :  { %v1460_v52 = vpop.f32.mrf.mxu0 }
  0xec   :  { %v2114_v53 = vpop.f32.mrf.mxu1  ;;  %v892_v46 = vadd.f32 %v1459_v38, %v2201_v33 }
  0xed   :  { %v1461_v54 = vpop.f32.mrf.mxu0 }
  0xee   :  { %v2116_v55 = vpop.f32.mrf.mxu1  ;;  %v1462_v43 = vadd.f32 %v1461_v54, %v1460_v52 }
  0xef   :  { %v2118_v56 = vpop.f32.mrf.mxu0 }
  0xf0   :  { %v2120_v57 = vpop.f32.mrf.mxu1  ;;  %v897_v48 = vadd.f32 %v1462_v43, %v2201_v33 }
  0xf1   :  { %v2122_v58 = vpop.f32.mrf.mxu0 }
  0xf2   :  { %v2124_v59 = vpop.f32.mrf.mxu1  ;;  %v1465_v45 = vadd.f32 %v2122_v58, %v2118_v56 }
  0xf3   :  { %v2126_v60 = vpop.f32.mrf.mxu0 }
  0xf4   :  { %v2128_v61 = vpop.f32.mrf.mxu1  ;;  %v900_v41 = vadd.f32 %v1465_v45, %v2201_v33 }
  0xf5   :  { %v2130_v62 = vpop.f32.mrf.mxu0 }
  0xf6   :  { %v2132_v63 = vpop.f32.mrf.mxu1 }
  0xf7   :  { %v2134_v0 = vpop.f32.mrf.mxu0 }
  0xf8   :  { %v2136_v1 = vpop.f32.mrf.mxu1 }
  0xf9   :  { %v2138_v2 = vpop.f32.mrf.mxu0 }
  0xfa   :  { %v2140_v3 = vpop.f32.mrf.mxu1 }
  0xfb   :  { %v2142_v4 = vpop.f32.mrf.mxu0 }
  0xfc   :  { %v2144_v5 = vpop.f32.mrf.mxu1 }
  0xfd   :  { %v2146_v6 = vpop.f32.mrf.mxu0 }
  0xfe   :  { %v2148_v7 = vpop.f32.mrf.mxu1 }
  0xff   :  { %v2150_v8 = vpop.f32.mrf.mxu0 }
 0x100   :  { %v2152_v9 = vpop.f32.mrf.mxu1 }
 0x101   :  { %v2154_v10 = vpop.f32.mrf.mxu0 }
 0x102   :  { %v2156_v11 = vpop.f32.mrf.mxu1 }
 0x103   :  { %v2158_v12 = vpop.f32.mrf.mxu0 }
 0x104   :  { %v2160_v13 = vpop.f32.mrf.mxu1 }
 0x105   :  { %v2162_v14 = vpop.f32.mrf.mxu0 }
 0x106   :  { %v2164_v15 = vpop.f32.mrf.mxu1 }
 0x107   :  { %v2166_v16 = vpop.f32.mrf.mxu0 }
 0x108   :  { %v2168_v17 = vpop.f32.mrf.mxu1 }
 0x109   :  { %v2170_v18 = vpop.f32.mrf.mxu0 }
 0x10a   :  { %v2172_v19 = vpop.f32.mrf.mxu1 }
 0x10b   :  { %v2174_v20 = vpop.f32.mrf.mxu0 }
 0x10c   :  { %v2176_v21 = vpop.f32.mrf.mxu1 }
 0x10d   :  { %v2178_v22 = vpop.f32.mrf.mxu0 }
 0x10e   :  { %v2180_v23 = vpop.f32.mrf.mxu1 }
 0x10f   :  { %v2182_v24 = vpop.f32.mrf.mxu0 }
 0x110   :  { %v2184_v25 = vpop.f32.mrf.mxu1 }
 0x111   :  { %2315 = vst [vmem:[#allocation2_spill] sm:$0xff] %v2184_v25  ;;  %v2186_v26 = vpop.f32.mrf.mxu0 }
 0x112   :  { %v2188_v27 = vpop.f32.mrf.mxu1 }
 0x113   :  { %2316 = vst [vmem:[#allocation3_spill] sm:$0xff] %v2188_v27  ;;  %v2190_v28 = vpop.f32.mrf.mxu0 }
 0x114   :  { %v2192_v29 = vpop.f32.mrf.mxu1 }
 0x115   :  { %2317 = vst [vmem:[#allocation4_spill] sm:$0xff] %v2192_v29  ;;  %v2194_v30 = vpop.f32.mrf.mxu0 }
 0x116   :  { %2318 = vst [vmem:[#allocation5_spill] sm:$0xff] %v2194_v30  ;;  %v2196_v32 = vpop.f32.mrf.mxu1 }
 0x117   :  { %2319 = vst [vmem:[#allocation6_spill] sm:$0xff] %v2196_v32  ;;  %v1493_v34 = vpop.f32.mrf.mxu0 }
 0x118   :  { %v1551_v35 = vpop.f32.mrf.mxu1  ;;  %v1517_v34 = vadd.f32 %v2112_v51, %v2110_v49 }
 0x119   :  { %v1494_v36 = vpop.f32.mrf.mxu0 }
 0x11a   :  { %v1552_v39 = vpop.f32.mrf.mxu1  ;;  %v980_v31 = vadd.f32 %v1517_v34, %v892_v46  ;;  %v1471_v46 = vadd.f32 %v2138_v2, %v2134_v0 }
 0x11b   :  { %v1570_v40 = vpop.f32.mrf.mxu0 }
 0x11c   :  { %v1628_v42 = vpop.f32.mrf.mxu1  ;;  %v908_v2 = vadd.f32 %v1471_v46, %v2201_v33 }
 0x11d   :  { %v1571_v29 = vpop.f32.mrf.mxu0 }
 0x11e   :  { %v1572_v32 = vadd.f32 %v1571_v29, %v1570_v40  ;;  %v1629_v27 = vpop.f32.mrf.mxu1  ;;  %v1520_v29 = vadd.f32 %v2116_v55, %v2114_v53  ;;  %v1523_v53 = vadd.f32 %v2124_v59, %v2120_v57  ;;  %v1526_v59 = vadd.f32 %v2132_v63, %v2128_v61 }
 0x11f   :  { %v1573_v25 = vpop.f32.mrf.mxu0  ;;  %v1630_v36 = vadd.f32 %v1629_v27, %v1628_v42 }
 0x120   :  { %v1065_v35 = vadd.f32 %v1572_v32, %v977_v44  ;;  %v1631_v30 = vpop.f32.mrf.mxu1  ;;  %v985_v27 = vadd.f32 %v1520_v29, %v897_v48  ;;  %v1468_v32 = vadd.f32 %v2130_v62, %v2126_v60 }
 0x121   :  { %v1574_v50 = vpop.f32.mrf.mxu0 }
 0x122   :  { %v1153_v47 = vadd.f32 %v1630_v36, %v1065_v35  ;;  %v1575_v52 = vadd.f32 %v1574_v50, %v1573_v25  ;;  %v1632_v54 = vpop.f32.mrf.mxu1  ;;  %v905_v44 = vadd.f32 %v1468_v32, %v2201_v33  ;;  %v988_v35 = vadd.f32 %v1523_v53, %v900_v41 }
 0x123   :  { %v1576_v37 = vpop.f32.mrf.mxu0  ;;  %v1633_v49 = vadd.f32 %v1632_v54, %v1631_v30  ;;  %v1532_v53 = vadd.f32 %v2148_v7, %v2144_v5  ;;  %v1535_v7 = vadd.f32 %v2156_v11, %v2152_v9 }
 0x124   :  { %v1206_v38 = vmax.f32 %v1153_v47, 0.0  ;;  %v1068_v39 = vadd.f32 %v1575_v52, %v980_v31  ;;  %v1634_v51 = vpop.f32.mrf.mxu1  ;;  %v993_v0 = vadd.f32 %v1526_v59, %v905_v44 }
 0x125   :  { %v1577_v40 = vpop.f32.mrf.mxu0 }
 0x126   :  { %v1425_v56 = vpack.c.bf16 %v1206_v38, %v1206_v38  ;;  %v1156_v58 = vadd.f32 %v1633_v49, %v1068_v39  ;;  %v1578_v25 = vadd.f32 %v1577_v40, %v1576_v37  ;;  %v1635_v42 = vpop.f32.mrf.mxu1  ;;  %v1474_v37 = vadd.f32 %v2146_v6, %v2142_v4 }
 0x127   :  { %v1579_v43 = vpop.f32.mrf.mxu0  ;;  %v1636_v60 = vadd.f32 %v1635_v42, %v1634_v51  ;;  %v1529_v49 = vadd.f32 %v2140_v3, %v2136_v1  ;;  %v1477_v4 = vadd.f32 %v2154_v10, %v2150_v8 }
 0x128   :  { %1273 = vst.msk [vmem:[%s2314_s3] sm:$0xf] %vm1272_vm0, %v1425_v56  ;;  %v1207_v55 = vmax.f32 %v1156_v58, 0.0  ;;  %v1073_v30 = vadd.f32 %v1578_v25, %v985_v27  ;;  %v1637_v62 = vpop.f32.mrf.mxu1  ;;  %v913_v58 = vadd.f32 %v1474_v37, %v2201_v33 }
 0x129   :  { %v1580_v34 = vpop.f32.mrf.mxu0  ;;  %v996_v56 = vadd.f32 %v1529_v49, %v908_v2  ;;  %v916_v10 = vadd.f32 %v1477_v4, %v2201_v33  ;;  %v1489_v4 = vadd.f32 %v2186_v26, %v2182_v24 }
 0x12a   :  { %v1426_v36 = vpack.c.bf16 %v1207_v55, %v1207_v55  ;;  %v1161_v48 = vadd.f32 %v1636_v60, %v1073_v30  ;;  %v1581_v50 = vadd.f32 %v1580_v34, %v1579_v43  ;;  %v1638_v57 = vpop.f32.mrf.mxu1  ;;  %v1001_v46 = vadd.f32 %v1532_v53, %v913_v58 }
 0x12b   :  { %v1582_v31 = vpop.f32.mrf.mxu0  ;;  %v1639_v52 = vadd.f32 %v1638_v57, %v1637_v62  ;;  %v1480_v62 = vadd.f32 %v2162_v14, %v2158_v12  ;;  %v1004_v12 = vadd.f32 %v1535_v7, %v916_v10  ;;  %v932_v26 = vadd.f32 %v1489_v4, %v2201_v33 }
 0x12c   :  { %1274 = vst.msk [vmem:[%s2314_s3 + $0x4] sm:$0xf] %vm1272_vm0, %v1426_v36  ;;  %v1208_v45 = vmax.f32 %v1161_v48, 0.0  ;;  %v1076_v47 = vadd.f32 %v1581_v50, %v988_v35  ;;  %v1640_v54 = vpop.f32.mrf.mxu1 }
 0x12d   :  { %v1583_v29 = vpop.f32.mrf.mxu0  ;;  %v921_v14 = vadd.f32 %v1480_v62, %v2201_v33 }
 0x12e   :  { %v1427_v38 = vpack.c.bf16 %v1208_v45, %v1208_v45  ;;  %v1164_v39 = vadd.f32 %v1639_v52, %v1076_v47  ;;  %v1584_v61 = vadd.f32 %v1583_v29, %v1582_v31  ;;  %v1641_v63 = vpop.f32.mrf.mxu1  ;;  %v1483_v47 = vadd.f32 %v2170_v18, %v2166_v16 }
 0x12f   :  { %v1585_v51 = vpop.f32.mrf.mxu0  ;;  %v1642_v40 = vadd.f32 %v1641_v63, %v1640_v54  ;;  %v1486_v16 = vadd.f32 %v2178_v22, %v2174_v20 }
 0x130   :  { %1275 = vst.msk [vmem:[%s2314_s3 + $0x8] sm:$0xf] %vm1272_vm0, %v1427_v38  ;;  %v1209_v27 = vmax.f32 %v1164_v39, 0.0  ;;  %v1081_v32 = vadd.f32 %v1584_v61, %v993_v0  ;;  %v1643_v41 = vpop.f32.mrf.mxu1  ;;  %v1538_v0 = vadd.f32 %v2164_v15, %v2160_v13  ;;  %v924_v63 = vadd.f32 %v1483_v47, %v2201_v33 }
 0x131   :  { %v1586_v6 = vpop.f32.mrf.mxu0  ;;  %v929_v22 = vadd.f32 %v1486_v16, %v2201_v33 }
 0x132   :  { %v1428_v25 = vpack.c.bf16 %v1209_v27, %v1209_v27  ;;  %v1169_v42 = vadd.f32 %v1642_v40, %v1081_v32  ;;  %v1587_v1 = vadd.f32 %v1586_v6, %v1585_v51  ;;  %v1644_v3 = vpop.f32.mrf.mxu1  ;;  %v1009_v61 = vadd.f32 %v1538_v0, %v921_v14 }
 0x133   :  { %v1588_v43 = vpop.f32.mrf.mxu0  ;;  %v1645_v60 = vadd.f32 %v1644_v3, %v1643_v41  ;;  %v1541_v32 = vadd.f32 %v2172_v19, %v2168_v17  ;;  %v1544_v19 = vadd.f32 %v2180_v23, %v2176_v21 }
 0x134   :  { %1276 = vst.msk [vmem:[%s2314_s3 + $0xc] sm:$0xf] %vm1272_vm0, %v1428_v25  ;;  %v1210_v55 = vmax.f32 %v1169_v42, 0.0  ;;  %v1084_v30 = vadd.f32 %v1587_v1, %v996_v56  ;;  %v1646_v8 = vpop.f32.mrf.mxu1 }
 0x135   :  { %v1589_v44 = vpop.f32.mrf.mxu0  ;;  %v1012_v58 = vadd.f32 %v1541_v32, %v924_v63  ;;  %v1017_v24 = vadd.f32 %v1544_v19, %v929_v22 }
 0x136   :  { %v1429_v34 = vpack.c.bf16 %v1210_v55, %v1210_v55  ;;  %v1172_v35 = vadd.f32 %v1645_v60, %v1084_v30  ;;  %v1590_v36 = vadd.f32 %v1589_v44, %v1588_v43  ;;  %v1647_v5 = vpop.f32.mrf.mxu1 }
 0x137   :  { %v1591_v48 = vpop.f32.mrf.mxu0  ;;  %v1648_v59 = vadd.f32 %v1647_v5, %v1646_v8  ;;  %v2320_v8 = vld [vmem:[#allocation5_spill] sm:$0xff] }
 0x138   :  { %1277 = vst.msk [vmem:[%s2314_s3 + $0x10] sm:$0xf] %vm1272_vm0, %v1429_v34  ;;  %v1211_v50 = vmax.f32 %v1172_v35, 0.0  ;;  %v1089_v57 = vadd.f32 %v1590_v36, %v1001_v46  ;;  %v1649_v31 = vpop.f32.mrf.mxu1  ;;  %v1492_v10 = vadd.f32 %v2320_v8, %v2190_v28  ;;  %v2321_v46 = vld [vmem:[#allocation2_spill] sm:$0xff]  ;;  %v2322_v34 = vld [vmem:[#allocation3_spill] sm:$0xff] }
 0x139   :  { %v1592_v45 = vpop.f32.mrf.mxu0  ;;  %v1547_v35 = vadd.f32 %v2322_v34, %v2321_v46 }
 0x13a   :  { %v1430_v52 = vpack.c.bf16 %v1211_v50, %v1211_v50  ;;  %v1177_v54 = vadd.f32 %v1648_v59, %v1089_v57  ;;  %v1593_v9 = vadd.f32 %v1592_v45, %v1591_v48  ;;  %v1650_v11 = vpop.f32.mrf.mxu1  ;;  %v937_v28 = vadd.f32 %v1492_v10, %v2201_v33 }
 0x13b   :  { %v1594_v2 = vpop.f32.mrf.mxu0  ;;  %v1651_v38 = vadd.f32 %v1650_v11, %v1649_v31  ;;  %v1020_v57 = vadd.f32 %v1547_v35, %v932_v26 }
 0x13c   :  { %1278 = vst.msk [vmem:[%s2314_s3 + $0x14] sm:$0xf] %vm1272_vm0, %v1430_v52  ;;  %v1212_v29 = vmax.f32 %v1177_v54, 0.0  ;;  %v1092_v37 = vadd.f32 %v1593_v9, %v1004_v12  ;;  %v1652_v39 = vpop.f32.mrf.mxu1  ;;  %v2323_v52 = vld [vmem:[#allocation4_spill] sm:$0xff]  ;;  %v2324_v54 = vld [vmem:[#allocation6_spill] sm:$0xff] }
 0x13d   :  { %v1595_v18 = vpop.f32.mrf.mxu0  ;;  %v1550_v9 = vadd.f32 %v2324_v54, %v2323_v52 }
 0x13e   :  { %v1431_v49 = vpack.c.bf16 %v1212_v29, %v1212_v29  ;;  %v1180_v51 = vadd.f32 %v1651_v38, %v1092_v37  ;;  %v1596_v13 = vadd.f32 %v1595_v18, %v1594_v2  ;;  %v1653_v15 = vpop.f32.mrf.mxu1 }
 0x13f   :  { %v1597_v27 = vpop.f32.mrf.mxu0  ;;  %v1654_v56 = vadd.f32 %v1653_v15, %v1652_v39  ;;  %v1025_v38 = vadd.f32 %v1550_v9, %v937_v28 }
 0x140   :  { %1279 = vst.msk [vmem:[%s2314_s3 + $0x18] sm:$0xf] %vm1272_vm0, %v1431_v49  ;;  %v1213_v40 = vmax.f32 %v1180_v51, 0.0  ;;  %v1097_v41 = vadd.f32 %v1596_v13, %v1009_v61  ;;  %v1655_v20 = vpop.f32.mrf.mxu1 }
 0x141   :  { %v1598_v6 = vpop.f32.mrf.mxu0 }
 0x142   :  { %v1432_v25 = vpack.c.bf16 %v1213_v40, %v1213_v40  ;;  %v1185_v42 = vadd.f32 %v1654_v56, %v1097_v41  ;;  %v1599_v1 = vadd.f32 %v1598_v6, %v1597_v27  ;;  %v1656_v17 = vpop.f32.mrf.mxu1 }
 0x143   :  { %v1600_v3 = vpop.f32.mrf.mxu0  ;;  %v1657_v55 = vadd.f32 %v1656_v17, %v1655_v20 }
 0x144   :  { %1280 = vst.msk [vmem:[%s2314_s3 + $0x1c] sm:$0xf] %vm1272_vm0, %v1432_v25  ;;  %v1214_v43 = vmax.f32 %v1185_v42, 0.0  ;;  %v1100_v53 = vadd.f32 %v1599_v1, %v1012_v58  ;;  %v1658_v30 = vpop.f32.mrf.mxu1 }
 0x145   :  { %v1601_v60 = vpop.f32.mrf.mxu0 }
 0x146   :  { %v1433_v62 = vpack.c.bf16 %v1214_v43, %v1214_v43  ;;  %v1188_v44 = vadd.f32 %v1657_v55, %v1100_v53  ;;  %v1602_v21 = vadd.f32 %v1601_v60, %v1600_v3  ;;  %v1659_v23 = vpop.f32.mrf.mxu1 }
 0x147   :  { %v1603_v36 = vpop.f32.mrf.mxu0  ;;  %v1660_v48 = vadd.f32 %v1659_v23, %v1658_v30 }
 0x148   :  { %1281 = vst.msk [vmem:[%s2314_s3 + $0x20] sm:$0xf] %vm1272_vm0, %v1433_v62  ;;  %v1215_v5 = vmax.f32 %v1188_v44, 0.0  ;;  %v1105_v7 = vadd.f32 %v1602_v21, %v1017_v24  ;;  %v1661_v50 = vpop.f32.mrf.mxu1 }
 0x149   :  { %v1604_v59 = vpop.f32.mrf.mxu0 }
 0x14a   :  { %v1434_v31 = vpack.c.bf16 %v1215_v5, %v1215_v5  ;;  %v1193_v12 = vadd.f32 %v1660_v48, %v1105_v7  ;;  %v1605_v14 = vadd.f32 %v1604_v59, %v1603_v36  ;;  %v1662_v45 = vpop.f32.mrf.mxu1 }
 0x14b   :  { %v1606_v47 = vpop.f32.mrf.mxu0  ;;  %v1663_v2 = vadd.f32 %v1662_v45, %v1661_v50 }
 0x14c   :  { %1282 = vst.msk [vmem:[%s2314_s3 + $0x24] sm:$0xf] %vm1272_vm0, %v1434_v31  ;;  %v1216_v11 = vmax.f32 %v1193_v12, 0.0  ;;  %v1108_v0 = vadd.f32 %v1605_v14, %v1020_v57  ;;  %v1664_v29 = vpop.f32.mrf.mxu1 }
 0x14d   :  { %v1607_v37 = vpop.f32.mrf.mxu0 }
 0x14e   :  { %v1435_v33 = vpack.c.bf16 %v1216_v11, %v1216_v11  ;;  %v1196_v39 = vadd.f32 %v1663_v2, %v1108_v0  ;;  %v1608_v61 = vadd.f32 %v1607_v37, %v1606_v47  ;;  %v1665_v16 = vpop.f32.mrf.mxu1 }
 0x14f   :  { %v1609_v18 = vpop.f32.mrf.mxu0  ;;  %v1666_v51 = vadd.f32 %v1665_v16, %v1664_v29 }
 0x150   :  { %1283 = vst.msk [vmem:[%s2314_s3 + $0x28] sm:$0xf] %vm1272_vm0, %v1435_v33  ;;  %v1217_v63 = vmax.f32 %v1196_v39, 0.0  ;;  %v1113_v49 = vadd.f32 %v1608_v61, %v1025_v38  ;;  %v1667_v13 = vpop.f32.mrf.mxu1 }
 0x151   :  { %v1610_v15 = vpop.f32.mrf.mxu0 }
 0x152   :  { %v1436_v27 = vpack.c.bf16 %v1217_v63, %v1217_v63  ;;  %v1201_v32 = vadd.f32 %v1666_v51, %v1113_v49  ;;  %v1668_v40 = vpop.f32.mrf.mxu1 }
 0x154   :  { %1284 = vst.msk [vmem:[%s2314_s3 + $0x2c] sm:$0xf] %vm1272_vm0, %v1436_v27  ;;  %v1218_v41 = vmax.f32 %v1201_v32, 0.0 }
 0x156   :  { %v1437_v56 = vpack.c.bf16 %v1218_v41, %v1218_v41 }
 0x158   :  { %1286 = vst.msk [vmem:[%s2314_s3 + $0x30] sm:$0x1] %vm1285_vm1, %v1437_v56 }

// kernel: vae_forward.10
= control target key start
LH: loop header
LB: loop body
LE: loop exit
PB: predicated region body
PF: predicated region fallthrough
CT: control target
= control target key end

     0   :  { %s737_s12 = smov 0   ;;  %s859_s0 = inlined_call_operand.vmem [shape: bf16[4,98,128], index: 0, kind: input, shape index: {}]   ;;  %s860_s1 = inlined_call_operand.vmem [shape: bf16[4,128,32], index: 1, kind: input, shape index: {}]   ;;  %s861_s2 = inlined_call_operand.vmem [shape: f32[1,32], index: 2, kind: input, shape index: {}]   ;;  %s862_s3 = inlined_call_operand.vmem [shape: bf16[4,98,32], index: 3, kind: output, shape index: {}]  }
   0x1 LB: > { %s552_s13 = sadd.s32 4294967295, %s713_s12   ;;  %p556_p0 = scmp.ge.s32.totalorder %s713_s12, 1  ;;  %s713_s12 = sphi %s737_s12, %s13_s12  }
   0x2   : > { %p147_p1 = scmp.lt.s32.totalorder %s713_s12, 5 }
   0x4   : > { %p148_p2 = pnand %p556_p0, %p147_p1 }
   0x5   : > { %p176_p3 = scmp.lt.s32.totalorder (!%p148_p2), %s552_s13, 3 }
   0x6   : > { %151 = sbr.rel (%p148_p2) target bundleno = 274 (0x112), region = 32 }
   0xb   : > { %v715_v0 = vmov 0.0   ;;  %s864_s13 = smov (!%p176_p3, %s552_s13), 3  ;;  %vm716_vm0 = vmmov 0   ;;  %v809_v16 = vld [vmem:[%s861_s2] ss:$0 sm:$0xff]  ;;  %vm470_vm1 = vcmask 257024  }
   0xc   : > { %621 = vmatprep.subr.bf16.mxu0 %v715_v0  ;;  %665 = vmatprep.subr.bf16.mxu1 %v715_v0  ;;  %s592_s14 = sshll.u32 %s864_s13, 6  ;;  %s681_s18 = smul.u32 52, %s864_s13  ;;  %vm483_vm2 = vcmask 253952  }
   0xd   : > { %637 = vmatprep.mubr.msk.bf16.mxu0 %vm716_vm0, %v715_v0  ;;  %653 = vmatprep.mubr.msk.bf16.mxu1 %vm716_vm0, %v715_v0  ;;  %s757_s17 = scalar_lea.vmem %s860_s1, %s592_s14 }
   0xe   : > { %v692_v1 = vld [vmem:[%s757_s17 + $0x38] sm:$0xff]   ;;  %v693_v2 = vld [vmem:[%s757_s17 + $0x30] sm:$0xff]   ;;  %v694_v3 = vld [vmem:[%s757_s17 + $0x28] sm:$0xff]   ;;  %s772_s21 = scalar_lea.vmem %s859_s0, %s681_s18  ;;  %s818_s26 = scalar_lea.vmem %s862_s3, %s681_s18 }
   0xf   : > { %622 = vmatpush3.bf16.msra.mxu0 %v692_v1  ;;  %673 = vmatpush3.bf16.msra.mxu1 %v692_v1  ;;  %v695_v4 = vld [vmem:[%s757_s17 + $0x20] sm:$0xff]   ;;  %v696_v5 = vld [vmem:[%s757_s17 + $0x18] sm:$0xff]   ;;  %v697_v6 = vld [vmem:[%s757_s17 + $0x10] sm:$0xff]  }
  0x10   : > { %623 = vmatprep.subr.bf16.mxu0 %v715_v0  ;;  %666 = vmatprep.subr.bf16.mxu1 %v715_v0  ;;  %v698_v7 = vld [vmem:[%s757_s17 + $0x8] sm:$0xff]   ;;  %v699_v8 = vld [vmem:[%s757_s17] sm:$0xff]   ;;  %v704_v13 = vld [vmem:[%s772_s21 + $0x10] sm:$0xff]  }
  0x11   : > { %v700_v9 = vld [vmem:[%s772_s21] sm:$0xff]   ;;  %v702_v11 = vld [vmem:[%s772_s21 + $0x8] sm:$0xff]   ;;  %v705_v14 = vld [vmem:[%s772_s21 + $0x30] ss:$0 sps:$4 sm:$0x11]  }
  0x12   : > { %v701_v10 = vld [vmem:[%s772_s21 + $0x20] sm:$0xff]   ;;  %v703_v12 = vld [vmem:[%s772_s21 + $0x28] sm:$0xff]   ;;  %v706_v15 = vld [vmem:[%s772_s21 + $0x18] sm:$0xff]  }
  0x13   : > { %624 = vmatpush3.bf16.msra.mxu0 %v693_v2  ;;  %674 = vmatpush3.bf16.msra.mxu1 %v693_v2 }
  0x14   : > { %625 = vmatprep.subr.bf16.mxu0 %v715_v0  ;;  %667 = vmatprep.subr.bf16.mxu1 %v715_v0 }
  0x17   : > { %626 = vmatpush3.bf16.msra.mxu0 %v694_v3  ;;  %675 = vmatpush3.bf16.msra.mxu1 %v694_v3 }
  0x18   : > { %627 = vmatprep.subr.bf16.mxu0 %v715_v0  ;;  %668 = vmatprep.subr.bf16.mxu1 %v715_v0 }
  0x1b   : > { %628 = vmatpush3.bf16.msra.mxu0 %v695_v4  ;;  %676 = vmatpush3.bf16.msra.mxu1 %v695_v4 }
  0x1c   : > { %629 = vmatprep.subr.bf16.mxu0 %v715_v0  ;;  %669 = vmatprep.subr.bf16.mxu1 %v715_v0 }
  0x1f   : > { %630 = vmatpush3.bf16.msra.mxu0 %v696_v5  ;;  %677 = vmatpush3.bf16.msra.mxu1 %v696_v5 }
  0x20   : > { %631 = vmatprep.subr.bf16.mxu0 %v715_v0  ;;  %670 = vmatprep.subr.bf16.mxu1 %v715_v0 }
  0x23   : > { %632 = vmatpush3.bf16.msra.mxu0 %v697_v6  ;;  %678 = vmatpush3.bf16.msra.mxu1 %v697_v6 }
  0x24   : > { %633 = vmatprep.subr.bf16.mxu0 %v715_v0  ;;  %671 = vmatprep.subr.bf16.mxu1 %v715_v0 }
  0x27   : > { %634 = vmatpush3.bf16.msra.mxu0 %v698_v7  ;;  %679 = vmatpush3.bf16.msra.mxu1 %v698_v7 }
  0x28   : > { %635 = vmatprep.subr.bf16.mxu0 %v715_v0  ;;  %672 = vmatprep.subr.bf16.mxu1 %v715_v0 }
  0x2b   : > { %636 = vmatpush3.bf16.msra.mxu0 %v699_v8  ;;  %680 = vmatpush3.bf16.msra.mxu1 %v699_v8 }
  0x2e   : > { %638 = vmatmul.mubr.bf16.vlgmr.msra.gmra.mxu0 %v700_v9  ;;  %654 = vmatmul.mubr.bf16.vlgmr.msra.gmra.mxu1 %v701_v10 }
  0x2f   : > { %641 = vmatprep.mubr.msk.bf16.mxu0 %vm716_vm0, %v715_v0  ;;  %657 = vmatprep.mubr.msk.bf16.mxu1 %vm716_vm0, %v715_v0 }
  0x36   : > { %642 = vmatmul.mubr.bf16.gmra.mxu0 %v702_v11  ;;  %658 = vmatmul.mubr.bf16.gmra.mxu1 %v703_v12 }
  0x37   : > { %645 = vmatprep.mubr.msk.bf16.mxu0 %vm716_vm0, %v715_v0  ;;  %661 = vmatprep.mubr.msk.bf16.mxu1 %vm716_vm0, %v715_v0 }
  0x3e   : > { %646 = vmatmul.mubr.bf16.gmra.mxu0 %v704_v13  ;;  %662 = vmatmul.mubr.bf16.gmra.mxu1 %v705_v14 }
  0x3f   : > { %649 = vmatprep.mubr.msk.bf16.mxu0 %vm716_vm0, %v715_v0 }
  0x46   : > { %650 = vmatmul.mubr.bf16.gmra.mxu0 %v706_v15 }
  0xee   : > { %v350_v17 = vpop.f32.mrf.mxu0  ;;  %v382_v18 = vpop.f32.mrf.mxu1 }
  0xef   : > { %v351_v19 = vadd.f32 %v809_v16, %v350_v17  ;;  %v383_v20 = vadd.f32 %v809_v16, %v382_v18 }
  0xf0   : > { %v639_v21 = vpop.f32.mrf.mxu0  ;;  %v655_v22 = vpop.f32.mrf.mxu1 }
  0xf1   : > { %v404_v23 = vmax.f32 %v351_v19, 0.0  ;;  %v412_v24 = vmax.f32 %v383_v20, 0.0 }
  0xf2   : > { %v353_v25 = vpop.f32.mrf.mxu0  ;;  %v385_v26 = vpop.f32.mrf.mxu1 }
  0xf3   : > { %v593_v27 = vpack.c.bf16 %v404_v23, %v404_v23  ;;  %v354_v28 = vadd.f32 %v809_v16, %v353_v25  ;;  %v601_v29 = vpack.c.bf16 %v412_v24, %v412_v24  ;;  %v386_v30 = vadd.f32 %v809_v16, %v385_v26 }
  0xf4   : > { %v640_v31 = vpop.f32.mrf.mxu0  ;;  %v656_v32 = vpop.f32.mrf.mxu1 }
  0xf5   : > { %471 = vst.msk [vmem:[%s818_s26] sm:$0xf] %vm470_vm1, %v593_v27  ;;  %v405_v33 = vmax.f32 %v354_v28, 0.0  ;;  %479 = vst.msk [vmem:[%s818_s26 + $0x20] sm:$0xf] %vm470_vm1, %v601_v29  ;;  %v413_v34 = vmax.f32 %v386_v30, 0.0 }
  0xf6   : > { %v358_v35 = vpop.f32.mrf.mxu0  ;;  %v390_v36 = vpop.f32.mrf.mxu1 }
  0xf7   : > { %v594_v37 = vpack.c.bf16 %v405_v33, %v405_v33  ;;  %v359_v38 = vadd.f32 %v809_v16, %v358_v35  ;;  %v602_v39 = vpack.c.bf16 %v413_v34, %v413_v34  ;;  %v391_v40 = vadd.f32 %v809_v16, %v390_v36 }
  0xf8   : > { %v643_v41 = vpop.f32.mrf.mxu0  ;;  %v659_v42 = vpop.f32.mrf.mxu1 }
  0xf9   : > { %472 = vst.msk [vmem:[%s818_s26 + $0x4] sm:$0xf] %vm470_vm1, %v594_v37  ;;  %v406_v43 = vmax.f32 %v359_v38, 0.0  ;;  %480 = vst.msk [vmem:[%s818_s26 + $0x24] sm:$0xf] %vm470_vm1, %v602_v39  ;;  %v414_v44 = vmax.f32 %v391_v40, 0.0 }
  0xfa   : > { %v361_v45 = vpop.f32.mrf.mxu0  ;;  %v393_v46 = vpop.f32.mrf.mxu1 }
  0xfb   : > { %v595_v47 = vpack.c.bf16 %v406_v43, %v406_v43  ;;  %v362_v48 = vadd.f32 %v809_v16, %v361_v45  ;;  %v603_v49 = vpack.c.bf16 %v414_v44, %v414_v44  ;;  %v394_v50 = vadd.f32 %v809_v16, %v393_v46 }
  0xfc   : > { %v644_v51 = vpop.f32.mrf.mxu0  ;;  %v660_v52 = vpop.f32.mrf.mxu1 }
  0xfd   : > { %473 = vst.msk [vmem:[%s818_s26 + $0x8] sm:$0xf] %vm470_vm1, %v595_v47  ;;  %v407_v53 = vmax.f32 %v362_v48, 0.0  ;;  %481 = vst.msk [vmem:[%s818_s26 + $0x28] sm:$0xf] %vm470_vm1, %v603_v49  ;;  %v415_v54 = vmax.f32 %v394_v50, 0.0 }
  0xfe   : > { %v366_v55 = vpop.f32.mrf.mxu0  ;;  %v398_v56 = vpop.f32.mrf.mxu1 }
  0xff   : > { %v596_v57 = vpack.c.bf16 %v407_v53, %v407_v53  ;;  %v367_v58 = vadd.f32 %v809_v16, %v366_v55  ;;  %v604_v59 = vpack.c.bf16 %v415_v54, %v415_v54  ;;  %v399_v60 = vadd.f32 %v809_v16, %v398_v56 }
 0x100   : > { %v647_v61 = vpop.f32.mrf.mxu0  ;;  %v663_v62 = vpop.f32.mrf.mxu1 }
 0x101   : > { %474 = vst.msk [vmem:[%s818_s26 + $0xc] sm:$0xf] %vm470_vm1, %v596_v57  ;;  %v408_v63 = vmax.f32 %v367_v58, 0.0  ;;  %482 = vst.msk [vmem:[%s818_s26 + $0x2c] sm:$0xf] %vm470_vm1, %v604_v59  ;;  %v416_v0 = vmax.f32 %v399_v60, 0.0 }
 0x102   : > { %v369_v1 = vpop.f32.mrf.mxu0  ;;  %v401_v2 = vpop.f32.mrf.mxu1 }
 0x103   : > { %v597_v3 = vpack.c.bf16 %v408_v63, %v408_v63  ;;  %v370_v4 = vadd.f32 %v809_v16, %v369_v1  ;;  %v605_v5 = vpack.c.bf16 %v416_v0, %v416_v0 }
 0x104   : > { %v648_v6 = vpop.f32.mrf.mxu0  ;;  %v664_v7 = vpop.f32.mrf.mxu1 }
 0x105   : > { %475 = vst.msk [vmem:[%s818_s26 + $0x10] sm:$0xf] %vm470_vm1, %v597_v3  ;;  %v409_v8 = vmax.f32 %v370_v4, 0.0 }
 0x106   : > { %484 = vst.msk [vmem:[%s818_s26 + $0x30] sm:$0x1] %vm483_vm2, %v605_v5  ;;  %v374_v9 = vpop.f32.mrf.mxu0 }
 0x107   : > { %v598_v10 = vpack.c.bf16 %v409_v8, %v409_v8  ;;  %v375_v11 = vadd.f32 %v809_v16, %v374_v9 }
 0x108   : > { %v651_v12 = vpop.f32.mrf.mxu0 }
 0x109   : > { %476 = vst.msk [vmem:[%s818_s26 + $0x14] sm:$0xf] %vm470_vm1, %v598_v10  ;;  %v410_v13 = vmax.f32 %v375_v11, 0.0 }
 0x10a   : > { %v377_v14 = vpop.f32.mrf.mxu0 }
 0x10b   : > { %v599_v15 = vpack.c.bf16 %v410_v13, %v410_v13  ;;  %v378_v17 = vadd.f32 %v809_v16, %v377_v14 }
 0x10c   : > { %v652_v18 = vpop.f32.mrf.mxu0 }
 0x10d   : > { %477 = vst.msk [vmem:[%s818_s26 + $0x18] sm:$0xf] %vm470_vm1, %v599_v15  ;;  %v411_v19 = vmax.f32 %v378_v17, 0.0 }
 0x10f   : > { %v600_v20 = vpack.c.bf16 %v411_v19, %v411_v19 }
 0x111   : > { %478 = vst.msk [vmem:[%s818_s26 + $0x1c] sm:$0xf] %vm470_vm1, %v600_v20 }
 0x112 PF: > { %s13_s12 = sadd.s32 1, %s713_s12  }
 0x113   : > { %p10_p4 = scmp.ge.s32.totalorder %s13_s12, 6  }
 0x115   :  { %12 = sbr.rel (!%p10_p4) target bundleno = 1 (0x1), region = 65 }

// kernel: vae_forward.11
= control target key start
LH: loop header
LB: loop body
LE: loop exit
PB: predicated region body
PF: predicated region fallthrough
CT: control target
= control target key end

     0   :  { %s1640_s14 = smov 0   ;;  %s1917_s0 = inlined_call_operand.vmem [shape: bf16[4,392,128], index: 0, kind: input, shape index: {}]   ;;  %s1918_s1 = inlined_call_operand.vmem [shape: bf16[4,128,1], index: 1, kind: input, shape index: {}]   ;;  %s1919_s2 = inlined_call_operand.<no memory space> [shape: f32[1,1], index: 2, kind: input, shape index: {}]   ;;  %s1920_s3 = inlined_call_operand.vmem [shape: f32[4,392,1], index: 3, kind: output, shape index: {}]  }
   0x1   :  { %v8_v0 = vstv %s1919_s2 }
   0x2   :  { %9 = vst [vmem:[#allocation2] sm:$0x1] %v8_v0 }
   0x3 LB: > { %s1154_s15 = sadd.s32 4294967295, %s1613_s14   ;;  %p1158_p0 = scmp.ge.s32.totalorder %s1613_s14, 1  ;;  %s1613_s14 = sphi %s1640_s14, %s15_s14  }
   0x4   : > { %p149_p1 = scmp.lt.s32.totalorder %s1613_s14, 5 }
   0x6   : > { %p150_p2 = pnand %p1158_p0, %p149_p1 }
   0x7   : > { %p178_p3 = scmp.lt.s32.totalorder (!%p150_p2), %s1154_s15, 3 }
   0x8   : > { %153 = sbr.rel (%p150_p2) target bundleno = 383 (0x17f), region = 32 }
   0xd   : > { %v1615_v1 = vmov 0.0   ;;  %s1922_s15 = smov (!%p178_p3, %s1154_s15), 3  ;;  %vm1616_vm0 = vmmov 0   ;;  %v1761_v35 = vld [vmem:[#allocation2] ss:$0 sm:$0xff]  ;;  %vm1037_vm1 = vcmask 7168  }
   0xe   : > { %1233 = vmatprep.subr.bf16.mxu0 %v1615_v1  ;;  %1349 = vmatprep.subr.bf16.mxu1 %v1615_v1  ;;  %s1199_s2 = sshll.u32 %s1922_s15, 6  ;;  %s1365_s19 = smul.u32 196, %s1922_s15 }
   0xf   : > { %1249 = vmatprep.mubr.msk.bf16.mxu0 %vm1616_vm0, %v1615_v1  ;;  %1301 = vmatprep.mubr.msk.bf16.mxu1 %vm1616_vm0, %v1615_v1  ;;  %s1660_s18 = scalar_lea.vmem %s1918_s1, %s1199_s2  ;;  %s1366_s23 = smul.u32 392, %s1922_s15 }
  0x10   : > { %v1377_v2 = vld [vmem:[%s1660_s18 + $0x38] sm:$0xff]   ;;  %v1378_v3 = vld [vmem:[%s1660_s18 + $0x30] sm:$0xff]   ;;  %v1379_v4 = vld [vmem:[%s1660_s18 + $0x28] sm:$0xff]   ;;  %s1671_s22 = scalar_lea.vmem %s1917_s0, %s1365_s19 }
  0x11   : > { %1234 = vmatpush3.bf16.msra.mxu0 %v1377_v2  ;;  %1357 = vmatpush3.bf16.msra.mxu1 %v1377_v2  ;;  %v1380_v5 = vld [vmem:[%s1660_s18 + $0x20] sm:$0xff]   ;;  %v1381_v6 = vld [vmem:[%s1660_s18 + $0x18] sm:$0xff]   ;;  %v1382_v7 = vld [vmem:[%s1660_s18 + $0x10] sm:$0xff]   ;;  %s1786_s26 = scalar_lea.vmem %s1920_s3, %s1366_s23 }
  0x12   : > { %1235 = vmatprep.subr.bf16.mxu0 %v1615_v1  ;;  %1350 = vmatprep.subr.bf16.mxu1 %v1615_v1  ;;  %v1383_v8 = vld [vmem:[%s1660_s18 + $0x8] sm:$0xff]   ;;  %v1384_v9 = vld [vmem:[%s1660_s18] sm:$0xff]   ;;  %v1388_v13 = vld [vmem:[%s1671_s22 + $0x70] sm:$0xff]  }
  0x13   : > { %v1385_v10 = vld [vmem:[%s1671_s22] sm:$0xff]   ;;  %v1386_v11 = vld [vmem:[%s1671_s22 + $0x68] sm:$0xff]   ;;  %v1389_v14 = vld [vmem:[%s1671_s22 + $0x10] sm:$0xff]  }
  0x14   : > { %v1387_v12 = vld [vmem:[%s1671_s22 + $0x8] sm:$0xff]   ;;  %v1390_v15 = vld [vmem:[%s1671_s22 + $0x78] sm:$0xff]   ;;  %v1392_v17 = vld [vmem:[%s1671_s22 + $0x80] sm:$0xff]  }
  0x15   : > { %1236 = vmatpush3.bf16.msra.mxu0 %v1378_v3  ;;  %1358 = vmatpush3.bf16.msra.mxu1 %v1378_v3  ;;  %v1391_v16 = vld [vmem:[%s1671_s22 + $0x18] sm:$0xff]   ;;  %v1393_v18 = vld [vmem:[%s1671_s22 + $0x20] sm:$0xff]   ;;  %v1394_v19 = vld [vmem:[%s1671_s22 + $0x88] sm:$0xff]  }
  0x16   : > { %1237 = vmatprep.subr.bf16.mxu0 %v1615_v1  ;;  %1351 = vmatprep.subr.bf16.mxu1 %v1615_v1  ;;  %v1395_v20 = vld [vmem:[%s1671_s22 + $0x28] sm:$0xff]   ;;  %v1396_v21 = vld [vmem:[%s1671_s22 + $0x90] sm:$0xff]   ;;  %v1398_v23 = vld [vmem:[%s1671_s22 + $0x98] sm:$0xff]  }
  0x17   : > { %v1397_v22 = vld [vmem:[%s1671_s22 + $0x30] sm:$0xff]   ;;  %v1399_v24 = vld [vmem:[%s1671_s22 + $0x38] sm:$0xff]   ;;  %v1400_v25 = vld [vmem:[%s1671_s22 + $0xa0] sm:$0xff]  }
  0x18   : > { %v1401_v26 = vld [vmem:[%s1671_s22 + $0x40] sm:$0xff]   ;;  %v1402_v27 = vld [vmem:[%s1671_s22 + $0xa8] sm:$0xff]   ;;  %v1404_v29 = vld [vmem:[%s1671_s22 + $0xb0] sm:$0xff]  }
  0x19   : > { %1238 = vmatpush3.bf16.msra.mxu0 %v1379_v4  ;;  %1359 = vmatpush3.bf16.msra.mxu1 %v1379_v4  ;;  %v1403_v28 = vld [vmem:[%s1671_s22 + $0x48] sm:$0xff]   ;;  %v1405_v30 = vld [vmem:[%s1671_s22 + $0x50] sm:$0xff]   ;;  %v1406_v31 = vld [vmem:[%s1671_s22 + $0xb8] sm:$0xff]  }
  0x1a   : > { %1239 = vmatprep.subr.bf16.mxu0 %v1615_v1  ;;  %1352 = vmatprep.subr.bf16.mxu1 %v1615_v1  ;;  %v1407_v32 = vld [vmem:[%s1671_s22 + $0x58] sm:$0xff]   ;;  %v1408_v33 = vld [vmem:[%s1671_s22 + $0xc0] ss:$0 sps:$4 sm:$0xff]  }
  0x1b   : > { %v1409_v34 = vld [vmem:[%s1671_s22 + $0x60] sm:$0xff]  }
  0x1d   : > { %1240 = vmatpush3.bf16.msra.mxu0 %v1380_v5  ;;  %1360 = vmatpush3.bf16.msra.mxu1 %v1380_v5 }
  0x1e   : > { %1241 = vmatprep.subr.bf16.mxu0 %v1615_v1  ;;  %1353 = vmatprep.subr.bf16.mxu1 %v1615_v1 }
  0x21   : > { %1242 = vmatpush3.bf16.msra.mxu0 %v1381_v6  ;;  %1361 = vmatpush3.bf16.msra.mxu1 %v1381_v6 }
  0x22   : > { %1243 = vmatprep.subr.bf16.mxu0 %v1615_v1  ;;  %1354 = vmatprep.subr.bf16.mxu1 %v1615_v1 }
  0x25   : > { %1244 = vmatpush3.bf16.msra.mxu0 %v1382_v7  ;;  %1362 = vmatpush3.bf16.msra.mxu1 %v1382_v7 }
  0x26   : > { %1245 = vmatprep.subr.bf16.mxu0 %v1615_v1  ;;  %1355 = vmatprep.subr.bf16.mxu1 %v1615_v1 }
  0x29   : > { %1246 = vmatpush3.bf16.msra.mxu0 %v1383_v8  ;;  %1363 = vmatpush3.bf16.msra.mxu1 %v1383_v8 }
  0x2a   : > { %1247 = vmatprep.subr.bf16.mxu0 %v1615_v1  ;;  %1356 = vmatprep.subr.bf16.mxu1 %v1615_v1 }
  0x2d   : > { %1248 = vmatpush3.bf16.msra.mxu0 %v1384_v9  ;;  %1364 = vmatpush3.bf16.msra.mxu1 %v1384_v9 }
  0x30   : > { %1250 = vmatmul.mubr.bf16.vlgmr.msra.gmra.mxu0 %v1385_v10  ;;  %1302 = vmatmul.mubr.bf16.vlgmr.msra.gmra.mxu1 %v1386_v11 }
  0x31   : > { %1253 = vmatprep.mubr.msk.bf16.mxu0 %vm1616_vm0, %v1615_v1  ;;  %1305 = vmatprep.mubr.msk.bf16.mxu1 %vm1616_vm0, %v1615_v1 }
  0x38   : > { %1254 = vmatmul.mubr.bf16.gmra.mxu0 %v1387_v12  ;;  %1306 = vmatmul.mubr.bf16.gmra.mxu1 %v1388_v13 }
  0x39   : > { %1257 = vmatprep.mubr.msk.bf16.mxu0 %vm1616_vm0, %v1615_v1  ;;  %1309 = vmatprep.mubr.msk.bf16.mxu1 %vm1616_vm0, %v1615_v1 }
  0x40   : > { %1258 = vmatmul.mubr.bf16.gmra.mxu0 %v1389_v14  ;;  %1310 = vmatmul.mubr.bf16.gmra.mxu1 %v1390_v15 }
  0x41   : > { %1261 = vmatprep.mubr.msk.bf16.mxu0 %vm1616_vm0, %v1615_v1  ;;  %1313 = vmatprep.mubr.msk.bf16.mxu1 %vm1616_vm0, %v1615_v1 }
  0x48   : > { %1262 = vmatmul.mubr.bf16.gmra.mxu0 %v1391_v16  ;;  %1314 = vmatmul.mubr.bf16.gmra.mxu1 %v1392_v17 }
  0x49   : > { %1265 = vmatprep.mubr.msk.bf16.mxu0 %vm1616_vm0, %v1615_v1  ;;  %1317 = vmatprep.mubr.msk.bf16.mxu1 %vm1616_vm0, %v1615_v1 }
  0x50   : > { %1266 = vmatmul.mubr.bf16.gmra.mxu0 %v1393_v18  ;;  %1318 = vmatmul.mubr.bf16.gmra.mxu1 %v1394_v19 }
  0x51   : > { %1269 = vmatprep.mubr.msk.bf16.mxu0 %vm1616_vm0, %v1615_v1  ;;  %1321 = vmatprep.mubr.msk.bf16.mxu1 %vm1616_vm0, %v1615_v1 }
  0x58   : > { %1270 = vmatmul.mubr.bf16.gmra.mxu0 %v1395_v20  ;;  %1322 = vmatmul.mubr.bf16.gmra.mxu1 %v1396_v21 }
  0x59   : > { %1273 = vmatprep.mubr.msk.bf16.mxu0 %vm1616_vm0, %v1615_v1  ;;  %1325 = vmatprep.mubr.msk.bf16.mxu1 %vm1616_vm0, %v1615_v1 }
  0x60   : > { %1274 = vmatmul.mubr.bf16.gmra.mxu0 %v1397_v22  ;;  %1326 = vmatmul.mubr.bf16.gmra.mxu1 %v1398_v23 }
  0x61   : > { %1277 = vmatprep.mubr.msk.bf16.mxu0 %vm1616_vm0, %v1615_v1  ;;  %1329 = vmatprep.mubr.msk.bf16.mxu1 %vm1616_vm0, %v1615_v1 }
  0x68   : > { %1278 = vmatmul.mubr.bf16.gmra.mxu0 %v1399_v24  ;;  %1330 = vmatmul.mubr.bf16.gmra.mxu1 %v1400_v25 }
  0x69   : > { %1281 = vmatprep.mubr.msk.bf16.mxu0 %vm1616_vm0, %v1615_v1  ;;  %1333 = vmatprep.mubr.msk.bf16.mxu1 %vm1616_vm0, %v1615_v1 }
  0x70   : > { %1282 = vmatmul.mubr.bf16.gmra.mxu0 %v1401_v26  ;;  %1334 = vmatmul.mubr.bf16.gmra.mxu1 %v1402_v27 }
  0x71   : > { %1285 = vmatprep.mubr.msk.bf16.mxu0 %vm1616_vm0, %v1615_v1  ;;  %1337 = vmatprep.mubr.msk.bf16.mxu1 %vm1616_vm0, %v1615_v1 }
  0x78   : > { %1286 = vmatmul.mubr.bf16.gmra.mxu0 %v1403_v28  ;;  %1338 = vmatmul.mubr.bf16.gmra.mxu1 %v1404_v29 }
  0x79   : > { %1289 = vmatprep.mubr.msk.bf16.mxu0 %vm1616_vm0, %v1615_v1  ;;  %1341 = vmatprep.mubr.msk.bf16.mxu1 %vm1616_vm0, %v1615_v1 }
  0x80   : > { %1290 = vmatmul.mubr.bf16.gmra.mxu0 %v1405_v30  ;;  %1342 = vmatmul.mubr.bf16.gmra.mxu1 %v1406_v31 }
  0x81   : > { %1293 = vmatprep.mubr.msk.bf16.mxu0 %vm1616_vm0, %v1615_v1  ;;  %1345 = vmatprep.mubr.msk.bf16.mxu1 %vm1616_vm0, %v1615_v1 }
  0x88   : > { %1294 = vmatmul.mubr.bf16.gmra.mxu0 %v1407_v32  ;;  %1346 = vmatmul.mubr.bf16.gmra.mxu1 %v1408_v33 }
  0x89   : > { %1297 = vmatprep.mubr.msk.bf16.mxu0 %vm1616_vm0, %v1615_v1 }
  0x90   : > { %1298 = vmatmul.mubr.bf16.gmra.mxu0 %v1409_v34 }
  0xf0   : > { %v496_v36 = vpop.f32.mrf.mxu0  ;;  %v600_v37 = vpop.f32.mrf.mxu1 }
  0xf1   : > { %v497_v38 = vadd.f32 %v1761_v35, %v496_v36  ;;  %v601_v39 = vadd.f32 %v1761_v35, %v600_v37 }
  0xf2   : > { %v1251_v40 = vpop.f32.mrf.mxu0  ;;  %v1303_v41 = vpop.f32.mrf.mxu1 }
  0xf3   : > { %v694_v42 = vsub.f32 0.0, %v497_v38  ;;  %v720_v43 = vsub.f32 0.0, %v601_v39 }
  0xf4   : > { %v499_v44 = vpop.f32.mrf.mxu0  ;;  %v603_v45 = vpop.f32.mrf.mxu1 }
  0xf5   : > { %v743_v46 = vmul.f32 1.442695, %v694_v42  ;;  %v500_v47 = vadd.f32 %v1761_v35, %v499_v44  ;;  %v795_v48 = vmul.f32 1.442695, %v720_v43  ;;  %v604_v49 = vadd.f32 %v1761_v35, %v603_v45 }
  0xf6   : > { %v1252_v50 = vpop.f32.mrf.mxu0  ;;  %v1304_v51 = vpop.f32.mrf.mxu1 }
  0xf7   : > { %1410 = vpow2.f32 %v743_v46  ;;  %v695_v52 = vsub.f32 0.0, %v500_v47  ;;  %v721_v53 = vsub.f32 0.0, %v604_v49 }
  0xf8   : > { %1412 = vpow2.f32 %v795_v48  ;;  %v504_v54 = vpop.f32.mrf.mxu0  ;;  %v608_v55 = vpop.f32.mrf.mxu1 }
  0xf9   : > { %v745_v56 = vmul.f32 1.442695, %v695_v52  ;;  %v505_v57 = vadd.f32 %v1761_v35, %v504_v54  ;;  %v797_v58 = vmul.f32 1.442695, %v721_v53  ;;  %v609_v59 = vadd.f32 %v1761_v35, %v608_v55 }
  0xfa   : > { %v1255_v60 = vpop.f32.mrf.mxu0  ;;  %v1307_v61 = vpop.f32.mrf.mxu1 }
  0xfb   : > { %1414 = vpow2.f32 %v745_v56  ;;  %v696_v62 = vsub.f32 0.0, %v505_v57  ;;  %v722_v63 = vsub.f32 0.0, %v609_v59 }
  0xfc   : > { %1416 = vpow2.f32 %v797_v58  ;;  %v507_v0 = vpop.f32.mrf.mxu0  ;;  %v611_v1 = vpop.f32.mrf.mxu1 }
  0xfd   : > { %v747_v2 = vmul.f32 1.442695, %v696_v62  ;;  %v508_v3 = vadd.f32 %v1761_v35, %v507_v0  ;;  %v799_v4 = vmul.f32 1.442695, %v722_v63  ;;  %v612_v5 = vadd.f32 %v1761_v35, %v611_v1 }
  0xfe   : > { %v1256_v6 = vpop.f32.mrf.mxu0  ;;  %v1308_v7 = vpop.f32.mrf.mxu1 }
  0xff   : > { %1418 = vpow2.f32 %v747_v2  ;;  %v697_v8 = vsub.f32 0.0, %v508_v3  ;;  %v723_v9 = vsub.f32 0.0, %v612_v5 }
 0x100   : > { %1420 = vpow2.f32 %v799_v4  ;;  %v512_v10 = vpop.f32.mrf.mxu0  ;;  %v616_v11 = vpop.f32.mrf.mxu1 }
 0x101   : > { %v749_v12 = vmul.f32 1.442695, %v697_v8  ;;  %v513_v13 = vadd.f32 %v1761_v35, %v512_v10  ;;  %v801_v14 = vmul.f32 1.442695, %v723_v9  ;;  %v617_v15 = vadd.f32 %v1761_v35, %v616_v11 }
 0x102   : > { %v1259_v16 = vpop.f32.mrf.mxu0  ;;  %v1311_v17 = vpop.f32.mrf.mxu1 }
 0x103   : > { %1422 = vpow2.f32 %v749_v12  ;;  %v698_v18 = vsub.f32 0.0, %v513_v13  ;;  %v724_v19 = vsub.f32 0.0, %v617_v15 }
 0x104   : > { %v1411_v20 = vpop.eup %1410  ;;  %1424 = vpow2.f32 %v801_v14  ;;  %v515_v21 = vpop.f32.mrf.mxu0 }
 0x105   : > { %v619_v22 = vpop.f32.mrf.mxu1  ;;  %v1413_v23 = vpop.eup %1412  ;;  %v841_v24 = vadd.f32 1.0, %v1411_v20  ;;  %v751_v25 = vmul.f32 1.442695, %v698_v18  ;;  %v516_v26 = vadd.f32 %v1761_v35, %v515_v21  ;;  %v803_v29 = vmul.f32 1.442695, %v724_v19 }
 0x106   : > { %v867_v27 = vadd.f32 1.0, %v1413_v23  ;;  %v1260_v28 = vpop.f32.mrf.mxu0  ;;  %v620_v30 = vadd.f32 %v1761_v35, %v619_v22 }
 0x107   : > { %v1312_v31 = vpop.f32.mrf.mxu1  ;;  %1426 = vrcp.f32 %v841_v24  ;;  %v699_v32 = vsub.f32 0.0, %v516_v26 }
 0x108   : > { %v1415_v33 = vpop.eup %1414  ;;  %1428 = vrcp.f32 %v867_v27  ;;  %v520_v34 = vpop.f32.mrf.mxu0  ;;  %v725_v36 = vsub.f32 0.0, %v620_v30 }
 0x109   : > { %v624_v37 = vpop.f32.mrf.mxu1  ;;  %v1417_v38 = vpop.eup %1416  ;;  %v842_v39 = vadd.f32 1.0, %v1415_v33  ;;  %1430 = vpow2.f32 %v751_v25  ;;  %v753_v40 = vmul.f32 1.442695, %v699_v32  ;;  %v521_v41 = vadd.f32 %v1761_v35, %v520_v34 }
 0x10a   : > { %v868_v42 = vadd.f32 1.0, %v1417_v38  ;;  %1432 = vpow2.f32 %v803_v29  ;;  %v1263_v43 = vpop.f32.mrf.mxu0  ;;  %v805_v44 = vmul.f32 1.442695, %v725_v36  ;;  %v625_v45 = vadd.f32 %v1761_v35, %v624_v37 }
 0x10b   : > { %v1315_v46 = vpop.f32.mrf.mxu1  ;;  %1434 = vrcp.f32 %v842_v39  ;;  %v700_v47 = vsub.f32 0.0, %v521_v41 }
 0x10c   : > { %v1419_v48 = vpop.eup %1418  ;;  %1436 = vrcp.f32 %v868_v42  ;;  %v523_v49 = vpop.f32.mrf.mxu0  ;;  %v726_v50 = vsub.f32 0.0, %v625_v45 }
 0x10d   : > { %v627_v51 = vpop.f32.mrf.mxu1  ;;  %v1421_v52 = vpop.eup %1420  ;;  %v843_v53 = vadd.f32 1.0, %v1419_v48  ;;  %1438 = vpow2.f32 %v753_v40  ;;  %v755_v54 = vmul.f32 1.442695, %v700_v47  ;;  %v524_v55 = vadd.f32 %v1761_v35, %v523_v49 }
 0x10e   : > { %v869_v56 = vadd.f32 1.0, %v1421_v52  ;;  %1440 = vpow2.f32 %v805_v44  ;;  %v1264_v57 = vpop.f32.mrf.mxu0  ;;  %v807_v58 = vmul.f32 1.442695, %v726_v50  ;;  %v628_v59 = vadd.f32 %v1761_v35, %v627_v51 }
 0x10f   : > { %v1316_v60 = vpop.f32.mrf.mxu1  ;;  %1442 = vrcp.f32 %v843_v53  ;;  %v701_v61 = vsub.f32 0.0, %v524_v55 }
 0x110   : > { %v1423_v62 = vpop.eup %1422  ;;  %1444 = vrcp.f32 %v869_v56  ;;  %v528_v63 = vpop.f32.mrf.mxu0  ;;  %v727_v0 = vsub.f32 0.0, %v628_v59 }
 0x111   : > { %v632_v1 = vpop.f32.mrf.mxu1  ;;  %v1425_v2 = vpop.eup %1424  ;;  %v844_v3 = vadd.f32 1.0, %v1423_v62  ;;  %1446 = vpow2.f32 %v755_v54  ;;  %v757_v4 = vmul.f32 1.442695, %v701_v61  ;;  %v529_v5 = vadd.f32 %v1761_v35, %v528_v63 }
 0x112   : > { %v870_v6 = vadd.f32 1.0, %v1425_v2  ;;  %1448 = vpow2.f32 %v807_v58  ;;  %v1267_v7 = vpop.f32.mrf.mxu0  ;;  %v809_v8 = vmul.f32 1.442695, %v727_v0  ;;  %v633_v9 = vadd.f32 %v1761_v35, %v632_v1 }
 0x113   : > { %v1319_v10 = vpop.f32.mrf.mxu1  ;;  %1450 = vrcp.f32 %v844_v3  ;;  %v702_v11 = vsub.f32 0.0, %v529_v5 }
 0x114   : > { %v1427_v12 = vpop.eup %1426  ;;  %1452 = vrcp.f32 %v870_v6  ;;  %v531_v13 = vpop.f32.mrf.mxu0  ;;  %v728_v14 = vsub.f32 0.0, %v633_v9 }
 0x115   : > { %v635_v15 = vpop.f32.mrf.mxu1  ;;  %v1429_v16 = vpop.eup %1428  ;;  %v939_v17 = vmax.f32 %v1427_v12, 0.0  ;;  %1454 = vpow2.f32 %v757_v4  ;;  %v759_v18 = vmul.f32 1.442695, %v702_v11  ;;  %v532_v19 = vadd.f32 %v1761_v35, %v531_v13 }
 0x116   : > { %v1431_v20 = vpop.eup %1430  ;;  %v965_v21 = vmax.f32 %v1429_v16, 0.0  ;;  %1456 = vpow2.f32 %v809_v8  ;;  %v1268_v22 = vpop.f32.mrf.mxu0  ;;  %v811_v23 = vmul.f32 1.442695, %v728_v14  ;;  %v636_v24 = vadd.f32 %v1761_v35, %v635_v15 }
 0x117   : > { %v1320_v25 = vpop.f32.mrf.mxu1  ;;  %v1433_v26 = vpop.eup %1432  ;;  %v988_v27 = vmin.f32 %v939_v17, 1.0  ;;  %v845_v28 = vadd.f32 1.0, %v1431_v20  ;;  %1458 = vpow2.f32 %v759_v18  ;;  %v703_v29 = vsub.f32 0.0, %v532_v19 }
 0x118   : > { %v1435_v30 = vpop.eup %1434  ;;  %v1014_v31 = vmin.f32 %v965_v21, 1.0  ;;  %v871_v32 = vadd.f32 1.0, %v1433_v26  ;;  %1460 = vpow2.f32 %v811_v23  ;;  %v536_v33 = vpop.f32.mrf.mxu0  ;;  %v729_v34 = vsub.f32 0.0, %v636_v24 }
 0x119   : > { %v640_v36 = vpop.f32.mrf.mxu1  ;;  %v1437_v37 = vpop.eup %1436  ;;  %1038 = vst.msk [vmem:[%s1786_s26] sm:$0xff] %vm1037_vm1, %v988_v27  ;;  %v940_v38 = vmax.f32 %v1435_v30, 0.0  ;;  %1462 = vrcp.f32 %v845_v28  ;;  %v761_v39 = vmul.f32 1.442695, %v703_v29  ;;  %v537_v40 = vadd.f32 %v1761_v35, %v536_v33 }
 0x11a   : > { %v1439_v41 = vpop.eup %1438  ;;  %1064 = vst.msk [vmem:[%s1786_s26 + $0xd0] sm:$0xff] %vm1037_vm1, %v1014_v31  ;;  %v966_v42 = vmax.f32 %v1437_v37, 0.0  ;;  %1464 = vrcp.f32 %v871_v32  ;;  %v1271_v43 = vpop.f32.mrf.mxu0  ;;  %v813_v44 = vmul.f32 1.442695, %v729_v34  ;;  %v641_v45 = vadd.f32 %v1761_v35, %v640_v36 }
 0x11b   : > { %v1323_v46 = vpop.f32.mrf.mxu1  ;;  %v1441_v47 = vpop.eup %1440  ;;  %v989_v48 = vmin.f32 %v940_v38, 1.0  ;;  %v846_v49 = vadd.f32 1.0, %v1439_v41  ;;  %1466 = vpow2.f32 %v761_v39  ;;  %v704_v50 = vsub.f32 0.0, %v537_v40 }
 0x11c   : > { %v1443_v51 = vpop.eup %1442  ;;  %v1015_v52 = vmin.f32 %v966_v42, 1.0  ;;  %v872_v53 = vadd.f32 1.0, %v1441_v47  ;;  %1468 = vpow2.f32 %v813_v44  ;;  %v539_v54 = vpop.f32.mrf.mxu0  ;;  %v730_v55 = vsub.f32 0.0, %v641_v45 }
 0x11d   : > { %v643_v56 = vpop.f32.mrf.mxu1  ;;  %v1445_v57 = vpop.eup %1444  ;;  %1039 = vst.msk [vmem:[%s1786_s26 + $0x8] sm:$0xff] %vm1037_vm1, %v989_v48  ;;  %v941_v58 = vmax.f32 %v1443_v51, 0.0  ;;  %1470 = vrcp.f32 %v846_v49  ;;  %v763_v59 = vmul.f32 1.442695, %v704_v50  ;;  %v540_v60 = vadd.f32 %v1761_v35, %v539_v54 }
 0x11e   : > { %v1447_v61 = vpop.eup %1446  ;;  %1065 = vst.msk [vmem:[%s1786_s26 + $0xd8] sm:$0xff] %vm1037_vm1, %v1015_v52  ;;  %v967_v62 = vmax.f32 %v1445_v57, 0.0  ;;  %1472 = vrcp.f32 %v872_v53  ;;  %v1272_v63 = vpop.f32.mrf.mxu0  ;;  %v815_v0 = vmul.f32 1.442695, %v730_v55  ;;  %v644_v1 = vadd.f32 %v1761_v35, %v643_v56 }
 0x11f   : > { %v1324_v2 = vpop.f32.mrf.mxu1  ;;  %v1449_v3 = vpop.eup %1448  ;;  %v990_v4 = vmin.f32 %v941_v58, 1.0  ;;  %v847_v5 = vadd.f32 1.0, %v1447_v61  ;;  %1474 = vpow2.f32 %v763_v59  ;;  %v705_v6 = vsub.f32 0.0, %v540_v60 }
 0x120   : > { %v1451_v7 = vpop.eup %1450  ;;  %v1016_v8 = vmin.f32 %v967_v62, 1.0  ;;  %v873_v9 = vadd.f32 1.0, %v1449_v3  ;;  %1476 = vpow2.f32 %v815_v0  ;;  %v544_v10 = vpop.f32.mrf.mxu0  ;;  %v731_v11 = vsub.f32 0.0, %v644_v1 }
 0x121   : > { %v648_v12 = vpop.f32.mrf.mxu1  ;;  %v1453_v13 = vpop.eup %1452  ;;  %1040 = vst.msk [vmem:[%s1786_s26 + $0x10] sm:$0xff] %vm1037_vm1, %v990_v4  ;;  %v942_v14 = vmax.f32 %v1451_v7, 0.0  ;;  %1478 = vrcp.f32 %v847_v5  ;;  %v765_v15 = vmul.f32 1.442695, %v705_v6  ;;  %v545_v16 = vadd.f32 %v1761_v35, %v544_v10 }
 0x122   : > { %v1455_v17 = vpop.eup %1454  ;;  %1066 = vst.msk [vmem:[%s1786_s26 + $0xe0] sm:$0xff] %vm1037_vm1, %v1016_v8  ;;  %v968_v18 = vmax.f32 %v1453_v13, 0.0  ;;  %1480 = vrcp.f32 %v873_v9  ;;  %v1275_v19 = vpop.f32.mrf.mxu0  ;;  %v817_v20 = vmul.f32 1.442695, %v731_v11  ;;  %v649_v21 = vadd.f32 %v1761_v35, %v648_v12 }
 0x123   : > { %v1327_v22 = vpop.f32.mrf.mxu1  ;;  %v1457_v23 = vpop.eup %1456  ;;  %v991_v24 = vmin.f32 %v942_v14, 1.0  ;;  %v848_v25 = vadd.f32 1.0, %v1455_v17  ;;  %1482 = vpow2.f32 %v765_v15  ;;  %v706_v26 = vsub.f32 0.0, %v545_v16 }
 0x124   : > { %v1459_v27 = vpop.eup %1458  ;;  %v1017_v28 = vmin.f32 %v968_v18, 1.0  ;;  %v874_v29 = vadd.f32 1.0, %v1457_v23  ;;  %1484 = vpow2.f32 %v817_v20  ;;  %v547_v30 = vpop.f32.mrf.mxu0  ;;  %v732_v31 = vsub.f32 0.0, %v649_v21 }
 0x125   : > { %v651_v32 = vpop.f32.mrf.mxu1  ;;  %v1461_v33 = vpop.eup %1460  ;;  %1041 = vst.msk [vmem:[%s1786_s26 + $0x18] sm:$0xff] %vm1037_vm1, %v991_v24  ;;  %1486 = vrcp.f32 %v848_v25  ;;  %v849_v34 = vadd.f32 1.0, %v1459_v27  ;;  %v767_v36 = vmul.f32 1.442695, %v706_v26  ;;  %v548_v37 = vadd.f32 %v1761_v35, %v547_v30 }
 0x126   : > { %v1463_v38 = vpop.eup %1462  ;;  %1067 = vst.msk [vmem:[%s1786_s26 + $0xe8] sm:$0xff] %vm1037_vm1, %v1017_v28  ;;  %1488 = vrcp.f32 %v874_v29  ;;  %v875_v39 = vadd.f32 1.0, %v1461_v33  ;;  %v1276_v40 = vpop.f32.mrf.mxu0  ;;  %v819_v41 = vmul.f32 1.442695, %v732_v31  ;;  %v652_v42 = vadd.f32 %v1761_v35, %v651_v32 }
 0x127   : > { %v1328_v43 = vpop.f32.mrf.mxu1  ;;  %v1465_v44 = vpop.eup %1464  ;;  %v943_v45 = vmax.f32 %v1463_v38, 0.0  ;;  %1490 = vrcp.f32 %v849_v34  ;;  %v707_v46 = vsub.f32 0.0, %v548_v37 }
 0x128   : > { %v1467_v47 = vpop.eup %1466  ;;  %v969_v48 = vmax.f32 %v1465_v44, 0.0  ;;  %1492 = vrcp.f32 %v875_v39  ;;  %v552_v49 = vpop.f32.mrf.mxu0  ;;  %v733_v50 = vsub.f32 0.0, %v652_v42 }
 0x129   : > { %v656_v51 = vpop.f32.mrf.mxu1  ;;  %v1469_v52 = vpop.eup %1468  ;;  %v992_v53 = vmin.f32 %v943_v45, 1.0  ;;  %v850_v54 = vadd.f32 1.0, %v1467_v47  ;;  %1494 = vpow2.f32 %v767_v36  ;;  %v769_v55 = vmul.f32 1.442695, %v707_v46 }
 0x12a   : > { %v1471_v56 = vpop.eup %1470  ;;  %v1018_v57 = vmin.f32 %v969_v48, 1.0  ;;  %v876_v58 = vadd.f32 1.0, %v1469_v52  ;;  %1496 = vpow2.f32 %v819_v41  ;;  %v553_v59 = vadd.f32 %v1761_v35, %v552_v49  ;;  %v1279_v60 = vpop.f32.mrf.mxu0 }
 0x12b   : > { %v1331_v61 = vpop.f32.mrf.mxu1  ;;  %v1473_v62 = vpop.eup %1472  ;;  %1042 = vst.msk [vmem:[%s1786_s26 + $0x20] sm:$0xff] %vm1037_vm1, %v992_v53  ;;  %v944_v63 = vmax.f32 %v1471_v56, 0.0  ;;  %1498 = vrcp.f32 %v850_v54  ;;  %v821_v0 = vmul.f32 1.442695, %v733_v50  ;;  %v657_v1 = vadd.f32 %v1761_v35, %v656_v51 }
 0x12c   : > { %v1475_v2 = vpop.eup %1474  ;;  %1068 = vst.msk [vmem:[%s1786_s26 + $0xf0] sm:$0xff] %vm1037_vm1, %v1018_v57  ;;  %v970_v3 = vmax.f32 %v1473_v62, 0.0  ;;  %1500 = vrcp.f32 %v876_v58  ;;  %v708_v4 = vsub.f32 0.0, %v553_v59  ;;  %v555_v5 = vpop.f32.mrf.mxu0 }
 0x12d   : > { %v659_v6 = vpop.f32.mrf.mxu1  ;;  %v1477_v7 = vpop.eup %1476  ;;  %v993_v8 = vmin.f32 %v944_v63, 1.0  ;;  %v851_v9 = vadd.f32 1.0, %v1475_v2  ;;  %1502 = vpow2.f32 %v769_v55  ;;  %v556_v10 = vadd.f32 %v1761_v35, %v555_v5 }
 0x12e   : > { %v1479_v11 = vpop.eup %1478  ;;  %v1019_v12 = vmin.f32 %v970_v3, 1.0  ;;  %v877_v13 = vadd.f32 1.0, %v1477_v7  ;;  %v771_v14 = vmul.f32 1.442695, %v708_v4  ;;  %1504 = vpow2.f32 %v821_v0  ;;  %v1280_v15 = vpop.f32.mrf.mxu0 }
 0x12f   : > { %v1332_v16 = vpop.f32.mrf.mxu1  ;;  %v1481_v17 = vpop.eup %1480  ;;  %1043 = vst.msk [vmem:[%s1786_s26 + $0x28] sm:$0xff] %vm1037_vm1, %v993_v8  ;;  %v945_v18 = vmax.f32 %v1479_v11, 0.0  ;;  %1506 = vrcp.f32 %v851_v9  ;;  %v709_v19 = vsub.f32 0.0, %v556_v10  ;;  %v734_v20 = vsub.f32 0.0, %v657_v1 }
 0x130   : > { %v1483_v21 = vpop.eup %1482  ;;  %1069 = vst.msk [vmem:[%s1786_s26 + $0xf8] sm:$0xff] %vm1037_vm1, %v1019_v12  ;;  %v971_v22 = vmax.f32 %v1481_v17, 0.0  ;;  %1508 = vrcp.f32 %v877_v13  ;;  %v560_v23 = vpop.f32.mrf.mxu0  ;;  %v660_v24 = vadd.f32 %v1761_v35, %v659_v6 }
 0x131   : > { %v664_v25 = vpop.f32.mrf.mxu1  ;;  %v1485_v26 = vpop.eup %1484  ;;  %v994_v27 = vmin.f32 %v945_v18, 1.0  ;;  %v852_v28 = vadd.f32 1.0, %v1483_v21  ;;  %1510 = vpow2.f32 %v771_v14  ;;  %v773_v29 = vmul.f32 1.442695, %v709_v19 }
 0x132   : > { %v1487_v30 = vpop.eup %1486  ;;  %v1020_v31 = vmin.f32 %v971_v22, 1.0  ;;  %v878_v32 = vadd.f32 1.0, %v1485_v26  ;;  %v823_v33 = vmul.f32 1.442695, %v734_v20  ;;  %v561_v34 = vadd.f32 %v1761_v35, %v560_v23  ;;  %v1283_v36 = vpop.f32.mrf.mxu0 }
 0x133   : > { %v1335_v37 = vpop.f32.mrf.mxu1  ;;  %v1489_v38 = vpop.eup %1488  ;;  %1044 = vst.msk [vmem:[%s1786_s26 + $0x30] sm:$0xff] %vm1037_vm1, %v994_v27  ;;  %v946_v39 = vmax.f32 %v1487_v30, 0.0  ;;  %1512 = vrcp.f32 %v852_v28  ;;  %v735_v40 = vsub.f32 0.0, %v660_v24  ;;  %v665_v45 = vadd.f32 %v1761_v35, %v664_v25 }
 0x134   : > { %v1491_v41 = vpop.eup %1490  ;;  %1070 = vst.msk [vmem:[%s1786_s26 + $0x100] sm:$0xff] %vm1037_vm1, %v1020_v31  ;;  %v972_v42 = vmax.f32 %v1489_v38, 0.0  ;;  %1514 = vrcp.f32 %v878_v32  ;;  %v710_v43 = vsub.f32 0.0, %v561_v34  ;;  %v563_v44 = vpop.f32.mrf.mxu0 }
 0x135   : > { %v667_v46 = vpop.f32.mrf.mxu1  ;;  %v1493_v47 = vpop.eup %1492  ;;  %v995_v48 = vmin.f32 %v946_v39, 1.0  ;;  %v947_v49 = vmax.f32 %v1491_v41, 0.0  ;;  %1516 = vpow2.f32 %v773_v29  ;;  %v825_v50 = vmul.f32 1.442695, %v735_v40 }
 0x136   : > { %v1495_v51 = vpop.eup %1494  ;;  %v1021_v52 = vmin.f32 %v972_v42, 1.0  ;;  %v973_v53 = vmax.f32 %v1493_v47, 0.0  ;;  %1518 = vpow2.f32 %v823_v33  ;;  %v775_v54 = vmul.f32 1.442695, %v710_v43  ;;  %v1284_v55 = vpop.f32.mrf.mxu0 }
 0x137   : > { %v1336_v56 = vpop.f32.mrf.mxu1  ;;  %v1497_v57 = vpop.eup %1496  ;;  %1045 = vst.msk [vmem:[%s1786_s26 + $0x38] sm:$0xff] %vm1037_vm1, %v995_v48  ;;  %v996_v58 = vmin.f32 %v947_v49, 1.0  ;;  %v853_v59 = vadd.f32 1.0, %v1495_v51  ;;  %1520 = vpow2.f32 %v825_v50  ;;  %v564_v60 = vadd.f32 %v1761_v35, %v563_v44 }
 0x138   : > { %v1499_v61 = vpop.eup %1498  ;;  %1071 = vst.msk [vmem:[%s1786_s26 + $0x108] sm:$0xff] %vm1037_vm1, %v1021_v52  ;;  %v1022_v62 = vmin.f32 %v973_v53, 1.0  ;;  %v879_v63 = vadd.f32 1.0, %v1497_v57  ;;  %1522 = vpow2.f32 %v775_v54  ;;  %v736_v0 = vsub.f32 0.0, %v665_v45  ;;  %v568_v1 = vpop.f32.mrf.mxu0 }
 0x139   : > { %v672_v2 = vpop.f32.mrf.mxu1  ;;  %v1501_v3 = vpop.eup %1500  ;;  %1046 = vst.msk [vmem:[%s1786_s26 + $0x40] sm:$0xff] %vm1037_vm1, %v996_v58  ;;  %v948_v4 = vmax.f32 %v1499_v61, 0.0  ;;  %1524 = vrcp.f32 %v853_v59  ;;  %v711_v5 = vsub.f32 0.0, %v564_v60  ;;  %v569_v6 = vadd.f32 %v1761_v35, %v568_v1 }
 0x13a   : > { %v1503_v7 = vpop.eup %1502  ;;  %1072 = vst.msk [vmem:[%s1786_s26 + $0x110] sm:$0xff] %vm1037_vm1, %v1022_v62  ;;  %v974_v8 = vmax.f32 %v1501_v3, 0.0  ;;  %1526 = vrcp.f32 %v879_v63  ;;  %v827_v9 = vmul.f32 1.442695, %v736_v0  ;;  %v1287_v10 = vpop.f32.mrf.mxu0  ;;  %v668_v11 = vadd.f32 %v1761_v35, %v667_v46 }
 0x13b   : > { %v1339_v12 = vpop.f32.mrf.mxu1  ;;  %v1505_v13 = vpop.eup %1504  ;;  %v997_v14 = vmin.f32 %v948_v4, 1.0  ;;  %v854_v15 = vadd.f32 1.0, %v1503_v7  ;;  %v777_v16 = vmul.f32 1.442695, %v711_v5  ;;  %v712_v17 = vsub.f32 0.0, %v569_v6 }
 0x13c   : > { %v1507_v18 = vpop.eup %1506  ;;  %v1023_v19 = vmin.f32 %v974_v8, 1.0  ;;  %v880_v20 = vadd.f32 1.0, %v1505_v13  ;;  %1528 = vpow2.f32 %v827_v9  ;;  %v737_v21 = vsub.f32 0.0, %v668_v11  ;;  %v571_v22 = vpop.f32.mrf.mxu0 }
 0x13d   : > { %v675_v23 = vpop.f32.mrf.mxu1  ;;  %v1509_v24 = vpop.eup %1508  ;;  %1047 = vst.msk [vmem:[%s1786_s26 + $0x48] sm:$0xff] %vm1037_vm1, %v997_v14  ;;  %v949_v25 = vmax.f32 %v1507_v18, 0.0  ;;  %1530 = vrcp.f32 %v854_v15  ;;  %v779_v26 = vmul.f32 1.442695, %v712_v17  ;;  %v572_v27 = vadd.f32 %v1761_v35, %v571_v22 }
 0x13e   : > { %v1511_v28 = vpop.eup %1510  ;;  %1073 = vst.msk [vmem:[%s1786_s26 + $0x118] sm:$0xff] %vm1037_vm1, %v1023_v19  ;;  %v975_v29 = vmax.f32 %v1509_v24, 0.0  ;;  %1532 = vrcp.f32 %v880_v20  ;;  %v829_v30 = vmul.f32 1.442695, %v737_v21  ;;  %v1288_v31 = vpop.f32.mrf.mxu0  ;;  %v673_v32 = vadd.f32 %v1761_v35, %v672_v2 }
 0x13f   : > { %v1340_v33 = vpop.f32.mrf.mxu1  ;;  %v998_v34 = vmin.f32 %v949_v25, 1.0  ;;  %v855_v36 = vadd.f32 1.0, %v1511_v28  ;;  %1534 = vpow2.f32 %v777_v16  ;;  %v713_v37 = vsub.f32 0.0, %v572_v27 }
 0x140   : > { %v1513_v38 = vpop.eup %1512  ;;  %v1024_v39 = vmin.f32 %v975_v29, 1.0  ;;  %1536 = vpow2.f32 %v779_v26  ;;  %v738_v40 = vsub.f32 0.0, %v673_v32  ;;  %v576_v41 = vpop.f32.mrf.mxu0  ;;  %v676_v42 = vadd.f32 %v1761_v35, %v675_v23 }
 0x141   : > { %v680_v43 = vpop.f32.mrf.mxu1  ;;  %v1515_v44 = vpop.eup %1514  ;;  %1048 = vst.msk [vmem:[%s1786_s26 + $0x50] sm:$0xff] %vm1037_vm1, %v998_v34  ;;  %v950_v45 = vmax.f32 %v1513_v38, 0.0  ;;  %1538 = vrcp.f32 %v855_v36  ;;  %v781_v46 = vmul.f32 1.442695, %v713_v37  ;;  %v577_v47 = vadd.f32 %v1761_v35, %v576_v41 }
 0x142   : > { %v1517_v48 = vpop.eup %1516  ;;  %1074 = vst.msk [vmem:[%s1786_s26 + $0x120] sm:$0xff] %vm1037_vm1, %v1024_v39  ;;  %v976_v49 = vmax.f32 %v1515_v44, 0.0  ;;  %1540 = vpow2.f32 %v829_v30  ;;  %v831_v50 = vmul.f32 1.442695, %v738_v40  ;;  %v1291_v51 = vpop.f32.mrf.mxu0  ;;  %v739_v52 = vsub.f32 0.0, %v676_v42 }
 0x143   : > { %v1343_v53 = vpop.f32.mrf.mxu1  ;;  %v1519_v54 = vpop.eup %1518  ;;  %v999_v55 = vmin.f32 %v950_v45, 1.0  ;;  %v856_v56 = vadd.f32 1.0, %v1517_v48  ;;  %1542 = vpow2.f32 %v781_v46  ;;  %v714_v57 = vsub.f32 0.0, %v577_v47 }
 0x144   : > { %v1521_v58 = vpop.eup %1520  ;;  %v1025_v59 = vmin.f32 %v976_v49, 1.0  ;;  %v881_v60 = vadd.f32 1.0, %v1519_v54  ;;  %1544 = vpow2.f32 %v831_v50  ;;  %v833_v61 = vmul.f32 1.442695, %v739_v52  ;;  %v579_v62 = vpop.f32.mrf.mxu0 }
 0x145   : > { %v683_v63 = vpop.f32.mrf.mxu1  ;;  %v1523_v0 = vpop.eup %1522  ;;  %1049 = vst.msk [vmem:[%s1786_s26 + $0x58] sm:$0xff] %vm1037_vm1, %v999_v55  ;;  %1546 = vrcp.f32 %v856_v56  ;;  %v882_v1 = vadd.f32 1.0, %v1521_v58  ;;  %v783_v2 = vmul.f32 1.442695, %v714_v57  ;;  %v580_v3 = vadd.f32 %v1761_v35, %v579_v62 }
 0x146   : > { %v1525_v4 = vpop.eup %1524  ;;  %1075 = vst.msk [vmem:[%s1786_s26 + $0x128] sm:$0xff] %vm1037_vm1, %v1025_v59  ;;  %1548 = vrcp.f32 %v881_v60  ;;  %v857_v5 = vadd.f32 1.0, %v1523_v0  ;;  %v1292_v6 = vpop.f32.mrf.mxu0  ;;  %v681_v7 = vadd.f32 %v1761_v35, %v680_v43  ;;  %v684_v8 = vadd.f32 %v1761_v35, %v683_v63 }
 0x147   : > { %v1344_v9 = vpop.f32.mrf.mxu1  ;;  %v1527_v10 = vpop.eup %1526  ;;  %v951_v11 = vmax.f32 %v1525_v4, 0.0  ;;  %1550 = vrcp.f32 %v882_v1  ;;  %v715_v12 = vsub.f32 0.0, %v580_v3 }
 0x148   : > { %v977_v13 = vmax.f32 %v1527_v10, 0.0  ;;  %1552 = vrcp.f32 %v857_v5  ;;  %v740_v14 = vsub.f32 0.0, %v681_v7  ;;  %v584_v15 = vpop.f32.mrf.mxu0  ;;  %v741_v16 = vsub.f32 0.0, %v684_v8 }
 0x149   : > { %v688_v17 = vpop.f32.mrf.mxu1  ;;  %v1529_v18 = vpop.eup %1528  ;;  %v1000_v19 = vmin.f32 %v951_v11, 1.0  ;;  %1554 = vpow2.f32 %v783_v2  ;;  %v785_v20 = vmul.f32 1.442695, %v715_v12  ;;  %v585_v21 = vadd.f32 %v1761_v35, %v584_v15 }
 0x14a   : > { %v1531_v22 = vpop.eup %1530  ;;  %v1026_v23 = vmin.f32 %v977_v13, 1.0  ;;  %v883_v24 = vadd.f32 1.0, %v1529_v18  ;;  %1556 = vpow2.f32 %v833_v61  ;;  %v835_v25 = vmul.f32 1.442695, %v740_v14  ;;  %v1295_v26 = vpop.f32.mrf.mxu0  ;;  %v1606_v61 = vld [vmem:[#allocation2] ss:$0 sm:$0xff] }
 0x14b   : > { %v1347_v27 = vpop.f32.mrf.mxu1  ;;  %v1533_v28 = vpop.eup %1532  ;;  %1050 = vst.msk [vmem:[%s1786_s26 + $0x60] sm:$0xff] %vm1037_vm1, %v1000_v19  ;;  %v952_v29 = vmax.f32 %v1531_v22, 0.0  ;;  %1558 = vpow2.f32 %v785_v20  ;;  %v716_v30 = vsub.f32 0.0, %v585_v21  ;;  %v837_v31 = vmul.f32 1.442695, %v741_v16 }
 0x14c   : > { %v1535_v32 = vpop.eup %1534  ;;  %1076 = vst.msk [vmem:[%s1786_s26 + $0x130] sm:$0xff] %vm1037_vm1, %v1026_v23  ;;  %v978_v33 = vmax.f32 %v1533_v28, 0.0  ;;  %1560 = vrcp.f32 %v883_v24  ;;  %v587_v34 = vpop.f32.mrf.mxu0  ;;  %v689_v36 = vadd.f32 %v1761_v35, %v688_v17 }
 0x14d   : > { %v691_v37 = vpop.f32.mrf.mxu1  ;;  %v1537_v38 = vpop.eup %1536  ;;  %v1001_v39 = vmin.f32 %v952_v29, 1.0  ;;  %v858_v40 = vadd.f32 1.0, %v1535_v32  ;;  %1562 = vpow2.f32 %v835_v25  ;;  %v787_v41 = vmul.f32 1.442695, %v716_v30 }
 0x14e   : > { %v1539_v42 = vpop.eup %1538  ;;  %v1027_v43 = vmin.f32 %v978_v33, 1.0  ;;  %v859_v44 = vadd.f32 1.0, %v1537_v38  ;;  %1564 = vpow2.f32 %v837_v31  ;;  %v588_v45 = vadd.f32 %v1761_v35, %v587_v34  ;;  %v1296_v46 = vpop.f32.mrf.mxu0 }
 0x14f   : > { %v1348_v47 = vpop.f32.mrf.mxu1  ;;  %v1541_v48 = vpop.eup %1540  ;;  %1051 = vst.msk [vmem:[%s1786_s26 + $0x68] sm:$0xff] %vm1037_vm1, %v1001_v39  ;;  %v953_v49 = vmax.f32 %v1539_v42, 0.0  ;;  %1566 = vrcp.f32 %v858_v40  ;;  %v742_v50 = vsub.f32 0.0, %v689_v36 }
 0x150   : > { %v1543_v51 = vpop.eup %1542  ;;  %1077 = vst.msk [vmem:[%s1786_s26 + $0x138] sm:$0xff] %vm1037_vm1, %v1027_v43  ;;  %1568 = vrcp.f32 %v859_v44  ;;  %v884_v52 = vadd.f32 1.0, %v1541_v48  ;;  %v717_v53 = vsub.f32 0.0, %v588_v45  ;;  %v592_v54 = vpop.f32.mrf.mxu0 }
 0x151   : > { %v1545_v55 = vpop.eup %1544  ;;  %v1002_v56 = vmin.f32 %v953_v49, 1.0  ;;  %v860_v57 = vadd.f32 1.0, %v1543_v51  ;;  %1570 = vpow2.f32 %v787_v41  ;;  %v839_v35 = vmul.f32 1.442695, %v742_v50 }
 0x152   : > { %v1547_v58 = vpop.eup %1546  ;;  %1572 = vrcp.f32 %v884_v52  ;;  %v885_v59 = vadd.f32 1.0, %v1545_v55  ;;  %v789_v60 = vmul.f32 1.442695, %v717_v53  ;;  %v593_v62 = vadd.f32 %v1606_v61, %v592_v54  ;;  %v1299_v63 = vpop.f32.mrf.mxu0 }
 0x153   : > { %v1549_v0 = vpop.eup %1548  ;;  %1052 = vst.msk [vmem:[%s1786_s26 + $0x70] sm:$0xff] %vm1037_vm1, %v1002_v56  ;;  %v954_v1 = vmax.f32 %v1547_v58, 0.0  ;;  %1574 = vrcp.f32 %v860_v57 }
 0x154   : > { %v1551_v2 = vpop.eup %1550  ;;  %v979_v3 = vmax.f32 %v1549_v0, 0.0  ;;  %1576 = vrcp.f32 %v885_v59  ;;  %v718_v4 = vsub.f32 0.0, %v593_v62  ;;  %v595_v5 = vpop.f32.mrf.mxu0 }
 0x155   : > { %v1553_v6 = vpop.eup %1552  ;;  %v1003_v7 = vmin.f32 %v954_v1, 1.0  ;;  %v980_v8 = vmax.f32 %v1551_v2, 0.0  ;;  %1578 = vpow2.f32 %v789_v60  ;;  %v596_v9 = vadd.f32 %v1606_v61, %v595_v5 }
 0x156   : > { %v1555_v10 = vpop.eup %1554  ;;  %v1028_v11 = vmin.f32 %v979_v3, 1.0  ;;  %v955_v12 = vmax.f32 %v1553_v6, 0.0  ;;  %1580 = vpow2.f32 %v839_v35  ;;  %v791_v13 = vmul.f32 1.442695, %v718_v4  ;;  %v1300_v14 = vpop.f32.mrf.mxu0 }
 0x157   : > { %v1557_v15 = vpop.eup %1556  ;;  %1053 = vst.msk [vmem:[%s1786_s26 + $0x78] sm:$0xff] %vm1037_vm1, %v1003_v7  ;;  %v1029_v16 = vmin.f32 %v980_v8, 1.0  ;;  %v861_v17 = vadd.f32 1.0, %v1555_v10  ;;  %v719_v18 = vsub.f32 0.0, %v596_v9 }
 0x158   : > { %v1559_v19 = vpop.eup %1558  ;;  %1078 = vst.msk [vmem:[%s1786_s26 + $0x140] sm:$0xff] %vm1037_vm1, %v1028_v11  ;;  %v1004_v20 = vmin.f32 %v955_v12, 1.0  ;;  %v886_v21 = vadd.f32 1.0, %v1557_v15  ;;  %1582 = vpow2.f32 %v791_v13 }
 0x159   : > { %v1561_v22 = vpop.eup %1560  ;;  %1079 = vst.msk [vmem:[%s1786_s26 + $0x148] sm:$0xff] %vm1037_vm1, %v1029_v16  ;;  %1584 = vrcp.f32 %v861_v17  ;;  %v862_v23 = vadd.f32 1.0, %v1559_v19  ;;  %v793_v24 = vmul.f32 1.442695, %v719_v18 }
 0x15a   : > { %v1563_v25 = vpop.eup %1562  ;;  %1054 = vst.msk [vmem:[%s1786_s26 + $0x80] sm:$0xff] %vm1037_vm1, %v1004_v20  ;;  %v981_v26 = vmax.f32 %v1561_v22, 0.0  ;;  %1586 = vrcp.f32 %v886_v21 }
 0x15b   : > { %v1565_v27 = vpop.eup %1564  ;;  %1588 = vrcp.f32 %v862_v23  ;;  %v887_v28 = vadd.f32 1.0, %v1563_v25 }
 0x15c   : > { %v1567_v29 = vpop.eup %1566  ;;  %v1030_v30 = vmin.f32 %v981_v26, 1.0  ;;  %v888_v31 = vadd.f32 1.0, %v1565_v27  ;;  %1590 = vpow2.f32 %v793_v24 }
 0x15d   : > { %v1569_v32 = vpop.eup %1568  ;;  %v956_v33 = vmax.f32 %v1567_v29, 0.0  ;;  %1592 = vrcp.f32 %v887_v28 }
 0x15e   : > { %v1571_v34 = vpop.eup %1570  ;;  %1080 = vst.msk [vmem:[%s1786_s26 + $0x150] sm:$0xff] %vm1037_vm1, %v1030_v30  ;;  %v957_v36 = vmax.f32 %v1569_v32, 0.0  ;;  %1594 = vrcp.f32 %v888_v31 }
 0x15f   : > { %v1573_v37 = vpop.eup %1572  ;;  %v1005_v38 = vmin.f32 %v956_v33, 1.0  ;;  %v863_v39 = vadd.f32 1.0, %v1571_v34 }
 0x160   : > { %v1575_v40 = vpop.eup %1574  ;;  %v1006_v41 = vmin.f32 %v957_v36, 1.0  ;;  %v982_v42 = vmax.f32 %v1573_v37, 0.0 }
 0x161   : > { %v1577_v43 = vpop.eup %1576  ;;  %1055 = vst.msk [vmem:[%s1786_s26 + $0x88] sm:$0xff] %vm1037_vm1, %v1005_v38  ;;  %v958_v44 = vmax.f32 %v1575_v40, 0.0  ;;  %1596 = vrcp.f32 %v863_v39 }
 0x162   : > { %v1579_v45 = vpop.eup %1578  ;;  %1056 = vst.msk [vmem:[%s1786_s26 + $0x90] sm:$0xff] %vm1037_vm1, %v1006_v41  ;;  %v1031_v46 = vmin.f32 %v982_v42, 1.0  ;;  %v983_v47 = vmax.f32 %v1577_v43, 0.0 }
 0x163   : > { %v1581_v48 = vpop.eup %1580  ;;  %v1007_v49 = vmin.f32 %v958_v44, 1.0  ;;  %v864_v50 = vadd.f32 1.0, %v1579_v45 }
 0x164   : > { %1081 = vst.msk [vmem:[%s1786_s26 + $0x158] sm:$0xff] %vm1037_vm1, %v1031_v46  ;;  %v1032_v51 = vmin.f32 %v983_v47, 1.0  ;;  %v889_v52 = vadd.f32 1.0, %v1581_v48 }
 0x165   : > { %v1583_v53 = vpop.eup %1582  ;;  %1057 = vst.msk [vmem:[%s1786_s26 + $0x98] sm:$0xff] %vm1037_vm1, %v1007_v49  ;;  %1598 = vrcp.f32 %v864_v50 }
 0x166   : > { %v1585_v54 = vpop.eup %1584  ;;  %1082 = vst.msk [vmem:[%s1786_s26 + $0x160] sm:$0xff] %vm1037_vm1, %v1032_v51  ;;  %1600 = vrcp.f32 %v889_v52  ;;  %v865_v55 = vadd.f32 1.0, %v1583_v53 }
 0x167   : > { %v1587_v56 = vpop.eup %1586  ;;  %v959_v57 = vmax.f32 %v1585_v54, 0.0 }
 0x168   : > { %v1589_v35 = vpop.eup %1588  ;;  %v984_v58 = vmax.f32 %v1587_v56, 0.0  ;;  %1602 = vrcp.f32 %v865_v55 }
 0x169   : > { %v1591_v59 = vpop.eup %1590  ;;  %v1008_v60 = vmin.f32 %v959_v57, 1.0  ;;  %v960_v61 = vmax.f32 %v1589_v35, 0.0 }
 0x16a   : > { %v1593_v62 = vpop.eup %1592  ;;  %v1033_v63 = vmin.f32 %v984_v58, 1.0  ;;  %v866_v0 = vadd.f32 1.0, %v1591_v59 }
 0x16b   : > { %v1595_v1 = vpop.eup %1594  ;;  %1058 = vst.msk [vmem:[%s1786_s26 + $0xa0] sm:$0xff] %vm1037_vm1, %v1008_v60  ;;  %v1009_v2 = vmin.f32 %v960_v61, 1.0  ;;  %v985_v3 = vmax.f32 %v1593_v62, 0.0 }
 0x16c   : > { %1083 = vst.msk [vmem:[%s1786_s26 + $0x168] sm:$0xff] %vm1037_vm1, %v1033_v63  ;;  %v986_v4 = vmax.f32 %v1595_v1, 0.0  ;;  %1604 = vrcp.f32 %v866_v0 }
 0x16d   : > { %1059 = vst.msk [vmem:[%s1786_s26 + $0xa8] sm:$0xff] %vm1037_vm1, %v1009_v2  ;;  %v1034_v5 = vmin.f32 %v985_v3, 1.0 }
 0x16e   : > { %v1597_v6 = vpop.eup %1596  ;;  %v1035_v7 = vmin.f32 %v986_v4, 1.0 }
 0x16f   : > { %1084 = vst.msk [vmem:[%s1786_s26 + $0x170] sm:$0xff] %vm1037_vm1, %v1034_v5  ;;  %v961_v8 = vmax.f32 %v1597_v6, 0.0 }
 0x170   : > { %1085 = vst.msk [vmem:[%s1786_s26 + $0x178] sm:$0xff] %vm1037_vm1, %v1035_v7 }
 0x171   : > { %v1010_v9 = vmin.f32 %v961_v8, 1.0 }
 0x172   : > { %v1599_v10 = vpop.eup %1598 }
 0x173   : > { %v1601_v11 = vpop.eup %1600  ;;  %1060 = vst.msk [vmem:[%s1786_s26 + $0xb0] sm:$0xff] %vm1037_vm1, %v1010_v9  ;;  %v962_v12 = vmax.f32 %v1599_v10, 0.0 }
 0x174   : > { %v987_v13 = vmax.f32 %v1601_v11, 0.0 }
 0x175   : > { %v1603_v14 = vpop.eup %1602  ;;  %v1011_v15 = vmin.f32 %v962_v12, 1.0 }
 0x176   : > { %v1036_v16 = vmin.f32 %v987_v13, 1.0  ;;  %v963_v17 = vmax.f32 %v1603_v14, 0.0 }
 0x177   : > { %1061 = vst.msk [vmem:[%s1786_s26 + $0xb8] sm:$0xff] %vm1037_vm1, %v1011_v15 }
 0x178   : > { %1086 = vst.msk [vmem:[%s1786_s26 + $0x180] sm:$0xff] %vm1037_vm1, %v1036_v16  ;;  %v1012_v18 = vmin.f32 %v963_v17, 1.0 }
 0x179   : > { %v1605_v19 = vpop.eup %1604 }
 0x17a   : > { %1062 = vst.msk [vmem:[%s1786_s26 + $0xc0] sm:$0xff] %vm1037_vm1, %v1012_v18  ;;  %v964_v20 = vmax.f32 %v1605_v19, 0.0 }
 0x17c   : > { %v1013_v21 = vmin.f32 %v964_v20, 1.0 }
 0x17e   : > { %1063 = vst.msk [vmem:[%s1786_s26 + $0xc8] sm:$0xff] %vm1037_vm1, %v1013_v21 }
 0x17f PF: > { %s15_s14 = sadd.s32 1, %s1613_s14  }
 0x180   : > { %p12_p4 = scmp.ge.s32.totalorder %s15_s14, 6  }
 0x182   :  { %14 = sbr.rel (!%p12_p4) target bundleno = 3 (0x3), region = 65 }

</bundles_post_ra>
